<compile_context>
chip_gen: v7x
topology: tpu7x:2x2x1
jax: 0.10.0
libtpu: 0.0.40
codegen_flags: <defaults>
</compile_context>

<pallas_src>
import functools
import jax
import jax.numpy as jnp
from jax.experimental import pallas as pl
from jax.experimental.pallas import tpu as pltpu

NOISE_DIM = 100
NOISE_PAD = 128          # 100 -> 128 (one clean 128-lane K group)
H1, H2, H3 = 256, 512, 1024
IMG_DIM = 784
IMG_PAD = 896            # 784 -> 7 * 128 (lane-dense output slab)


def _leaky_relu(x, slope=0.2):
    return jnp.where(x > 0, x, slope * x)


def generator_kernel(x_ref,
                     w1_ref, b1_ref,
                     w2_ref, b2_ref,
                     w3_ref, b3_ref,
                     w4_ref, b4_ref,
                     o_ref):
    # All four matmuls + activations fused in one VMEM-resident pass.
    # Matmul inputs are bf16 (2x MXU rate), accumulation + epilogue are f32.
    x = x_ref[...]                                   # bf16 (block_b, 128)

    h = jnp.dot(x, w1_ref[...], preferred_element_type=jnp.float32) + b1_ref[...]
    h = _leaky_relu(h)

    h = jnp.dot(h.astype(jnp.bfloat16), w2_ref[...],
                preferred_element_type=jnp.float32) + b2_ref[...]
    h = _leaky_relu(h)

    h = jnp.dot(h.astype(jnp.bfloat16), w3_ref[...],
                preferred_element_type=jnp.float32) + b3_ref[...]
    h = _leaky_relu(h)

    h = jnp.dot(h.astype(jnp.bfloat16), w4_ref[...],
                preferred_element_type=jnp.float32) + b4_ref[...]
    o_ref[...] = jnp.tanh(h)                         # f32 (block_b, 896)


@functools.partial(jax.jit, static_argnames=("block_b",))
def generator_forward(x, kernel_params, block_b=256):
    """x: (B, NOISE_DIM) float32 -> (B, IMG_DIM) float32.

    kernel_params: output of prepare_params() (padded, bf16 weights / f32 biases).
    """
    B = x.shape[0]

    # Effective batch tile: big (256) for throughput, but never larger than the
    # sublane-rounded batch so tiny batches don't blow up padding.
    eff_b = min(block_b, ((B + 7) // 8) * 8)
    eff_b = ((eff_b + 7) // 8) * 8
    B_pad = ((B + eff_b - 1) // eff_b) * eff_b

    # Pad batch and noise dim (100 -> 128) with zeros, cast matmul input to bf16.
    x = jnp.pad(x, ((0, B_pad - B), (0, NOISE_PAD - NOISE_DIM)))
    x = x.astype(jnp.bfloat16)

    (w1, b1), (w2, b2), (w3, b3), (w4, b4) = kernel_params

    grid = (B_pad // eff_b,)

    def row_spec(ncols):
        # Tiled over batch; features on the lane axis (full array dim).
        return pl.BlockSpec((eff_b, ncols), lambda i: (i, 0))

    def const_spec(shape):
        # Weights/biases: same block every grid step -> fetched once,
        # single-buffered (no point double-buffering a constant block).
        return pl.BlockSpec(shape, lambda i: (0,) * len(shape),
                            pipeline_mode=pl.Buffered(1))

    out = pl.pallas_call(
        generator_kernel,
        out_shape=jax.ShapeDtypeStruct((B_pad, IMG_PAD), jnp.float32),
        grid_spec=pltpu.PrefetchScalarGridSpec(
            num_scalar_prefetch=0,
            grid=grid,
            in_specs=[
                row_spec(NOISE_PAD),
                const_spec((NOISE_PAD, H1)), const_spec((1, H1)),
                const_spec((H1, H2)),        const_spec((1, H2)),
                const_spec((H2, H3)),        const_spec((1, H3)),
                const_spec((H3, IMG_PAD)),   const_spec((1, IMG_PAD)),
            ],
            out_specs=row_spec(IMG_PAD),
        ),
        compiler_params=pltpu.CompilerParams(
            dimension_semantics=("parallel",),
            vmem_limit_bytes=48 * 1024 * 1024,   # valid on v7x (64 MiB VMEM)
        ),
    )(x, w1, b1, w2, b2, w3, b3, w4, b4)

    return out[:B, :IMG_DIM]


def init_params(key):
    """Deterministic synthetic init (PyTorch-style uniform fan-in bounds),
    weights stored as (in_features, out_features) so y = x @ W + b."""
    dims = [(NOISE_DIM, H1), (H1, H2), (H2, H3), (H3, IMG_DIM)]
    params = []
    for (fan_in, fan_out) in dims:
        key, kw, kb = jax.random.split(key, 3)
        bound = 1.0 / jnp.sqrt(fan_in)
        w = jax.random.uniform(kw, (fan_in, fan_out), jnp.float32, -bound, bound)
        b = jax.random.uniform(kb, (1, fan_out), jnp.float32, -bound, bound)
        params.append((w, b))
    return params


def prepare_params(params):
    """Pad to kernel-friendly shapes and cast weights to bf16 (biases stay f32)."""
    (w1, b1), (w2, b2), (w3, b3), (w4, b4) = params
    # Pad K of layer 1: 100 -> 128 rows of zeros (matches zero-padded x cols).
    w1p = jnp.pad(w1, ((0, NOISE_PAD - NOISE_DIM), (0, 0)))
    # Pad N of layer 4: 784 -> 896 zero columns (sliced off in the wrapper).
    w4p = jnp.pad(w4, ((0, 0), (0, IMG_PAD - IMG_DIM)))
    b4p = jnp.pad(b4, ((0, 0), (0, IMG_PAD - IMG_DIM)))
    return (
        (w1p.astype(jnp.bfloat16), b1),
        (w2.astype(jnp.bfloat16), b2),
        (w3.astype(jnp.bfloat16), b3),
        (w4p.astype(jnp.bfloat16), b4p),
    )


def generator_ref(x, params):
    """Pure-JAX f32 reference of the PyTorch forward."""
    h = x
    for i, (w, b) in enumerate(params):
        h = h @ w + b
        if i < 3:
            h = jnp.where(h > 0, h, 0.2 * h)
    return jnp.tanh(h)


if __name__ == "__main__":
    key = jax.random.PRNGKey(0)
    key, kx = jax.random.split(key)

    batch = 8
    x = jax.random.normal(kx, (batch, NOISE_DIM), dtype=jnp.float32)

    params = init_params(key)
    kparams = prepare_params(params)

    out = generator_forward(x, kparams)
    out = jax.block_until_ready(out)

    assert out.shape == (batch, IMG_DIM), out.shape
    assert out.dtype == jnp.float32
    # Tanh output range sanity check.
    assert bool(jnp.all(jnp.abs(out) <= 1.0))

    # Loose numerical check vs f32 reference (bf16 matmul inputs -> ~1e-2 err).
    ref = generator_ref(x, params)
    assert bool(jnp.max(jnp.abs(out - ref)) < 0.1), float(jnp.max(jnp.abs(out - ref)))

    print("KERNEL_OK")
</pallas_src>

<mosaic_0001>
module attributes {stable_mosaic.version = 11 : i64} {
  func.func @generator_kernel(%arg0: i32, %arg1: memref<8x128xbf16, #tpu.memory_space<vmem>>, %arg2: memref<128x256xbf16, #tpu.memory_space<vmem>>, %arg3: memref<1x256xf32, #tpu.memory_space<vmem>>, %arg4: memref<256x512xbf16, #tpu.memory_space<vmem>>, %arg5: memref<1x512xf32, #tpu.memory_space<vmem>>, %arg6: memref<512x1024xbf16, #tpu.memory_space<vmem>>, %arg7: memref<1x1024xf32, #tpu.memory_space<vmem>>, %arg8: memref<1024x896xbf16, #tpu.memory_space<vmem>>, %arg9: memref<1x896xf32, #tpu.memory_space<vmem>>, %arg10: memref<8x896xf32, #tpu.memory_space<vmem>>) attributes {dimension_semantics = [#tpu.dimension_semantics<parallel>], iteration_bounds = array<i64: 1>, scalar_prefetch = 0 : i64, scratch_operands = 0 : i64, tpu.core_type = #tpu.core_type<tc>, window_params = [{transform_indices = @transform_0, window_bounds = array<i64: 8, 128>}, {pipeline_mode = #tpu.pipeline_mode<synchronous>, transform_indices = @transform_1, window_bounds = array<i64: 128, 256>}, {pipeline_mode = #tpu.pipeline_mode<synchronous>, transform_indices = @transform_2, window_bounds = array<i64: 1, 256>}, {pipeline_mode = #tpu.pipeline_mode<synchronous>, transform_indices = @transform_3, window_bounds = array<i64: 256, 512>}, {pipeline_mode = #tpu.pipeline_mode<synchronous>, transform_indices = @transform_4, window_bounds = array<i64: 1, 512>}, {pipeline_mode = #tpu.pipeline_mode<synchronous>, transform_indices = @transform_5, window_bounds = array<i64: 512, 1024>}, {pipeline_mode = #tpu.pipeline_mode<synchronous>, transform_indices = @transform_6, window_bounds = array<i64: 1, 1024>}, {pipeline_mode = #tpu.pipeline_mode<synchronous>, transform_indices = @transform_7, window_bounds = array<i64: 1024, 896>}, {pipeline_mode = #tpu.pipeline_mode<synchronous>, transform_indices = @transform_8, window_bounds = array<i64: 1, 896>}, {transform_indices = @transform_9, window_bounds = array<i64: 8, 896>}]} {
    %c0 = arith.constant 0 : index
    %c0_0 = arith.constant 0 : index
    %0 = vector.load %arg1[%c0, %c0_0] : memref<8x128xbf16, #tpu.memory_space<vmem>>, vector<8x128xbf16>
    %c0_1 = arith.constant 0 : index
    %c0_2 = arith.constant 0 : index
    %1 = vector.load %arg2[%c0_1, %c0_2] : memref<128x256xbf16, #tpu.memory_space<vmem>>, vector<128x256xbf16>
    %cst = arith.constant dense<0.000000e+00> : vector<8x256xf32>
    %2 = tpu.matmul %0, %1, %cst {dimension_numbers = #tpu.dot_dimension_numbers<[1], [0], [0], [1], [0, 0, 1, 1], [], []>} : vector<8x128xbf16>, vector<128x256xbf16>, vector<8x256xf32> -> vector<8x256xf32>
    %c0_3 = arith.constant 0 : index
    %c0_4 = arith.constant 0 : index
    %3 = vector.load %arg3[%c0_3, %c0_4] : memref<1x256xf32, #tpu.memory_space<vmem>>, vector<1x256xf32>
    %4 = vector.broadcast %3 : vector<1x256xf32> to vector<8x256xf32>
    %5 = arith.addf %2, %4 : vector<8x256xf32>
    %cst_5 = arith.constant 0.000000e+00 : f32
    %6 = vector.broadcast %cst_5 : f32 to vector<8x256xf32>
    %7 = arith.cmpf ogt, %5, %6 : vector<8x256xf32>
    %cst_6 = arith.constant 2.000000e-01 : f32
    %8 = vector.broadcast %cst_6 : f32 to vector<8x256xf32>
    %9 = arith.mulf %8, %5 : vector<8x256xf32>
    %10 = arith.select %7, %5, %9 : vector<8x256xi1>, vector<8x256xf32>
    %11 = arith.truncf %10 : vector<8x256xf32> to vector<8x256xbf16>
    %c0_7 = arith.constant 0 : index
    %c0_8 = arith.constant 0 : index
    %12 = vector.load %arg4[%c0_7, %c0_8] : memref<256x512xbf16, #tpu.memory_space<vmem>>, vector<256x512xbf16>
    %cst_9 = arith.constant dense<0.000000e+00> : vector<8x512xf32>
    %13 = tpu.matmul %11, %12, %cst_9 {dimension_numbers = #tpu.dot_dimension_numbers<[1], [0], [0], [1], [0, 0, 1, 1], [], []>} : vector<8x256xbf16>, vector<256x512xbf16>, vector<8x512xf32> -> vector<8x512xf32>
    %c0_10 = arith.constant 0 : index
    %c0_11 = arith.constant 0 : index
    %14 = vector.load %arg5[%c0_10, %c0_11] : memref<1x512xf32, #tpu.memory_space<vmem>>, vector<1x512xf32>
    %15 = vector.broadcast %14 : vector<1x512xf32> to vector<8x512xf32>
    %16 = arith.addf %13, %15 : vector<8x512xf32>
    %cst_12 = arith.constant 0.000000e+00 : f32
    %17 = vector.broadcast %cst_12 : f32 to vector<8x512xf32>
    %18 = arith.cmpf ogt, %16, %17 : vector<8x512xf32>
    %cst_13 = arith.constant 2.000000e-01 : f32
    %19 = vector.broadcast %cst_13 : f32 to vector<8x512xf32>
    %20 = arith.mulf %19, %16 : vector<8x512xf32>
    %21 = arith.select %18, %16, %20 : vector<8x512xi1>, vector<8x512xf32>
    %22 = arith.truncf %21 : vector<8x512xf32> to vector<8x512xbf16>
    %c0_14 = arith.constant 0 : index
    %c0_15 = arith.constant 0 : index
    %23 = vector.load %arg6[%c0_14, %c0_15] : memref<512x1024xbf16, #tpu.memory_space<vmem>>, vector<512x1024xbf16>
    %cst_16 = arith.constant dense<0.000000e+00> : vector<8x1024xf32>
    %24 = tpu.matmul %22, %23, %cst_16 {dimension_numbers = #tpu.dot_dimension_numbers<[1], [0], [0], [1], [0, 0, 1, 1], [], []>} : vector<8x512xbf16>, vector<512x1024xbf16>, vector<8x1024xf32> -> vector<8x1024xf32>
    %c0_17 = arith.constant 0 : index
    %c0_18 = arith.constant 0 : index
    %25 = vector.load %arg7[%c0_17, %c0_18] : memref<1x1024xf32, #tpu.memory_space<vmem>>, vector<1x1024xf32>
    %26 = vector.broadcast %25 : vector<1x1024xf32> to vector<8x1024xf32>
    %27 = arith.addf %24, %26 : vector<8x1024xf32>
    %cst_19 = arith.constant 0.000000e+00 : f32
    %28 = vector.broadcast %cst_19 : f32 to vector<8x1024xf32>
    %29 = arith.cmpf ogt, %27, %28 : vector<8x1024xf32>
    %cst_20 = arith.constant 2.000000e-01 : f32
    %30 = vector.broadcast %cst_20 : f32 to vector<8x1024xf32>
    %31 = arith.mulf %30, %27 : vector<8x1024xf32>
    %32 = arith.select %29, %27, %31 : vector<8x1024xi1>, vector<8x1024xf32>
    %33 = arith.truncf %32 : vector<8x1024xf32> to vector<8x1024xbf16>
    %c0_21 = arith.constant 0 : index
    %c0_22 = arith.constant 0 : index
    %34 = vector.load %arg8[%c0_21, %c0_22] : memref<1024x896xbf16, #tpu.memory_space<vmem>>, vector<1024x896xbf16>
    %cst_23 = arith.constant dense<0.000000e+00> : vector<8x896xf32>
    %35 = tpu.matmul %33, %34, %cst_23 {dimension_numbers = #tpu.dot_dimension_numbers<[1], [0], [0], [1], [0, 0, 1, 1], [], []>} : vector<8x1024xbf16>, vector<1024x896xbf16>, vector<8x896xf32> -> vector<8x896xf32>
    %c0_24 = arith.constant 0 : index
    %c0_25 = arith.constant 0 : index
    %36 = vector.load %arg9[%c0_24, %c0_25] : memref<1x896xf32, #tpu.memory_space<vmem>>, vector<1x896xf32>
    %37 = vector.broadcast %36 : vector<1x896xf32> to vector<8x896xf32>
    %38 = arith.addf %35, %37 : vector<8x896xf32>
    %39 = math.tanh %38 : vector<8x896xf32>
    %c0_26 = arith.constant 0 : index
    %c0_27 = arith.constant 0 : index
    %40 = vector.load %arg10[%c0_26, %c0_27] : memref<8x896xf32, #tpu.memory_space<vmem>>, vector<8x896xf32>
    tpu.vector_store %arg10[%c0_26, %c0_27], %39 {strides = array<i32>} : memref<8x896xf32, #tpu.memory_space<vmem>>, vector<8x896xf32>,
    return
  }
  func.func @transform_0(%arg0: i32) -> (i32, i32) {
    %c0_i32 = arith.constant 0 : i32
    %c0_i32_0 = arith.constant 0 : i32
    return %arg0, %c0_i32 : i32, i32
  }
  func.func @transform_1(%arg0: i32) -> (i32, i32) {
    %c0_i32 = arith.constant 0 : i32
    %c0_i32_0 = arith.constant 0 : i32
    %c0_i32_1 = arith.constant 0 : i32
    return %c0_i32, %c0_i32_0 : i32, i32
  }
  func.func @transform_2(%arg0: i32) -> (i32, i32) {
    %c0_i32 = arith.constant 0 : i32
    %c0_i32_0 = arith.constant 0 : i32
    %c0_i32_1 = arith.constant 0 : i32
    return %c0_i32, %c0_i32_0 : i32, i32
  }
  func.func @transform_3(%arg0: i32) -> (i32, i32) {
    %c0_i32 = arith.constant 0 : i32
    %c0_i32_0 = arith.constant 0 : i32
    %c0_i32_1 = arith.constant 0 : i32
    return %c0_i32, %c0_i32_0 : i32, i32
  }
  func.func @transform_4(%arg0: i32) -> (i32, i32) {
    %c0_i32 = arith.constant 0 : i32
    %c0_i32_0 = arith.constant 0 : i32
    %c0_i32_1 = arith.constant 0 : i32
    return %c0_i32, %c0_i32_0 : i32, i32
  }
  func.func @transform_5(%arg0: i32) -> (i32, i32) {
    %c0_i32 = arith.constant 0 : i32
    %c0_i32_0 = arith.constant 0 : i32
    %c0_i32_1 = arith.constant 0 : i32
    return %c0_i32, %c0_i32_0 : i32, i32
  }
  func.func @transform_6(%arg0: i32) -> (i32, i32) {
    %c0_i32 = arith.constant 0 : i32
    %c0_i32_0 = arith.constant 0 : i32
    %c0_i32_1 = arith.constant 0 : i32
    return %c0_i32, %c0_i32_0 : i32, i32
  }
  func.func @transform_7(%arg0: i32) -> (i32, i32) {
    %c0_i32 = arith.constant 0 : i32
    %c0_i32_0 = arith.constant 0 : i32
    %c0_i32_1 = arith.constant 0 : i32
    return %c0_i32, %c0_i32_0 : i32, i32
  }
  func.func @transform_8(%arg0: i32) -> (i32, i32) {
    %c0_i32 = arith.constant 0 : i32
    %c0_i32_0 = arith.constant 0 : i32
    %c0_i32_1 = arith.constant 0 : i32
    return %c0_i32, %c0_i32_0 : i32, i32
  }
  func.func @transform_9(%arg0: i32) -> (i32, i32) {
    %c0_i32 = arith.constant 0 : i32
    %c0_i32_0 = arith.constant 0 : i32
    return %arg0, %c0_i32 : i32, i32
  }
}

</mosaic_0001>

<bundles_post_ra>
// kernel: generator_forward.1
= control target key start
LH: loop header
LB: loop body
LE: loop exit
PB: predicated region body
PF: predicated region fallthrough
CT: control target
= control target key end

     0   :  { %14 = vsyncpa [#allocation3], 0  ;;  %s8572_s0 = inlined_call_operand.vmem [shape: bf16[8,128], index: 0, kind: input, shape index: {}]   ;;  %s8573_s1 = inlined_call_operand.hbm [shape: bf16[128,256], index: 1, kind: input, shape index: {}]   ;;  %s8574_s2 = inlined_call_operand.hbm [shape: f32[1,256], index: 2, kind: input, shape index: {}]   ;;  %s8575_s3 = inlined_call_operand.hbm [shape: bf16[256,512], index: 3, kind: input, shape index: {}]   ;;  %s8576_s4 = inlined_call_operand.hbm [shape: f32[1,512], index: 4, kind: input, shape index: {}]   ;;  %s8577_s5 = inlined_call_operand.hbm [shape: bf16[512,1024], index: 5, kind: input, shape index: {}]   ;;  %s8578_s6 = inlined_call_operand.hbm [shape: f32[1,1024], index: 6, kind: input, shape index: {}]   ;;  %s8579_s7 = inlined_call_operand.hbm [shape: bf16[1024,896], index: 7, kind: input, shape index: {}]   ;;  %s8580_s8 = inlined_call_operand.hbm [shape: f32[1,896], index: 8, kind: input, shape index: {}]   ;;  %s8581_s9 = inlined_call_operand.hbm [shape: f32[8,896], index: 9, kind: output, shape index: {}]  }
   0x1   :  { %15 = vsyncpa [#allocation6], 0 }
   0x2   :  { %16 = vsyncpa [#allocation9], 0 }
   0x3   :  { %17 = vsyncpa [#allocation12], 0 }
   0x4   :  { %18 = vsyncpa [#allocation15], 0 }
   0x5   :  { %19 = vsyncpa [#allocation4], 0  ;;  %s8213_s30 = smov [#allocation5]   ;;  %s8214_s11 = smov [#allocation8]  }
   0x6   :  { %s40_s10 = sshll.u32 %s8213_s30, 4  ;;  %s62_s12 = sshll.u32 %s8214_s11, 4  ;;  %s41_s10 = int_to_ptr.vmem [resolvable:$true] %s40_s10  ;;  %s63_s12 = int_to_ptr.vmem [resolvable:$true] %s62_s12 }
   0x7   :  { %s8003_s15 = scalar_lea.hbm %s8574_s2, 32 }
   0x8   :  { %p8004_p0 = scmp.ne.s32.totalorder %s8574_s2, %s8003_s15  ;;  %p8007_p1 = scmp.lt.u32.totalorder %s8003_s15, %s8574_s2 }
   0xa   :  { %p8009_p2 = pnand %p8007_p1, %p8004_p0 }
   0xc   :  { %8012 = shalt.err (!%p8009_p2)
}
   0xd   :  { %s8013_s20 = scalar_lea.vmem %s41_s10, 32  ;;  %p8018_p4 = scmp.lt.s32.totalorder %s41_s10, %s41_s10 }
   0xe   :  { %p8014_p3 = scmp.ne.s32.totalorder %s41_s10, %s8013_s20  ;;  %p8019_p5 = scmp.lt.s32.totalorder %s8013_s20, %s8013_s20 }
  0x10   :  { %p8020_p6 = por %p8019_p5, %p8018_p4 }
  0x12   :  { %p8021_p7 = pnand %p8020_p6, %p8014_p3 }
  0x14   :  { %8024 = shalt.err (!%p8021_p7)
}
  0x15   :  { %43 = dma.hbm_to_vmem [thread:$0]  %s8574_s2, 32, %s41_s10, [#allocation6]  }
  0x16   :  { %s8025_s25 = scalar_lea.hbm %s8576_s4, 64 }
  0x17   :  { %p8026_p8 = scmp.ne.s32.totalorder %s8576_s4, %s8025_s25  ;;  %p8029_p9 = scmp.lt.u32.totalorder %s8025_s25, %s8576_s4 }
  0x19   :  { %p8031_p10 = pnand %p8029_p9, %p8026_p8 }
  0x1b   :  { %8034 = shalt.err (!%p8031_p10)
}
  0x1c   :  { %s8035_s30 = scalar_lea.vmem %s63_s12, 64  ;;  %p8040_p12 = scmp.lt.s32.totalorder %s63_s12, %s63_s12 }
  0x1d   :  { %p8036_p11 = scmp.ne.s32.totalorder %s63_s12, %s8035_s30  ;;  %p8041_p13 = scmp.lt.s32.totalorder %s8035_s30, %s8035_s30 }
  0x1f   :  { %p8042_p0 = por %p8041_p13, %p8040_p12 }
  0x21   :  { %p8043_p1 = pnand %p8042_p0, %p8036_p11 }
  0x23   :  { %8046 = shalt.err (!%p8043_p1)
}
  0x24   :  { %65 = dma.hbm_to_vmem [thread:$0]  %s8576_s4, 64, %s63_s12, [#allocation9]  }
  0x25   :  { %s8215_s11 = smov [#allocation11]   ;;  %s8216_s14 = smov [#allocation2]  }
  0x26   :  { %s84_s13 = sshll.u32 %s8215_s11, 4  ;;  %s27_s15 = sshll.u32 %s8216_s14, 4  ;;  %s85_s13 = int_to_ptr.vmem [resolvable:$true] %s84_s13  ;;  %s8305_s15 = int_to_ptr.vmem [resolvable:$true] %s27_s15 }
  0x27   :  { %s8047_s18 = scalar_lea.hbm %s8578_s6, 128 }
  0x28   :  { %p8048_p2 = scmp.ne.s32.totalorder %s8578_s6, %s8047_s18  ;;  %p8051_p3 = scmp.lt.u32.totalorder %s8047_s18, %s8578_s6 }
  0x2a   :  { %p8053_p4 = pnand %p8051_p3, %p8048_p2 }
  0x2c   :  { %8056 = shalt.err (!%p8053_p4)
}
  0x2d   :  { %s8057_s4 = scalar_lea.vmem %s85_s13, 128  ;;  %p8062_p6 = scmp.lt.s32.totalorder %s85_s13, %s85_s13 }
  0x2e   :  { %p8058_p5 = scmp.ne.s32.totalorder %s85_s13, %s8057_s4  ;;  %p8063_p7 = scmp.lt.s32.totalorder %s8057_s4, %s8057_s4 }
  0x30   :  { %p8064_p8 = por %p8063_p7, %p8062_p6 }
  0x32   :  { %p8065_p9 = pnand %p8064_p8, %p8058_p5 }
  0x34   :  { %8068 = shalt.err (!%p8065_p9)
}
  0x35   :  { %87 = dma.hbm_to_vmem [thread:$0]  %s8578_s6, 128, %s85_s13, [#allocation12]  }
  0x36   :  { %s8069_s26 = scalar_lea.hbm %s8573_s1, 2048 }
  0x37   :  { %p8070_p10 = scmp.ne.s32.totalorder %s8573_s1, %s8069_s26  ;;  %p8073_p11 = scmp.lt.u32.totalorder %s8069_s26, %s8573_s1 }
  0x39   :  { %p8075_p12 = pnand %p8073_p11, %p8070_p10 }
  0x3b   :  { %8078 = shalt.err (!%p8075_p12)
}
  0x3c   :  { %s8079_s2 = scalar_lea.vmem %s8305_s15, 2048  ;;  %p8084_p0 = scmp.lt.s32.totalorder %s8305_s15, %s8305_s15 }
  0x3d   :  { %p8080_p13 = scmp.ne.s32.totalorder %s8305_s15, %s8079_s2  ;;  %p8085_p1 = scmp.lt.s32.totalorder %s8079_s2, %s8079_s2 }
  0x3f   :  { %p8086_p2 = por %p8085_p1, %p8084_p0 }
  0x41   :  { %p8087_p3 = pnand %p8086_p2, %p8080_p13 }
  0x43   :  { %8090 = shalt.err (!%p8087_p3)
}
  0x44   :  { %s8217_s6 = smov 128   ;;  %s8218_s10 = smov 8  }
  0x45   :  { %33 = dma.hbm_to_vmem [thread:$0]  %s8573_s1, 2048, %s8305_s15, [#allocation3], %s8217_s6, %s8217_s6, %s8218_s10  }
  0x46   :  { %s8219_s14 = smov [#allocation7]   ;;  %s8091_s19 = scalar_lea.hbm %s8575_s3, 8192 }
  0x47   :  { %s49_s16 = sshll.u32 %s8219_s14, 4  ;;  %p8092_p4 = scmp.ne.s32.totalorder %s8575_s3, %s8091_s19  ;;  %s50_s16 = int_to_ptr.vmem [resolvable:$true] %s49_s16 }
  0x48   :  { %p8095_p5 = scmp.lt.u32.totalorder %s8091_s19, %s8575_s3 }
  0x4a   :  { %p8097_p6 = pnand %p8095_p5, %p8092_p4 }
  0x4c   :  { %8100 = shalt.err (!%p8097_p6)
}
  0x4d   :  { %s8101_s12 = scalar_lea.vmem %s50_s16, 8192  ;;  %p8106_p8 = scmp.lt.s32.totalorder %s50_s16, %s50_s16 }
  0x4e   :  { %p8102_p7 = scmp.ne.s32.totalorder %s50_s16, %s8101_s12  ;;  %p8107_p9 = scmp.lt.s32.totalorder %s8101_s12, %s8101_s12 }
  0x50   :  { %p8108_p10 = por %p8107_p9, %p8106_p8 }
  0x52   :  { %p8109_p11 = pnand %p8108_p10, %p8102_p7 }
  0x54   :  { %8112 = shalt.err (!%p8109_p11)
}
  0x55   :  { %s8220_s1 = smov 256   ;;  %s8221_s15 = smov 16  }
  0x56   :  { %55 = dma.hbm_to_vmem [thread:$0]  %s8575_s3, 8192, %s50_s16, [#allocation6], %s8220_s1, %s8220_s1, %s8221_s15  }
  0x57   :  { %s8222_s25 = smov [#allocation10]   ;;  %s8113_s29 = scalar_lea.hbm %s8577_s5, 32768 }
  0x58   :  { %s71_s26 = sshll.u32 %s8222_s25, 4  ;;  %p8114_p12 = scmp.ne.s32.totalorder %s8577_s5, %s8113_s29  ;;  %s72_s26 = int_to_ptr.vmem [resolvable:$true] %s71_s26 }
  0x59   :  { %p8117_p13 = scmp.lt.u32.totalorder %s8113_s29, %s8577_s5 }
  0x5b   :  { %p8119_p0 = pnand %p8117_p13, %p8114_p12 }
  0x5d   :  { %8122 = shalt.err (!%p8119_p0)
}
  0x5e   :  { %s8123_s11 = scalar_lea.vmem %s72_s26, 32768  ;;  %p8128_p2 = scmp.lt.s32.totalorder %s72_s26, %s72_s26 }
  0x5f   :  { %p8124_p1 = scmp.ne.s32.totalorder %s72_s26, %s8123_s11  ;;  %p8129_p3 = scmp.lt.s32.totalorder %s8123_s11, %s8123_s11 }
  0x61   :  { %p8130_p4 = por %p8129_p3, %p8128_p2 }
  0x63   :  { %p8131_p5 = pnand %p8130_p4, %p8124_p1 }
  0x65   :  { %8134 = shalt.err (!%p8131_p5)
}
  0x66   :  { %s8223_s3 = smov 512   ;;  %s8224_s13 = smov 32  }
  0x67   :  { %77 = dma.hbm_to_vmem [thread:$0]  %s8577_s5, 32768, %s72_s26, [#allocation9], %s8223_s3, %s8223_s3, %s8224_s13  }
  0x68   :  { %s8225_s17 = smov [#allocation13]   ;;  %s8135_s21 = scalar_lea.hbm %s8579_s7, 57344 }
  0x69   :  { %s93_s18 = sshll.u32 %s8225_s17, 4  ;;  %p8136_p6 = scmp.ne.s32.totalorder %s8579_s7, %s8135_s21  ;;  %s94_s18 = int_to_ptr.vmem [resolvable:$true] %s93_s18 }
  0x6a   :  { %p8139_p7 = scmp.lt.u32.totalorder %s8135_s21, %s8579_s7 }
  0x6c   :  { %p8141_p8 = pnand %p8139_p7, %p8136_p6 }
  0x6e   :  { %8144 = shalt.err (!%p8141_p8)
}
  0x6f   :  { %s8145_s15 = scalar_lea.vmem %s94_s18, 57344  ;;  %p8150_p10 = scmp.lt.s32.totalorder %s94_s18, %s94_s18 }
  0x70   :  { %p8146_p9 = scmp.ne.s32.totalorder %s94_s18, %s8145_s15  ;;  %p8151_p11 = scmp.lt.s32.totalorder %s8145_s15, %s8145_s15 }
  0x72   :  { %p8152_p12 = por %p8151_p11, %p8150_p10 }
  0x74   :  { %p8153_p13 = pnand %p8152_p12, %p8146_p9 }
  0x76   :  { %8156 = shalt.err (!%p8153_p13)
}
  0x77   :  { %s8226_s5 = smov 448   ;;  %s8227_s23 = smov 28  }
  0x78   :  { %99 = dma.hbm_to_vmem [thread:$0]  %s8579_s7, 57344, %s94_s18, [#allocation12], %s8226_s5, %s8226_s5, %s8227_s23  }
  0x79   :  { %s8228_s26 = smov [#allocation14]   ;;  %s8157_s30 = scalar_lea.hbm %s8580_s8, 112 }
  0x7a   :  { %s106_s27 = sshll.u32 %s8228_s26, 4  ;;  %p8158_p0 = scmp.ne.s32.totalorder %s8580_s8, %s8157_s30  ;;  %s107_s27 = int_to_ptr.vmem [resolvable:$true] %s106_s27 }
  0x7b   :  { %p8161_p1 = scmp.lt.u32.totalorder %s8157_s30, %s8580_s8 }
  0x7d   :  { %p8163_p2 = pnand %p8161_p1, %p8158_p0 }
  0x7f   :  { %8166 = shalt.err (!%p8163_p2)
}
  0x80   :  { %s8167_s3 = scalar_lea.vmem %s107_s27, 112  ;;  %s8171_s7 = scalar_lea.vmem %s107_s27, 128 }
  0x81   :  { %p8168_p3 = scmp.ne.s32.totalorder %s107_s27, %s8167_s3  ;;  %p8172_p4 = scmp.lt.s32.totalorder %s107_s27, %s107_s27 }
  0x82   :  { %p8173_p5 = scmp.lt.s32.totalorder %s8171_s7, %s8167_s3 }
  0x84   :  { %p8174_p6 = por %p8173_p5, %p8172_p4 }
  0x86   :  { %p8175_p7 = pnand %p8174_p6, %p8168_p3 }
  0x88   :  { %8178 = shalt.err (!%p8175_p7)
}
  0x89   :  { %109 = dma.hbm_to_vmem [thread:$0]  %s8580_s8, 112, %s107_s27, [#allocation15]  }
  0x8a   :  { %8201 = dma.done.wait [#allocation3], 2048  }
  0x8b   :  { %8202 = vsyncadd [#allocation3], 4294965248 }
  0x8c   :  { %8203 = dma.done.wait [#allocation6], 8224  }
  0x8d   :  { %8204 = vsyncadd [#allocation6], 4294959072 }
  0x8e   :  { %8205 = dma.done.wait [#allocation9], 32832  }
  0x8f   :  { %8206 = vsyncadd [#allocation9], 4294934464 }
  0x90   :  { %8207 = dma.done.wait [#allocation12], 57472  }
  0x91   :  { %8208 = vsyncadd [#allocation12], 4294909824 }
  0x92   :  { %8209 = dma.done.wait [#allocation15], 112  }
  0x93   :  { %8210 = vsyncadd [#allocation15], 4294967184  ;;  %v8229_v0 = vmov 0   ;;  %v7229_v1 = vld [vmem:[#allocation2 + $0x4] ss:$8 sps:$4 sm:$0xff]  }
  0x94   :  { %276 = vmatprep.mubr.bf16.mxu0 %v8229_v0  ;;  %v7231_v2 = vld [vmem:[#allocation2] ss:$8 sps:$4 sm:$0xff]   ;;  %244 = vmatprep.subr.bf16.mxu0 %v7229_v1  ;;  %v7232_v3 = vld [vmem:[#allocation2 + $0x14] ss:$8 sps:$4 sm:$0xff]   ;;  %v7234_v4 = vld [vmem:[#allocation2 + $0x10] ss:$8 sps:$4 sm:$0xff]  }
  0x95   :  { %245 = vmatpush1.bf16.msra.mxu0 %v7231_v2  ;;  %v7235_v5 = vld [vmem:[#allocation2 + $0x24] ss:$8 sps:$4 sm:$0xff]   ;;  %v7237_v6 = vld [vmem:[#allocation2 + $0x20] ss:$8 sps:$4 sm:$0xff]   ;;  %v7238_v7 = vld [vmem:[#allocation2 + $0x34] ss:$8 sps:$4 sm:$0xff]  }
  0x96   :  { %246 = vmatprep.subr.bf16.mxu0 %v7232_v3  ;;  %v7240_v8 = vld [vmem:[#allocation2 + $0x30] ss:$8 sps:$4 sm:$0xff]   ;;  %v7241_v9 = vld [vmem:[#allocation2 + $0x44] ss:$8 sps:$4 sm:$0xff]   ;;  %v7243_v10 = vld [vmem:[#allocation2 + $0x40] ss:$8 sps:$4 sm:$0xff]  }
  0x97   :  { %v7244_v11 = vld [vmem:[#allocation2 + $0x54] ss:$8 sps:$4 sm:$0xff]   ;;  %v7246_v12 = vld [vmem:[#allocation2 + $0x50] ss:$8 sps:$4 sm:$0xff]   ;;  %v7247_v13 = vld [vmem:[#allocation2 + $0x64] ss:$8 sps:$4 sm:$0xff]  }
  0x98   :  { %v7249_v14 = vld [vmem:[#allocation2 + $0x60] ss:$8 sps:$4 sm:$0xff]   ;;  %v7250_v15 = vld [vmem:[#allocation2 + $0x74] ss:$8 sps:$4 sm:$0xff]   ;;  %v7252_v16 = vld [vmem:[#allocation2 + $0x70] ss:$8 sps:$4 sm:$0xff]  }
  0x99   :  { %247 = vmatpush1.bf16.msra.mxu0 %v7234_v4  ;;  %v7255_v17 = vld [vmem:[#allocation7 + $0x4] ss:$16 sps:$4 sm:$0xff]   ;;  %v135_v18 = vld [vmem:[%s8572_s0] sm:$0xf]  ;;  %s8230_s0 = smov [#allocation16]  }
  0x9a   :  { %248 = vmatprep.subr.bf16.mxu0 %v7235_v5  ;;  %v7253_v19 = vld [vmem:[#allocation7] ss:$16 sps:$4 sm:$0xff]   ;;  %v7258_v20 = vld [vmem:[#allocation7 + $0x24] ss:$16 sps:$4 sm:$0xff]   ;;  %v7303_v50 = vld [vmem:[#allocation7 + $0xc] ss:$16 sps:$4 sm:$0xff]  }
  0x9b   :  { %v7256_v21 = vld [vmem:[#allocation7 + $0x20] ss:$16 sps:$4 sm:$0xff]   ;;  %v7261_v22 = vld [vmem:[#allocation7 + $0x44] ss:$16 sps:$4 sm:$0xff]   ;;  %s6260_s17 = sshll.u32 %s8230_s0, 4  ;;  %s6261_s17 = int_to_ptr.vmem [resolvable:$true] %s6260_s17 }
  0x9c   :  { %v7259_v23 = vld [vmem:[#allocation7 + $0x40] ss:$16 sps:$4 sm:$0xff]   ;;  %v7264_v24 = vld [vmem:[#allocation7 + $0x64] ss:$16 sps:$4 sm:$0xff]   ;;  %s8179_s18 = scalar_lea.vmem %s6261_s17, 896  ;;  %p8184_p9 = scmp.lt.s32.totalorder %s6261_s17, %s6261_s17 }
  0x9d   :  { %249 = vmatpush1.bf16.msra.mxu0 %v7237_v6  ;;  %v7262_v25 = vld [vmem:[#allocation7 + $0x60] ss:$16 sps:$4 sm:$0xff]   ;;  %v7267_v26 = vld [vmem:[#allocation7 + $0x84] ss:$16 sps:$4 sm:$0xff]   ;;  %p8180_p8 = scmp.ne.s32.totalorder %s6261_s17, %s8179_s18  ;;  %p8185_p10 = scmp.lt.s32.totalorder %s8179_s18, %s8179_s18 }
  0x9e   :  { %250 = vmatprep.subr.bf16.mxu0 %v7238_v7  ;;  %v7265_v27 = vld [vmem:[#allocation7 + $0x80] ss:$16 sps:$4 sm:$0xff]   ;;  %v7270_v28 = vld [vmem:[#allocation7 + $0xa4] ss:$16 sps:$4 sm:$0xff]  }
  0x9f   :  { %v7268_v29 = vld [vmem:[#allocation7 + $0xa0] ss:$16 sps:$4 sm:$0xff]   ;;  %v7273_v30 = vld [vmem:[#allocation7 + $0xc4] ss:$16 sps:$4 sm:$0xff]   ;;  %p8186_p11 = por %p8185_p10, %p8184_p9 }
  0xa0   :  { %v7271_v31 = vld [vmem:[#allocation7 + $0xc0] ss:$16 sps:$4 sm:$0xff]   ;;  %v7276_v32 = vld [vmem:[#allocation7 + $0xe4] ss:$16 sps:$4 sm:$0xff]  }
  0xa1   :  { %251 = vmatpush1.bf16.msra.mxu0 %v7240_v8  ;;  %v7274_v33 = vld [vmem:[#allocation7 + $0xe0] ss:$16 sps:$4 sm:$0xff]   ;;  %v7279_v34 = vld [vmem:[#allocation7 + $0x104] ss:$16 sps:$4 sm:$0xff]   ;;  %p8187_p12 = pnand %p8186_p11, %p8180_p8 }
  0xa2   :  { %252 = vmatprep.subr.bf16.mxu0 %v7241_v9  ;;  %v7277_v35 = vld [vmem:[#allocation7 + $0x100] ss:$16 sps:$4 sm:$0xff]   ;;  %v7282_v36 = vld [vmem:[#allocation7 + $0x124] ss:$16 sps:$4 sm:$0xff]  }
  0xa3   :  { %v7280_v37 = vld [vmem:[#allocation7 + $0x120] ss:$16 sps:$4 sm:$0xff]   ;;  %v7285_v38 = vld [vmem:[#allocation7 + $0x144] ss:$16 sps:$4 sm:$0xff]  }
  0xa4   :  { %v7283_v39 = vld [vmem:[#allocation7 + $0x140] ss:$16 sps:$4 sm:$0xff]   ;;  %v7288_v40 = vld [vmem:[#allocation7 + $0x164] ss:$16 sps:$4 sm:$0xff]  }
  0xa5   :  { %253 = vmatpush1.bf16.msra.mxu0 %v7243_v10  ;;  %v7286_v41 = vld [vmem:[#allocation7 + $0x160] ss:$16 sps:$4 sm:$0xff]   ;;  %v7291_v42 = vld [vmem:[#allocation7 + $0x184] ss:$16 sps:$4 sm:$0xff]  }
  0xa6   :  { %254 = vmatprep.subr.bf16.mxu0 %v7244_v11  ;;  %v7289_v43 = vld [vmem:[#allocation7 + $0x180] ss:$16 sps:$4 sm:$0xff]   ;;  %v7294_v44 = vld [vmem:[#allocation7 + $0x1a4] ss:$16 sps:$4 sm:$0xff]  }
  0xa7   :  { %v7292_v45 = vld [vmem:[#allocation7 + $0x1a0] ss:$16 sps:$4 sm:$0xff]   ;;  %v7297_v46 = vld [vmem:[#allocation7 + $0x1c4] ss:$16 sps:$4 sm:$0xff]  }
  0xa8   :  { %v7295_v47 = vld [vmem:[#allocation7 + $0x1c0] ss:$16 sps:$4 sm:$0xff]   ;;  %v7300_v48 = vld [vmem:[#allocation7 + $0x1e4] ss:$16 sps:$4 sm:$0xff]  }
  0xa9   :  { %255 = vmatpush1.bf16.msra.mxu0 %v7246_v12  ;;  %v7298_v49 = vld [vmem:[#allocation7 + $0x1e0] ss:$16 sps:$4 sm:$0xff]   ;;  %v797_v51 = vld [vmem:[#allocation10] sm:$0xff] }
  0xaa   :  { %256 = vmatprep.subr.bf16.mxu0 %v7247_v13  ;;  %v801_v52 = vld [vmem:[#allocation10 + $0x20] sm:$0xff] }
  0xab   :  { %v6354_v53 = vcombine.high %v797_v51, %v801_v52  ;;  %v6353_v54 = vcombine.low %v797_v51, %v801_v52  ;;  %v805_v55 = vld [vmem:[#allocation10 + $0x40] sm:$0xff] }
  0xac   :  { %v809_v56 = vld [vmem:[#allocation10 + $0x60] sm:$0xff] }
  0xad   :  { %257 = vmatpush1.bf16.msra.mxu0 %v7249_v14  ;;  %v6362_v57 = vcombine.high %v805_v55, %v809_v56  ;;  %2375 = vmatprep.subr.bf16.mxu1 %v6354_v53  ;;  %v6361_v58 = vcombine.low %v805_v55, %v809_v56  ;;  %v813_v59 = vld [vmem:[#allocation10 + $0x80] sm:$0xff] }
  0xae   :  { %258 = vmatprep.subr.bf16.mxu0 %v7250_v15  ;;  %2376 = vmatpush1.bf16.msra.mxu1 %v6353_v54  ;;  %v817_v60 = vld [vmem:[#allocation10 + $0xa0] sm:$0xff] }
  0xaf   :  { %2377 = vmatprep.subr.bf16.mxu1 %v6362_v57  ;;  %v6370_v61 = vcombine.high %v813_v59, %v817_v60  ;;  %v6369_v62 = vcombine.low %v813_v59, %v817_v60  ;;  %v821_v63 = vld [vmem:[#allocation10 + $0xc0] sm:$0xff] }
  0xb0   :  { %v825_v0 = vld [vmem:[#allocation10 + $0xe0] sm:$0xff] }
  0xb1   :  { %259 = vmatpush1.bf16.msra.mxu0 %v7252_v16  ;;  %v6378_v1 = vcombine.high %v821_v63, %v825_v0  ;;  %v6377_v2 = vcombine.low %v821_v63, %v825_v0  ;;  %v829_v3 = vld [vmem:[#allocation10 + $0x100] sm:$0xff]  ;;  %v7306_v63 = vld [vmem:[#allocation7 + $0x2c] ss:$16 sps:$4 sm:$0xff]  }
  0xb2   :  { %699 = vmatprep.subr.bf16.mxu0 %v7255_v17  ;;  %2378 = vmatpush1.bf16.msra.mxu1 %v6361_v58  ;;  %v833_v4 = vld [vmem:[#allocation10 + $0x120] sm:$0xff] }
  0xb3   :  { %2379 = vmatprep.subr.bf16.mxu1 %v6370_v61  ;;  %v6386_v5 = vcombine.high %v829_v3, %v833_v4  ;;  %v6385_v6 = vcombine.low %v829_v3, %v833_v4  ;;  %v837_v7 = vld [vmem:[#allocation10 + $0x140] sm:$0xff]  ;;  %v7312_v3 = vld [vmem:[#allocation7 + $0x6c] ss:$16 sps:$4 sm:$0xff]  }
  0xb4   :  { %277 = vmatmul.mubr.bf16.vlgmr.msra.gmra.mrb[0].mxu0 %v135_v18  ;;  %v841_v8 = vld [vmem:[#allocation10 + $0x160] sm:$0xff] }
  0xb5   :  { %700 = vmatpush1.bf16.msra.mxu0 %v7253_v19  ;;  %v6394_v9 = vcombine.high %v837_v7, %v841_v8  ;;  %v6393_v10 = vcombine.low %v837_v7, %v841_v8  ;;  %v845_v11 = vld [vmem:[#allocation10 + $0x180] sm:$0xff]  ;;  %v7318_v7 = vld [vmem:[#allocation7 + $0xac] ss:$16 sps:$4 sm:$0xff]  }
  0xb6   :  { %701 = vmatprep.subr.bf16.mxu0 %v7258_v20  ;;  %2380 = vmatpush1.bf16.msra.mxu1 %v6369_v62  ;;  %v849_v12 = vld [vmem:[#allocation10 + $0x1a0] sm:$0xff] }
  0xb7   :  { %2381 = vmatprep.subr.bf16.mxu1 %v6378_v1  ;;  %v6402_v13 = vcombine.high %v845_v11, %v849_v12  ;;  %v6401_v14 = vcombine.low %v845_v11, %v849_v12  ;;  %v853_v15 = vld [vmem:[#allocation10 + $0x1c0] sm:$0xff]  ;;  %v7309_v1 = vld [vmem:[#allocation7 + $0x4c] ss:$16 sps:$4 sm:$0xff]  }
  0xb8   :  { %v857_v16 = vld [vmem:[#allocation10 + $0x1e0] sm:$0xff]  ;;  %v7324_v11 = vld [vmem:[#allocation7 + $0xec] ss:$16 sps:$4 sm:$0xff]  }
  0xb9   :  { %702 = vmatpush1.bf16.msra.mxu0 %v7256_v21  ;;  %v6410_v17 = vcombine.high %v853_v15, %v857_v16  ;;  %v6409_v18 = vcombine.low %v853_v15, %v857_v16  ;;  %v861_v19 = vld [vmem:[#allocation10 + $0x200] sm:$0xff]  ;;  %v7330_v15 = vld [vmem:[#allocation7 + $0x12c] ss:$16 sps:$4 sm:$0xff]  }
  0xba   :  { %703 = vmatprep.subr.bf16.mxu0 %v7261_v22  ;;  %2382 = vmatpush1.bf16.msra.mxu1 %v6377_v2  ;;  %v865_v20 = vld [vmem:[#allocation10 + $0x220] sm:$0xff] }
  0xbb   :  { %2383 = vmatprep.subr.bf16.mxu1 %v6386_v5  ;;  %v6418_v21 = vcombine.high %v861_v19, %v865_v20  ;;  %v6417_v22 = vcombine.low %v861_v19, %v865_v20  ;;  %v7301_v61 = vld [vmem:[#allocation7 + $0x8] ss:$16 sps:$4 sm:$0xff]   ;;  %v7315_v5 = vld [vmem:[#allocation7 + $0x8c] ss:$16 sps:$4 sm:$0xff]  }
  0xbc   :  { %v7304_v0 = vld [vmem:[#allocation7 + $0x28] ss:$16 sps:$4 sm:$0xff]   ;;  %v7336_v19 = vld [vmem:[#allocation7 + $0x16c] ss:$16 sps:$4 sm:$0xff]  }
  0xbd   :  { %704 = vmatpush1.bf16.msra.mxu0 %v7259_v23  ;;  %v869_v23 = vld [vmem:[#allocation10 + $0x240] sm:$0xff] }
  0xbe   :  { %705 = vmatprep.subr.bf16.mxu0 %v7264_v24  ;;  %2384 = vmatpush1.bf16.msra.mxu1 %v6385_v6  ;;  %v873_v24 = vld [vmem:[#allocation10 + $0x260] sm:$0xff] }
  0xbf   :  { %2385 = vmatprep.subr.bf16.mxu1 %v6394_v9  ;;  %v7307_v2 = vld [vmem:[#allocation7 + $0x48] ss:$16 sps:$4 sm:$0xff]   ;;  %v7321_v9 = vld [vmem:[#allocation7 + $0xcc] ss:$16 sps:$4 sm:$0xff]  }
  0xc0   :  { %v7310_v4 = vld [vmem:[#allocation7 + $0x68] ss:$16 sps:$4 sm:$0xff]  }
  0xc1   :  { %706 = vmatpush1.bf16.msra.mxu0 %v7262_v25  ;;  %v6426_v25 = vcombine.high %v869_v23, %v873_v24  ;;  %v7313_v6 = vld [vmem:[#allocation7 + $0x88] ss:$16 sps:$4 sm:$0xff]  }
  0xc2   :  { %707 = vmatprep.subr.bf16.mxu0 %v7267_v26  ;;  %2386 = vmatpush1.bf16.msra.mxu1 %v6393_v10  ;;  %v6425_v26 = vcombine.low %v869_v23, %v873_v24  ;;  %v7316_v8 = vld [vmem:[#allocation7 + $0xa8] ss:$16 sps:$4 sm:$0xff]   ;;  %v7342_v23 = vld [vmem:[#allocation7 + $0x1ac] ss:$16 sps:$4 sm:$0xff]  }
  0xc3   :  { %2387 = vmatprep.subr.bf16.mxu1 %v6402_v13  ;;  %v7319_v10 = vld [vmem:[#allocation7 + $0xc8] ss:$16 sps:$4 sm:$0xff]   ;;  %v7327_v13 = vld [vmem:[#allocation7 + $0x10c] ss:$16 sps:$4 sm:$0xff]  }
  0xc4   :  { %v7322_v12 = vld [vmem:[#allocation7 + $0xe8] ss:$16 sps:$4 sm:$0xff]  }
  0xc5   :  { %708 = vmatpush1.bf16.msra.mxu0 %v7265_v27  ;;  %v877_v27 = vld [vmem:[#allocation10 + $0x280] sm:$0xff] }
  0xc6   :  { %709 = vmatprep.subr.bf16.mxu0 %v7270_v28  ;;  %2388 = vmatpush1.bf16.msra.mxu1 %v6401_v14  ;;  %v881_v28 = vld [vmem:[#allocation10 + $0x2a0] sm:$0xff] }
  0xc7   :  { %2389 = vmatprep.subr.bf16.mxu1 %v6410_v17  ;;  %v7325_v14 = vld [vmem:[#allocation7 + $0x108] ss:$16 sps:$4 sm:$0xff]   ;;  %v7333_v17 = vld [vmem:[#allocation7 + $0x14c] ss:$16 sps:$4 sm:$0xff]  }
  0xc8   :  { %v7328_v16 = vld [vmem:[#allocation7 + $0x128] ss:$16 sps:$4 sm:$0xff]  }
  0xc9   :  { %710 = vmatpush1.bf16.msra.mxu0 %v7268_v29  ;;  %v6434_v29 = vcombine.high %v877_v27, %v881_v28  ;;  %v7334_v20 = vld [vmem:[#allocation7 + $0x168] ss:$16 sps:$4 sm:$0xff]  }
  0xca   :  { %711 = vmatprep.subr.bf16.mxu0 %v7273_v30  ;;  %2390 = vmatpush1.bf16.msra.mxu1 %v6409_v18  ;;  %v154_v30 = vlaneseq  ;;  %v7331_v18 = vld [vmem:[#allocation7 + $0x148] ss:$16 sps:$4 sm:$0xff]  }
  0xcb   :  { %2391 = vmatprep.subr.bf16.mxu1 %v6418_v21  ;;  %v7339_v21 = vld [vmem:[#allocation7 + $0x18c] ss:$16 sps:$4 sm:$0xff]   ;;  %v7340_v24 = vld [vmem:[#allocation7 + $0x1a8] ss:$16 sps:$4 sm:$0xff]  }
  0xcd   :  { %712 = vmatpush1.bf16.msra.mxu0 %v7271_v31  ;;  %v6433_v31 = vcombine.low %v877_v27, %v881_v28  ;;  %v7348_v27 = vld [vmem:[#allocation7 + $0x1ec] ss:$16 sps:$4 sm:$0xff]  }
  0xce   :  { %713 = vmatprep.subr.bf16.mxu0 %v7276_v32  ;;  %2392 = vmatpush1.bf16.msra.mxu1 %v6417_v22  ;;  %v885_v32 = vld [vmem:[#allocation10 + $0x2c0] sm:$0xff]  ;;  %v798_v28 = vld [vmem:[#allocation10 + $0x8] sm:$0xff] }
  0xcf   :  { %2393 = vmatprep.subr.bf16.mxu1 %v6426_v25  ;;  %v7337_v22 = vld [vmem:[#allocation7 + $0x188] ss:$16 sps:$4 sm:$0xff]   ;;  %v7345_v25 = vld [vmem:[#allocation7 + $0x1cc] ss:$16 sps:$4 sm:$0xff]  }
  0xd1   :  { %714 = vmatpush1.bf16.msra.mxu0 %v7274_v33  ;;  %v889_v33 = vld [vmem:[#allocation10 + $0x2e0] sm:$0xff] }
  0xd2   :  { %715 = vmatprep.subr.bf16.mxu0 %v7279_v34  ;;  %2394 = vmatpush1.bf16.msra.mxu1 %v6425_v26  ;;  %v6442_v34 = vcombine.high %v885_v32, %v889_v33  ;;  %v7343_v26 = vld [vmem:[#allocation7 + $0x1c8] ss:$16 sps:$4 sm:$0xff]  }
  0xd3   :  { %2395 = vmatprep.subr.bf16.mxu1 %v6434_v29  ;;  %v802_v29 = vld [vmem:[#allocation10 + $0x28] sm:$0xff] }
  0xd5   :  { %716 = vmatpush1.bf16.msra.mxu0 %v7277_v35  ;;  %v8387_v35 = vshrl.u32 %v154_v30, 7  ;;  %v7346_v30 = vld [vmem:[#allocation7 + $0x1e8] ss:$16 sps:$4 sm:$0xff]  }
  0xd6   :  { %717 = vmatprep.subr.bf16.mxu0 %v7282_v36  ;;  %2396 = vmatpush1.bf16.msra.mxu1 %v6433_v31  ;;  %v6441_v36 = vcombine.low %v885_v32, %v889_v33  ;;  %v6356_v31 = vcombine.high %v798_v28, %v802_v29  ;;  %v806_v32 = vld [vmem:[#allocation10 + $0x48] sm:$0xff] }
  0xd7   :  { %2397 = vmatprep.subr.bf16.mxu1 %v6442_v34  ;;  %v810_v33 = vld [vmem:[#allocation10 + $0x68] sm:$0xff]  ;;  %v6355_v34 = vcombine.low %v798_v28, %v802_v29 }
  0xd9   :  { %718 = vmatpush1.bf16.msra.mxu0 %v7280_v37  ;;  %v893_v37 = vld [vmem:[#allocation10 + $0x300] sm:$0xff] }
  0xda   :  { %719 = vmatprep.subr.bf16.mxu0 %v7285_v38  ;;  %v897_v38 = vld [vmem:[#allocation10 + $0x320] sm:$0xff]  ;;  %2398 = vmatpush1.bf16.msra.mxu1 %v6441_v36  ;;  %v6364_v36 = vcombine.high %v806_v32, %v810_v33 }
  0xdd   :  { %720 = vmatpush1.bf16.msra.mxu0 %v7283_v39  ;;  %v152_v39 = vld [vmem:[#allocation5] sm:$0x3] }
  0xde   :  { %721 = vmatprep.subr.bf16.mxu0 %v7288_v40  ;;  %v6450_v40 = vcombine.high %v893_v37, %v897_v38 }
  0xe0   :  { %2399 = vmatprep.subr.bf16.mxu1 %v6450_v40 }
  0xe1   :  { %722 = vmatpush1.bf16.msra.mxu0 %v7286_v41  ;;  %v8390_v41 = vsub.s32 0, %v8387_v35 }
  0xe2   :  { %723 = vmatprep.subr.bf16.mxu0 %v7291_v42  ;;  %v8393_v42 = vsub.s32 1, %v8387_v35 }
  0xe5   :  { %724 = vmatpush1.bf16.msra.mxu0 %v7289_v43  ;;  %v6449_v43 = vcombine.low %v893_v37, %v897_v38  ;;  %v814_v37 = vld [vmem:[#allocation10 + $0x88] sm:$0xff] }
  0xe6   :  { %725 = vmatprep.subr.bf16.mxu0 %v7294_v44  ;;  %v901_v44 = vld [vmem:[#allocation10 + $0x340] sm:$0xff]  ;;  %v818_v38 = vld [vmem:[#allocation10 + $0xa8] sm:$0xff] }
  0xe7   :  { %2400 = vmatpush1.bf16.msra.mxu1 %v6449_v43  ;;  %v6372_v40 = vcombine.high %v814_v37, %v818_v38  ;;  %v822_v43 = vld [vmem:[#allocation10 + $0xc8] sm:$0xff] }
  0xe9   :  { %726 = vmatpush1.bf16.msra.mxu0 %v7292_v45  ;;  %v905_v45 = vld [vmem:[#allocation10 + $0x360] sm:$0xff] }
  0xea   :  { %727 = vmatprep.subr.bf16.mxu0 %v7297_v46  ;;  %v6458_v46 = vcombine.high %v901_v44, %v905_v45 }
  0xec   :  { %2401 = vmatprep.subr.bf16.mxu1 %v6458_v46 }
  0xed   :  { %728 = vmatpush1.bf16.msra.mxu0 %v7295_v47  ;;  %v157_v47 = vrot.slane %v152_v39, %v8390_v41 }
  0xee   :  { %729 = vmatprep.subr.bf16.mxu0 %v7300_v48  ;;  %v161_v48 = vrot.slane %v152_v39, %v8393_v42  ;;  %v6363_v39 = vcombine.low %v806_v32, %v810_v33 }
  0xf1   :  { %730 = vmatpush1.bf16.msra.mxu0 %v7298_v49  ;;  %v6457_v49 = vcombine.low %v901_v44, %v905_v45  ;;  %v826_v44 = vld [vmem:[#allocation10 + $0xe8] sm:$0xff]  ;;  %v6371_v45 = vcombine.low %v814_v37, %v818_v38 }
  0xf2   :  { %740 = vmatprep.subr.bf16.mxu0 %v7303_v50  ;;  %v6380_v46 = vcombine.high %v822_v43, %v826_v44 }
  0xf3   :  { %2402 = vmatpush1.bf16.msra.mxu1 %v6457_v49  ;;  %v6379_v49 = vcombine.low %v822_v43, %v826_v44 }
 0x187   :  { %v278_v50 = vpop.f32.mrb[0].mxu0 }
 0x188   :  { %v279_v51 = vadd.f32 %v278_v50, %v157_v47  ;;  %v280_v52 = vpop.f32.mrb[1].mxu0  ;;  %v830_v47 = vld [vmem:[#allocation10 + $0x108] sm:$0xff] }
 0x189   :  { %v281_v53 = vadd.f32 %v280_v52, %v161_v48  ;;  %v282_v54 = vpop.f32.mrb[2].mxu0  ;;  %v834_v48 = vld [vmem:[#allocation10 + $0x128] sm:$0xff] }
 0x18a   :  { %vm285_vm0 = vcmp.gt.f32.partialorder %v279_v51, 0.0  ;;  %v287_v55 = vmul.f32 0.2, %v279_v51  ;;  %v283_v56 = vpop.f32.mrb[3].mxu0  ;;  %v6388_v50 = vcombine.high %v830_v47, %v834_v48  ;;  %v842_v52 = vld [vmem:[#allocation10 + $0x168] sm:$0xff] }
 0x18b   :  { %vm286_vm1 = vcmp.gt.f32.partialorder %v281_v53, 0.0  ;;  %v288_v57 = vmul.f32 0.2, %v281_v53  ;;  %v850_v56 = vld [vmem:[#allocation10 + $0x1a8] sm:$0xff] }
 0x18c   :  { %v289_v58 = vsel %vm285_vm0, %v279_v51, %v287_v55  ;;  %v838_v51 = vld [vmem:[#allocation10 + $0x148] sm:$0xff] }
 0x18d   :  { %v290_v59 = vsel %vm286_vm1, %v281_v53, %v288_v57  ;;  %v8397_v62 = vpack.c.bf16 %v289_v58, %v289_v58  ;;  %v6387_v53 = vcombine.low %v830_v47, %v834_v48  ;;  %v6396_v54 = vcombine.high %v838_v51, %v842_v52  ;;  %v846_v55 = vld [vmem:[#allocation10 + $0x188] sm:$0xff] }
 0x18e   :  { %v292_v60 = vpack.c.bf16 %v290_v59, %v290_v59  ;;  %v6395_v57 = vcombine.low %v838_v51, %v842_v52  ;;  %v6404_v58 = vcombine.high %v846_v55, %v850_v56  ;;  %v909_v59 = vld [vmem:[#allocation10 + $0x380] sm:$0xff]  ;;  %v8417_v51 = vld [vmem:[#allocation8] sm:$0xf] }
 0x18f   :  { %v362_v52 = vrot.slane %v8417_v51, %v8390_v41 }
 0x190   :  { %731 = vmatprep.mubr.bf16.mxu0 %v292_v60 }
 0x191   :  { %732 = vmatmul.mubr.bf16.vlgmr.msra.gmra.mrb[4].mxu0 %v8397_v62 }
 0x192   :  { %741 = vmatpush1.bf16.msra.mxu0 %v7301_v61  ;;  %772 = vmatprep.mubr.bf16.mxu0 %v292_v60  ;;  %v913_v60 = vld [vmem:[#allocation10 + $0x3a0] sm:$0xff]  ;;  %v854_v61 = vld [vmem:[#allocation10 + $0x1c8] sm:$0xff] }
 0x193   :  { %742 = vmatprep.subr.bf16.mxu0 %v7306_v63  ;;  %v6466_v63 = vcombine.high %v909_v59, %v913_v60 }
 0x195   :  { %2403 = vmatprep.subr.bf16.mxu1 %v6466_v63 }
 0x196   :  { %743 = vmatpush1.bf16.msra.mxu0 %v7304_v0  ;;  %v6465_v0 = vcombine.low %v909_v59, %v913_v60 }
 0x197   :  { %744 = vmatprep.subr.bf16.mxu0 %v7309_v1  ;;  %v6403_v1 = vcombine.low %v846_v55, %v850_v56 }
 0x198   :  { %2404 = vmatpush1.bf16.msra.mxu1 %v6465_v0  ;;  %v937_v0 = vld [vmem:[#allocation10 + $0x460] sm:$0xff] }
 0x19a   :  { %745 = vmatpush1.bf16.msra.mxu0 %v7307_v2 }
 0x19b   :  { %746 = vmatprep.subr.bf16.mxu0 %v7312_v3  ;;  %v917_v3 = vld [vmem:[#allocation10 + $0x3c0] sm:$0xff] }
 0x19e   :  { %747 = vmatpush1.bf16.msra.mxu0 %v7310_v4  ;;  %v921_v4 = vld [vmem:[#allocation10 + $0x3e0] sm:$0xff] }
 0x19f   :  { %748 = vmatprep.subr.bf16.mxu0 %v7315_v5  ;;  %v862_v5 = vld [vmem:[#allocation10 + $0x208] sm:$0xff] }
 0x1a2   :  { %749 = vmatpush1.bf16.msra.mxu0 %v7313_v6  ;;  %v866_v6 = vld [vmem:[#allocation10 + $0x228] sm:$0xff] }
 0x1a3   :  { %750 = vmatprep.subr.bf16.mxu0 %v7318_v7  ;;  %v6474_v7 = vcombine.high %v917_v3, %v921_v4 }
 0x1a5   :  { %2405 = vmatprep.subr.bf16.mxu1 %v6474_v7 }
 0x1a6   :  { %751 = vmatpush1.bf16.msra.mxu0 %v7316_v8  ;;  %v6473_v8 = vcombine.low %v917_v3, %v921_v4 }
 0x1a7   :  { %752 = vmatprep.subr.bf16.mxu0 %v7321_v9 }
 0x1a8   :  { %2406 = vmatpush1.bf16.msra.mxu1 %v6473_v8  ;;  %v941_v8 = vld [vmem:[#allocation10 + $0x480] sm:$0xff] }
 0x1aa   :  { %753 = vmatpush1.bf16.msra.mxu0 %v7319_v10  ;;  %v6420_v10 = vcombine.high %v862_v5, %v866_v6 }
 0x1ab   :  { %754 = vmatprep.subr.bf16.mxu0 %v7324_v11  ;;  %v8401_v11 = vld [vmem:[#allocation10 + $0x400] sm:$0xff] }
 0x1ae   :  { %755 = vmatpush1.bf16.msra.mxu0 %v7322_v12  ;;  %v8403_v12 = vld [vmem:[#allocation10 + $0x420] sm:$0xff] }
 0x1af   :  { %756 = vmatprep.subr.bf16.mxu0 %v7327_v13  ;;  %v8405_v13 = vld [vmem:[#allocation10 + $0x408] sm:$0xff] }
 0x1b2   :  { %757 = vmatpush1.bf16.msra.mxu0 %v7325_v14  ;;  %v870_v14 = vld [vmem:[#allocation10 + $0x248] sm:$0xff] }
 0x1b3   :  { %758 = vmatprep.subr.bf16.mxu0 %v7330_v15  ;;  %v874_v15 = vld [vmem:[#allocation10 + $0x268] sm:$0xff] }
 0x1b6   :  { %759 = vmatpush1.bf16.msra.mxu0 %v7328_v16  ;;  %v6482_v16 = vcombine.high %v8401_v11, %v8403_v12 }
 0x1b7   :  { %760 = vmatprep.subr.bf16.mxu0 %v7333_v17  ;;  %v8409_v17 = vld [vmem:[#allocation10 + $0x428] sm:$0xff] }
 0x1b8   :  { %2416 = vmatprep.subr.bf16.mxu1 %v6482_v16 }
 0x1ba   :  { %761 = vmatpush1.bf16.msra.mxu0 %v7331_v18  ;;  %v6481_v18 = vcombine.low %v8401_v11, %v8403_v12 }
 0x1bb   :  { %762 = vmatprep.subr.bf16.mxu0 %v7336_v19  ;;  %v6483_v19 = vcombine.low %v8405_v13, %v8409_v17 }
 0x1be   :  { %763 = vmatpush1.bf16.msra.mxu0 %v7334_v20  ;;  %v6419_v20 = vcombine.low %v862_v5, %v866_v6 }
 0x1bf   :  { %764 = vmatprep.subr.bf16.mxu0 %v7339_v21  ;;  %v6428_v21 = vcombine.high %v870_v14, %v874_v15 }
 0x1c2   :  { %765 = vmatpush1.bf16.msra.mxu0 %v7337_v22  ;;  %v878_v22 = vld [vmem:[#allocation10 + $0x288] sm:$0xff] }
 0x1c3   :  { %766 = vmatprep.subr.bf16.mxu0 %v7342_v23  ;;  %v882_v23 = vld [vmem:[#allocation10 + $0x2a8] sm:$0xff] }
 0x1c4   :  { %v6435_v28 = vcombine.low %v878_v22, %v882_v23 }
 0x1c6   :  { %767 = vmatpush1.bf16.msra.mxu0 %v7340_v24  ;;  %v6427_v24 = vcombine.low %v870_v14, %v874_v15  ;;  %v946_v14 = vld [vmem:[#allocation10 + $0x4a8] sm:$0xff] }
 0x1c7   :  { %768 = vmatprep.subr.bf16.mxu0 %v7345_v25  ;;  %v6436_v25 = vcombine.high %v878_v22, %v882_v23  ;;  %v949_v22 = vld [vmem:[#allocation10 + $0x4c0] sm:$0xff] }
 0x1c8   :  { %v953_v23 = vld [vmem:[#allocation10 + $0x4e0] sm:$0xff] }
 0x1c9   :  { %v6506_v11 = vcombine.high %v949_v22, %v953_v23 }
 0x1ca   :  { %769 = vmatpush1.bf16.msra.mxu0 %v7343_v26  ;;  %v886_v26 = vld [vmem:[#allocation10 + $0x2c8] sm:$0xff] }
 0x1cb   :  { %770 = vmatprep.subr.bf16.mxu0 %v7348_v27  ;;  %v890_v27 = vld [vmem:[#allocation10 + $0x2e8] sm:$0xff] }
 0x1cc   :  { %v6444_v29 = vcombine.high %v886_v26, %v890_v27  ;;  %v6443_v32 = vcombine.low %v886_v26, %v890_v27 }
 0x1ce   :  { %771 = vmatpush1.bf16.msra.mxu0 %v7346_v30  ;;  %v894_v30 = vld [vmem:[#allocation10 + $0x308] sm:$0xff] }
 0x1cf   :  { %2457 = vmatprep.subr.bf16.mxu0 %v6356_v31  ;;  %v898_v31 = vld [vmem:[#allocation10 + $0x328] sm:$0xff] }
 0x1d0   :  { %v6452_v33 = vcombine.high %v894_v30, %v898_v31  ;;  %v6451_v37 = vcombine.low %v894_v30, %v898_v31 }
 0x1d1   :  { %773 = vmatmul.mubr.bf16.vlgmr.msra.gmra.mrb[8].mxu0 %v8397_v62  ;;  %v858_v62 = vld [vmem:[#allocation10 + $0x1e8] sm:$0xff] }
 0x1d2   :  { %2458 = vmatpush1.bf16.msra.mxu0 %v6355_v34  ;;  %v6412_v2 = vcombine.high %v854_v61, %v858_v62  ;;  %v6411_v9 = vcombine.low %v854_v61, %v858_v62  ;;  %v902_v34 = vld [vmem:[#allocation10 + $0x348] sm:$0xff]  ;;  %v933_v62 = vld [vmem:[#allocation10 + $0x440] sm:$0xff] }
 0x1d3   :  { %2459 = vmatprep.subr.bf16.mxu0 %v6364_v36  ;;  %v906_v36 = vld [vmem:[#allocation10 + $0x368] sm:$0xff]  ;;  %v6490_v6 = vcombine.high %v933_v62, %v937_v0  ;;  %v6489_v15 = vcombine.low %v933_v62, %v937_v0 }
 0x1d4   :  { %v6460_v38 = vcombine.high %v902_v34, %v906_v36  ;;  %v6459_v43 = vcombine.low %v902_v34, %v906_v36  ;;  %v966_v34 = vld [vmem:[#allocation10 + $0x548] sm:$0xff] }
 0x1d5   :  { %v970_v36 = vld [vmem:[#allocation10 + $0x568] sm:$0xff] }
 0x1d6   :  { %2460 = vmatpush1.bf16.msra.mxu0 %v6363_v39  ;;  %v910_v39 = vld [vmem:[#allocation10 + $0x388] sm:$0xff] }
 0x1d7   :  { %2461 = vmatprep.subr.bf16.mxu0 %v6372_v40  ;;  %v914_v40 = vld [vmem:[#allocation10 + $0x3a8] sm:$0xff] }
 0x1d8   :  { %v6468_v44 = vcombine.high %v910_v39, %v914_v40  ;;  %v6467_v47 = vcombine.low %v910_v39, %v914_v40  ;;  %v6524_v40 = vcombine.high %v966_v34, %v970_v36  ;;  %v990_v62 = vld [vmem:[#allocation10 + $0x608] sm:$0xff] }
 0x1da   :  { %2462 = vmatpush1.bf16.msra.mxu0 %v6371_v45  ;;  %v918_v45 = vld [vmem:[#allocation10 + $0x3c8] sm:$0xff] }
 0x1db   :  { %2463 = vmatprep.subr.bf16.mxu0 %v6380_v46  ;;  %v922_v46 = vld [vmem:[#allocation10 + $0x3e8] sm:$0xff] }
 0x1dc   :  { %v6476_v48 = vcombine.high %v918_v45, %v922_v46 }
 0x1de   :  { %2464 = vmatpush1.bf16.msra.mxu0 %v6379_v49  ;;  %v6475_v49 = vcombine.low %v918_v45, %v922_v46  ;;  %v974_v45 = vld [vmem:[#allocation10 + $0x588] sm:$0xff] }
 0x1df   :  { %2465 = vmatprep.subr.bf16.mxu0 %v6388_v50  ;;  %v6484_v50 = vcombine.high %v8405_v13, %v8409_v17  ;;  %v957_v13 = vld [vmem:[#allocation10 + $0x500] sm:$0xff]  ;;  %v978_v46 = vld [vmem:[#allocation10 + $0x5a8] sm:$0xff] }
 0x1e0   :  { %v961_v17 = vld [vmem:[#allocation10 + $0x520] sm:$0xff] }
 0x1e1   :  { %v6514_v30 = vcombine.high %v957_v13, %v961_v17 }
 0x1e2   :  { %2466 = vmatpush1.bf16.msra.mxu0 %v6387_v53  ;;  %v366_v53 = vrot.slane %v8417_v51, %v8393_v42 }
 0x1e3   :  { %2467 = vmatprep.subr.bf16.mxu0 %v6396_v54 }
 0x1e6   :  { %2468 = vmatpush1.bf16.msra.mxu0 %v6395_v57 }
 0x1e7   :  { %2469 = vmatprep.subr.bf16.mxu0 %v6404_v58 }
 0x1ea   :  { %2470 = vmatpush1.bf16.msra.mxu0 %v6403_v1  ;;  %v934_v1 = vld [vmem:[#allocation10 + $0x448] sm:$0xff] }
 0x1eb   :  { %2471 = vmatprep.subr.bf16.mxu0 %v6412_v2  ;;  %v938_v2 = vld [vmem:[#allocation10 + $0x468] sm:$0xff] }
 0x1ec   :  { %v6492_v7 = vcombine.high %v934_v1, %v938_v2  ;;  %v6491_v16 = vcombine.low %v934_v1, %v938_v2 }
 0x1ee   :  { %2472 = vmatpush1.bf16.msra.mxu0 %v6411_v9  ;;  %v945_v9 = vld [vmem:[#allocation10 + $0x4a0] sm:$0xff] }
 0x1ef   :  { %2473 = vmatprep.subr.bf16.mxu0 %v6420_v10  ;;  %v942_v10 = vld [vmem:[#allocation10 + $0x488] sm:$0xff]  ;;  %v6497_v26 = vcombine.low %v941_v8, %v945_v9 }
 0x1f0   :  { %v6499_v27 = vcombine.low %v942_v10, %v946_v14 }
 0x1f2   :  { %2474 = vmatpush1.bf16.msra.mxu0 %v6419_v20  ;;  %v6498_v20 = vcombine.high %v941_v8, %v945_v9  ;;  %v998_v8 = vld [vmem:[#allocation10 + $0x648] sm:$0xff] }
 0x1f3   :  { %2475 = vmatprep.subr.bf16.mxu0 %v6428_v21  ;;  %v6500_v21 = vcombine.high %v942_v10, %v946_v14  ;;  %v1002_v9 = vld [vmem:[#allocation10 + $0x668] sm:$0xff] }
 0x1f6   :  { %2476 = vmatpush1.bf16.msra.mxu0 %v6427_v24  ;;  %v950_v24 = vld [vmem:[#allocation10 + $0x4c8] sm:$0xff] }
 0x1f7   :  { %2477 = vmatprep.subr.bf16.mxu0 %v6436_v25  ;;  %v954_v25 = vld [vmem:[#allocation10 + $0x4e8] sm:$0xff] }
 0x1f8   :  { %v6508_v12 = vcombine.high %v950_v24, %v954_v25 }
 0x1fa   :  { %2478 = vmatpush1.bf16.msra.mxu0 %v6435_v28  ;;  %v6505_v28 = vcombine.low %v949_v22, %v953_v23  ;;  %v1006_v22 = vld [vmem:[#allocation10 + $0x688] sm:$0xff] }
 0x1fb   :  { %2479 = vmatprep.subr.bf16.mxu0 %v6444_v29  ;;  %v6507_v29 = vcombine.low %v950_v24, %v954_v25  ;;  %v1010_v23 = vld [vmem:[#allocation10 + $0x6a8] sm:$0xff]  ;;  %v6555_v25 = vcombine.low %v998_v8, %v1002_v9 }
 0x1fe   :  { %2480 = vmatpush1.bf16.msra.mxu0 %v6443_v32  ;;  %v965_v32 = vld [vmem:[#allocation10 + $0x540] sm:$0xff] }
 0x1ff   :  { %2481 = vmatprep.subr.bf16.mxu0 %v6452_v33  ;;  %v969_v33 = vld [vmem:[#allocation10 + $0x560] sm:$0xff] }
 0x200   :  { %v6522_v39 = vcombine.high %v965_v32, %v969_v33 }
 0x202   :  { %2482 = vmatpush1.bf16.msra.mxu0 %v6451_v37  ;;  %v6513_v37 = vcombine.low %v957_v13, %v961_v17  ;;  %v1014_v13 = vld [vmem:[#allocation10 + $0x6c8] sm:$0xff] }
 0x203   :  { %2483 = vmatprep.subr.bf16.mxu0 %v6460_v38  ;;  %v1018_v17 = vld [vmem:[#allocation10 + $0x6e8] sm:$0xff] }
 0x206   :  { %2484 = vmatpush1.bf16.msra.mxu0 %v6459_v43  ;;  %v973_v43 = vld [vmem:[#allocation10 + $0x580] sm:$0xff] }
 0x207   :  { %2485 = vmatprep.subr.bf16.mxu0 %v6468_v44  ;;  %v977_v44 = vld [vmem:[#allocation10 + $0x5a0] sm:$0xff] }
 0x20a   :  { %2486 = vmatpush1.bf16.msra.mxu0 %v6467_v47  ;;  %v6521_v47 = vcombine.low %v965_v32, %v969_v33  ;;  %v1022_v32 = vld [vmem:[#allocation10 + $0x708] sm:$0xff] }
 0x20b   :  { %2487 = vmatprep.subr.bf16.mxu0 %v6476_v48  ;;  %v6523_v48 = vcombine.low %v966_v34, %v970_v36  ;;  %v1026_v33 = vld [vmem:[#allocation10 + $0x728] sm:$0xff]  ;;  %v6571_v36 = vcombine.low %v1014_v13, %v1018_v17 }
 0x20e   :  { %2488 = vmatpush1.bf16.msra.mxu0 %v6475_v49  ;;  %v6530_v49 = vcombine.high %v973_v43, %v977_v44 }
 0x20f   :  { %2498 = vmatprep.subr.bf16.mxu0 %v6484_v50  ;;  %v6532_v50 = vcombine.high %v974_v45, %v978_v46 }
 0x264   :  { %v733_v54 = vpop.f32.mrb[4].mxu0 }
 0x265   :  { %v734_v55 = vadd.f32 %v733_v54, %v362_v52  ;;  %v735_v56 = vpop.f32.mrb[5].mxu0  ;;  %v981_v52 = vld [vmem:[#allocation10 + $0x5c0] sm:$0xff]  ;;  %v982_v54 = vld [vmem:[#allocation10 + $0x5c8] sm:$0xff] }
 0x266   :  { %v736_v57 = vadd.f32 %v735_v56, %v366_v53  ;;  %v737_v58 = vpop.f32.mrb[6].mxu0  ;;  %v985_v53 = vld [vmem:[#allocation10 + $0x5e0] sm:$0xff]  ;;  %v6529_v56 = vcombine.low %v973_v43, %v977_v44  ;;  %v1030_v43 = vld [vmem:[#allocation10 + $0x748] sm:$0xff] }
 0x267   :  { %vm781_vm2 = vcmp.gt.f32.partialorder %v734_v55, 0.0  ;;  %v785_v59 = vmul.f32 0.2, %v734_v55  ;;  %v738_v60 = vpop.f32.mrb[7].mxu0  ;;  %v6538_v58 = vcombine.high %v981_v52, %v985_v53  ;;  %v6537_v0 = vcombine.low %v981_v52, %v985_v53  ;;  %v1034_v44 = vld [vmem:[#allocation10 + $0x768] sm:$0xff]  ;;  %v1041_v52 = vld [vmem:[#allocation10 + $0x7a0] sm:$0xff] }
 0x268   :  { %vm782_vm3 = vcmp.gt.f32.partialorder %v736_v57, 0.0  ;;  %v786_v61 = vmul.f32 0.2, %v736_v57  ;;  %v989_v60 = vld [vmem:[#allocation10 + $0x600] sm:$0xff]  ;;  %v1038_v53 = vld [vmem:[#allocation10 + $0x788] sm:$0xff] }
 0x269   :  { %v789_v63 = vsel %vm781_vm2, %v734_v55, %v785_v59  ;;  %v986_v55 = vld [vmem:[#allocation10 + $0x5e8] sm:$0xff] }
 0x26a   :  { %v790_v3 = vsel %vm782_vm3, %v736_v57, %v786_v61  ;;  %v8425_v5 = vpack.c.bf16 %v789_v63, %v789_v63  ;;  %v6531_v57 = vcombine.low %v974_v45, %v978_v46  ;;  %v6540_v59 = vcombine.high %v982_v54, %v986_v55  ;;  %v993_v61 = vld [vmem:[#allocation10 + $0x620] sm:$0xff]  ;;  %v994_v63 = vld [vmem:[#allocation10 + $0x628] sm:$0xff] }
 0x26b   :  { %v8423_v4 = vpack.c.bf16 %v790_v3, %v790_v3  ;;  %v6539_v1 = vcombine.low %v982_v54, %v986_v55  ;;  %v6546_v2 = vcombine.high %v989_v60, %v993_v61  ;;  %v6548_v3 = vcombine.high %v990_v62, %v994_v63  ;;  %v1042_v54 = vld [vmem:[#allocation10 + $0x7a8] sm:$0xff] }
 0x26c   :  { %v6545_v10 = vcombine.low %v989_v60, %v993_v61  ;;  %v6547_v14 = vcombine.low %v990_v62, %v994_v63  ;;  %v6579_v46 = vcombine.low %v1022_v32, %v1026_v33  ;;  %v8441_v55 = vsub.s32 3, %v8387_v35  ;;  %v1045_v60 = vld [vmem:[#allocation10 + $0x7c0] sm:$0xff]  ;;  %v1046_v63 = vld [vmem:[#allocation10 + $0x7c8] sm:$0xff] }
 0x26d   :  { %2407 = vmatprep.mubr.bf16.mxu1 %v8423_v4  ;;  %2489 = vmatprep.mubr.bf16.mxu0 %v8423_v4  ;;  %v1049_v62 = vld [vmem:[#allocation10 + $0x7e0] sm:$0xff] }
 0x26e   :  { %2408 = vmatmul.mubr.bf16.vlgmr.msra.gmra.mrb[0].mxu1 %v8425_v5  ;;  %2490 = vmatmul.mubr.bf16.vlgmr.msra.gmra.mrb[12].mxu0 %v8425_v5 }
 0x26f   :  { %2417 = vmatpush1.bf16.msra.mxu1 %v6481_v18  ;;  %2499 = vmatpush1.bf16.msra.mxu0 %v6483_v19  ;;  %v958_v18 = vld [vmem:[#allocation10 + $0x508] sm:$0xff] }
 0x270   :  { %2418 = vmatprep.subr.bf16.mxu1 %v6490_v6  ;;  %2500 = vmatprep.subr.bf16.mxu0 %v6492_v7  ;;  %v962_v19 = vld [vmem:[#allocation10 + $0x528] sm:$0xff]  ;;  %v997_v6 = vld [vmem:[#allocation10 + $0x640] sm:$0xff] }
 0x271   :  { %v6516_v31 = vcombine.high %v958_v18, %v962_v19  ;;  %v6515_v38 = vcombine.low %v958_v18, %v962_v19  ;;  %v1001_v7 = vld [vmem:[#allocation10 + $0x660] sm:$0xff]  ;;  %v6563_v19 = vcombine.low %v1006_v22, %v1010_v23 }
 0x272   :  { %v6553_v24 = vcombine.low %v997_v6, %v1001_v7 }
 0x273   :  { %2419 = vmatpush1.bf16.msra.mxu1 %v6489_v15  ;;  %2501 = vmatpush1.bf16.msra.mxu0 %v6491_v16  ;;  %v6554_v15 = vcombine.high %v997_v6, %v1001_v7  ;;  %v6556_v16 = vcombine.high %v998_v8, %v1002_v9  ;;  %v6602_v7 = vcombine.high %v1045_v60, %v1049_v62  ;;  %v799_v9 = vld [vmem:[#allocation10 + $0x10] sm:$0xff] }
 0x274   :  { %2420 = vmatprep.subr.bf16.mxu1 %v6498_v20  ;;  %2502 = vmatprep.subr.bf16.mxu0 %v6500_v21  ;;  %v1005_v20 = vld [vmem:[#allocation10 + $0x680] sm:$0xff] }
 0x275   :  { %v1009_v21 = vld [vmem:[#allocation10 + $0x6a0] sm:$0xff] }
 0x276   :  { %v6561_v18 = vcombine.low %v1005_v20, %v1009_v21 }
 0x277   :  { %2421 = vmatpush1.bf16.msra.mxu1 %v6497_v26  ;;  %2503 = vmatpush1.bf16.msra.mxu0 %v6499_v27  ;;  %v6562_v26 = vcombine.high %v1005_v20, %v1009_v21  ;;  %v6564_v27 = vcombine.high %v1006_v22, %v1010_v23  ;;  %v804_v20 = vld [vmem:[#allocation10 + $0x38] sm:$0xff] }
 0x278   :  { %2422 = vmatprep.subr.bf16.mxu1 %v6506_v11  ;;  %2504 = vmatprep.subr.bf16.mxu0 %v6508_v12  ;;  %v1013_v11 = vld [vmem:[#allocation10 + $0x6c0] sm:$0xff] }
 0x279   :  { %v1017_v12 = vld [vmem:[#allocation10 + $0x6e0] sm:$0xff] }
 0x27a   :  { %v6569_v34 = vcombine.low %v1013_v11, %v1017_v12 }
 0x27b   :  { %2423 = vmatpush1.bf16.msra.mxu1 %v6505_v28  ;;  %2505 = vmatpush1.bf16.msra.mxu0 %v6507_v29  ;;  %v6570_v28 = vcombine.high %v1013_v11, %v1017_v12  ;;  %v6572_v29 = vcombine.high %v1014_v13, %v1018_v17  ;;  %v807_v13 = vld [vmem:[#allocation10 + $0x50] sm:$0xff] }
 0x27c   :  { %2424 = vmatprep.subr.bf16.mxu1 %v6514_v30  ;;  %2506 = vmatprep.subr.bf16.mxu0 %v6516_v31  ;;  %v1021_v30 = vld [vmem:[#allocation10 + $0x700] sm:$0xff] }
 0x27d   :  { %v1025_v31 = vld [vmem:[#allocation10 + $0x720] sm:$0xff] }
 0x27e   :  { %v6577_v45 = vcombine.low %v1021_v30, %v1025_v31 }
 0x27f   :  { %2425 = vmatpush1.bf16.msra.mxu1 %v6513_v37  ;;  %2507 = vmatpush1.bf16.msra.mxu0 %v6515_v38  ;;  %v6578_v37 = vcombine.high %v1021_v30, %v1025_v31  ;;  %v6580_v38 = vcombine.high %v1022_v32, %v1026_v33 }
 0x280   :  { %2426 = vmatprep.subr.bf16.mxu1 %v6522_v39  ;;  %2508 = vmatprep.subr.bf16.mxu0 %v6524_v40  ;;  %v1029_v39 = vld [vmem:[#allocation10 + $0x740] sm:$0xff] }
 0x281   :  { %v1033_v40 = vld [vmem:[#allocation10 + $0x760] sm:$0xff] }
 0x283   :  { %2427 = vmatpush1.bf16.msra.mxu1 %v6521_v47  ;;  %2509 = vmatpush1.bf16.msra.mxu0 %v6523_v48  ;;  %v6586_v47 = vcombine.high %v1029_v39, %v1033_v40  ;;  %v6588_v48 = vcombine.high %v1030_v43, %v1034_v44 }
 0x284   :  { %2428 = vmatprep.subr.bf16.mxu1 %v6530_v49  ;;  %2510 = vmatprep.subr.bf16.mxu0 %v6532_v50  ;;  %v1037_v49 = vld [vmem:[#allocation10 + $0x780] sm:$0xff]  ;;  %v8438_v50 = vsub.s32 2, %v8387_v35 }
 0x286   :  { %v370_v61 = vrot.slane %v8417_v51, %v8438_v50 }
 0x287   :  { %2429 = vmatpush1.bf16.msra.mxu1 %v6529_v56  ;;  %2511 = vmatpush1.bf16.msra.mxu0 %v6531_v57  ;;  %v6585_v56 = vcombine.low %v1029_v39, %v1033_v40  ;;  %v6587_v57 = vcombine.low %v1030_v43, %v1034_v44  ;;  %v820_v39 = vld [vmem:[#allocation10 + $0xb8] sm:$0xff] }
 0x288   :  { %2430 = vmatprep.subr.bf16.mxu1 %v6538_v58  ;;  %2512 = vmatprep.subr.bf16.mxu0 %v6540_v59  ;;  %v6594_v58 = vcombine.high %v1037_v49, %v1041_v52  ;;  %v6596_v59 = vcombine.high %v1038_v53, %v1042_v54 }
 0x28b   :  { %2431 = vmatpush1.bf16.msra.mxu1 %v6537_v0  ;;  %2513 = vmatpush1.bf16.msra.mxu0 %v6539_v1  ;;  %v1050_v0 = vld [vmem:[#allocation10 + $0x7e8] sm:$0xff]  ;;  %v374_v1 = vrot.slane %v8417_v51, %v8441_v55 }
 0x28c   :  { %2432 = vmatprep.subr.bf16.mxu1 %v6546_v2  ;;  %2514 = vmatprep.subr.bf16.mxu0 %v6548_v3  ;;  %v6593_v2 = vcombine.low %v1037_v49, %v1041_v52  ;;  %v6595_v3 = vcombine.low %v1038_v53, %v1042_v54  ;;  %v6604_v8 = vcombine.high %v1046_v63, %v1050_v0  ;;  %v828_v49 = vld [vmem:[#allocation10 + $0xf8] sm:$0xff] }
 0x28f   :  { %2433 = vmatpush1.bf16.msra.mxu1 %v6545_v10  ;;  %2515 = vmatpush1.bf16.msra.mxu0 %v6547_v14 }
 0x290   :  { %2434 = vmatprep.subr.bf16.mxu1 %v6554_v15  ;;  %2516 = vmatprep.subr.bf16.mxu0 %v6556_v16  ;;  %v803_v15 = vld [vmem:[#allocation10 + $0x30] sm:$0xff]  ;;  %v800_v16 = vld [vmem:[#allocation10 + $0x18] sm:$0xff] }
 0x291   :  { %v6360_v11 = vcombine.high %v800_v16, %v804_v20  ;;  %v6357_v30 = vcombine.low %v799_v9, %v803_v15  ;;  %v6359_v32 = vcombine.low %v800_v16, %v804_v20  ;;  %v852_v16 = vld [vmem:[#allocation10 + $0x1b8] sm:$0xff] }
 0x293   :  { %2435 = vmatpush1.bf16.msra.mxu1 %v6553_v24  ;;  %2517 = vmatpush1.bf16.msra.mxu0 %v6555_v25  ;;  %v6601_v24 = vcombine.low %v1045_v60, %v1049_v62  ;;  %v6603_v25 = vcombine.low %v1046_v63, %v1050_v0  ;;  %v839_v0 = vld [vmem:[#allocation10 + $0x150] sm:$0xff] }
 0x294   :  { %2436 = vmatprep.subr.bf16.mxu1 %v6562_v26  ;;  %2518 = vmatprep.subr.bf16.mxu0 %v6564_v27  ;;  %v6358_v27 = vcombine.high %v799_v9, %v803_v15  ;;  %v848_v15 = vld [vmem:[#allocation10 + $0x198] sm:$0xff] }
 0x297   :  { %2437 = vmatpush1.bf16.msra.mxu1 %v6561_v18  ;;  %2519 = vmatpush1.bf16.msra.mxu0 %v6563_v19  ;;  %v811_v18 = vld [vmem:[#allocation10 + $0x70] sm:$0xff]  ;;  %v808_v19 = vld [vmem:[#allocation10 + $0x58] sm:$0xff] }
 0x298   :  { %2438 = vmatprep.subr.bf16.mxu1 %v6570_v28  ;;  %2520 = vmatprep.subr.bf16.mxu0 %v6572_v29  ;;  %v812_v28 = vld [vmem:[#allocation10 + $0x78] sm:$0xff]  ;;  %v6366_v33 = vcombine.high %v807_v13, %v811_v18  ;;  %v6365_v40 = vcombine.low %v807_v13, %v811_v18  ;;  %v867_v18 = vld [vmem:[#allocation10 + $0x230] sm:$0xff] }
 0x299   :  { %v6367_v43 = vcombine.low %v808_v19, %v812_v28 }
 0x29b   :  { %2439 = vmatpush1.bf16.msra.mxu1 %v6569_v34  ;;  %2521 = vmatpush1.bf16.msra.mxu0 %v6571_v36  ;;  %v6368_v34 = vcombine.high %v808_v19, %v812_v28  ;;  %v815_v36 = vld [vmem:[#allocation10 + $0x90] sm:$0xff]  ;;  %v864_v19 = vld [vmem:[#allocation10 + $0x218] sm:$0xff] }
 0x29c   :  { %2440 = vmatprep.subr.bf16.mxu1 %v6578_v37  ;;  %2522 = vmatprep.subr.bf16.mxu0 %v6580_v38  ;;  %v819_v37 = vld [vmem:[#allocation10 + $0xb0] sm:$0xff]  ;;  %v816_v38 = vld [vmem:[#allocation10 + $0x98] sm:$0xff] }
 0x29d   :  { %v6374_v44 = vcombine.high %v815_v36, %v819_v37  ;;  %v6373_v52 = vcombine.low %v815_v36, %v819_v37  ;;  %v6375_v53 = vcombine.low %v816_v38, %v820_v39  ;;  %v868_v28 = vld [vmem:[#allocation10 + $0x238] sm:$0xff]  ;;  %v871_v36 = vld [vmem:[#allocation10 + $0x250] sm:$0xff] }
 0x29e   :  { %v875_v37 = vld [vmem:[#allocation10 + $0x270] sm:$0xff] }
 0x29f   :  { %2441 = vmatpush1.bf16.msra.mxu1 %v6577_v45  ;;  %2523 = vmatpush1.bf16.msra.mxu0 %v6579_v46  ;;  %v6376_v45 = vcombine.high %v816_v38, %v820_v39  ;;  %v823_v46 = vld [vmem:[#allocation10 + $0xd0] sm:$0xff]  ;;  %v872_v38 = vld [vmem:[#allocation10 + $0x258] sm:$0xff] }
 0x2a0   :  { %2442 = vmatprep.subr.bf16.mxu1 %v6586_v47  ;;  %2524 = vmatprep.subr.bf16.mxu0 %v6588_v48  ;;  %v827_v47 = vld [vmem:[#allocation10 + $0xf0] sm:$0xff]  ;;  %v824_v48 = vld [vmem:[#allocation10 + $0xd8] sm:$0xff] }
 0x2a1   :  { %v6382_v54 = vcombine.high %v823_v46, %v827_v47  ;;  %v6381_v60 = vcombine.low %v823_v46, %v827_v47  ;;  %v876_v39 = vld [vmem:[#allocation10 + $0x278] sm:$0xff]  ;;  %v879_v46 = vld [vmem:[#allocation10 + $0x290] sm:$0xff] }
 0x2a2   :  { %v883_v47 = vld [vmem:[#allocation10 + $0x2b0] sm:$0xff] }
 0x2a3   :  { %2443 = vmatpush1.bf16.msra.mxu1 %v6585_v56  ;;  %2525 = vmatpush1.bf16.msra.mxu0 %v6587_v57  ;;  %v6384_v56 = vcombine.high %v824_v48, %v828_v49  ;;  %v831_v57 = vld [vmem:[#allocation10 + $0x110] sm:$0xff] }
 0x2a4   :  { %v774_v6 = vpop.f32.mrb[8].mxu0  ;;  %2444 = vmatprep.subr.bf16.mxu1 %v6594_v58  ;;  %2526 = vmatprep.subr.bf16.mxu0 %v6596_v59  ;;  %v835_v58 = vld [vmem:[#allocation10 + $0x130] sm:$0xff]  ;;  %v836_v59 = vld [vmem:[#allocation10 + $0x138] sm:$0xff] }
 0x2a5   :  { %v775_v10 = vadd.f32 %v774_v6, %v370_v61  ;;  %v776_v14 = vpop.f32.mrb[9].mxu0  ;;  %v6383_v61 = vcombine.low %v824_v48, %v828_v49  ;;  %v6390_v62 = vcombine.high %v831_v57, %v835_v58  ;;  %v6389_v6 = vcombine.low %v831_v57, %v835_v58  ;;  %v880_v48 = vld [vmem:[#allocation10 + $0x298] sm:$0xff]  ;;  %v887_v57 = vld [vmem:[#allocation10 + $0x2d0] sm:$0xff] }
 0x2a6   :  { %v777_v21 = vadd.f32 %v776_v14, %v374_v1  ;;  %v778_v22 = vpop.f32.mrb[10].mxu0  ;;  %v843_v1 = vld [vmem:[#allocation10 + $0x170] sm:$0xff]  ;;  %v884_v49 = vld [vmem:[#allocation10 + $0x2b8] sm:$0xff] }
 0x2a7   :  { %vm783_vm4 = vcmp.gt.f32.partialorder %v775_v10, 0.0  ;;  %v787_v23 = vmul.f32 0.2, %v775_v10  ;;  %v779_v51 = vpop.f32.mrb[11].mxu0  ;;  %2445 = vmatpush1.bf16.msra.mxu1 %v6593_v2  ;;  %2527 = vmatpush1.bf16.msra.mxu0 %v6595_v3  ;;  %v840_v2 = vld [vmem:[#allocation10 + $0x158] sm:$0xff]  ;;  %v851_v14 = vld [vmem:[#allocation10 + $0x1b0] sm:$0xff]  ;;  %v6397_v20 = vcombine.low %v839_v0, %v843_v1 }
 0x2a8   :  { %vm784_vm5 = vcmp.gt.f32.partialorder %v777_v21, 0.0  ;;  %v788_v26 = vmul.f32 0.2, %v777_v21  ;;  %2446 = vmatprep.subr.bf16.mxu1 %v6602_v7  ;;  %2528 = vmatprep.subr.bf16.mxu0 %v6604_v8  ;;  %v844_v3 = vld [vmem:[#allocation10 + $0x178] sm:$0xff]  ;;  %v6398_v8 = vcombine.high %v839_v0, %v843_v1  ;;  %v855_v51 = vld [vmem:[#allocation10 + $0x1d0] sm:$0xff] }
 0x2a9   :  { %v791_v12 = vsel %vm783_vm4, %v775_v10, %v787_v23  ;;  %v6400_v9 = vcombine.high %v840_v2, %v844_v3  ;;  %v847_v10 = vld [vmem:[#allocation10 + $0x190] sm:$0xff]  ;;  %v6408_v23 = vcombine.high %v848_v15, %v852_v16 }
 0x2aa   :  { %v792_v17 = vsel %vm784_vm5, %v777_v21, %v788_v26  ;;  %v8449_v31 = vpack.c.bf16 %v791_v12, %v791_v12  ;;  %v6399_v21 = vcombine.low %v840_v2, %v844_v3  ;;  %v6406_v22 = vcombine.high %v847_v10, %v851_v14  ;;  %v860_v26 = vld [vmem:[#allocation10 + $0x1f8] sm:$0xff]  ;;  %v891_v58 = vld [vmem:[#allocation10 + $0x2f0] sm:$0xff] }
 0x2ab   :  { %v8447_v29 = vpack.c.bf16 %v792_v17, %v792_v17  ;;  %2447 = vmatpush1.bf16.msra.mxu1 %v6601_v24  ;;  %2529 = vmatpush1.bf16.msra.mxu0 %v6603_v25  ;;  %v859_v24 = vld [vmem:[#allocation10 + $0x1f0] sm:$0xff]  ;;  %v856_v25 = vld [vmem:[#allocation10 + $0x1d8] sm:$0xff] }
 0x2ac   :  { %2539 = vmatprep.subr.bf16.mxu1 %v6358_v27  ;;  %2621 = vmatprep.subr.bf16.mxu0 %v6360_v11  ;;  %v6405_v27 = vcombine.low %v847_v10, %v851_v14  ;;  %v6407_v11 = vcombine.low %v848_v15, %v852_v16  ;;  %v6414_v12 = vcombine.high %v855_v51, %v859_v24  ;;  %v863_v17 = vld [vmem:[#allocation10 + $0x210] sm:$0xff]  ;;  %v896_v2 = vld [vmem:[#allocation10 + $0x318] sm:$0xff] }
 0x2ad   :  { %2448 = vmatprep.mubr.bf16.mxu1 %v8447_v29  ;;  %2530 = vmatprep.mubr.bf16.mxu0 %v8447_v29  ;;  %v6416_v13 = vcombine.high %v856_v25, %v860_v26  ;;  %v895_v0 = vld [vmem:[#allocation10 + $0x310] sm:$0xff]  ;;  %v900_v3 = vld [vmem:[#allocation10 + $0x338] sm:$0xff] }
 0x2ae   :  { %2449 = vmatmul.mubr.bf16.vlgmr.msra.gmra.mrb[0].mxu1 %v8449_v31  ;;  %2531 = vmatmul.mubr.bf16.vlgmr.msra.gmra.mrb[12].mxu0 %v8449_v31  ;;  %v899_v1 = vld [vmem:[#allocation10 + $0x330] sm:$0xff]  ;;  %v904_v15 = vld [vmem:[#allocation10 + $0x358] sm:$0xff] }
 0x2af   :  { %2540 = vmatpush1.bf16.msra.mxu1 %v6357_v30  ;;  %2571 = vmatprep.mubr.bf16.mxu1 %v8423_v4  ;;  %v6413_v30 = vcombine.low %v855_v51, %v859_v24  ;;  %v903_v10 = vld [vmem:[#allocation10 + $0x350] sm:$0xff]  ;;  %v908_v16 = vld [vmem:[#allocation10 + $0x378] sm:$0xff] }
 0x2b0   :  { %2622 = vmatpush1.bf16.msra.mxu0 %v6359_v32  ;;  %2653 = vmatprep.mubr.bf16.mxu0 %v8423_v4  ;;  %v832_v4 = vld [vmem:[#allocation10 + $0x118] sm:$0xff]  ;;  %v6415_v32 = vcombine.low %v856_v25, %v860_v26  ;;  %v907_v14 = vld [vmem:[#allocation10 + $0x370] sm:$0xff] }
 0x2b1   :  { %2541 = vmatprep.subr.bf16.mxu1 %v6366_v33  ;;  %2623 = vmatprep.subr.bf16.mxu0 %v6368_v34  ;;  %v6392_v63 = vcombine.high %v832_v4, %v836_v59  ;;  %v6391_v7 = vcombine.low %v832_v4, %v836_v59  ;;  %v6422_v33 = vcombine.high %v863_v17, %v867_v18  ;;  %v888_v4 = vld [vmem:[#allocation10 + $0x2d8] sm:$0xff]  ;;  %v911_v51 = vld [vmem:[#allocation10 + $0x390] sm:$0xff] }
 0x2b2   :  { %v6424_v34 = vcombine.high %v864_v19, %v868_v28  ;;  %v892_v59 = vld [vmem:[#allocation10 + $0x2f8] sm:$0xff]  ;;  %v915_v24 = vld [vmem:[#allocation10 + $0x3b0] sm:$0xff] }
 0x2b3   :  { %2542 = vmatpush1.bf16.msra.mxu1 %v6365_v40  ;;  %v6421_v40 = vcombine.low %v863_v17, %v867_v18  ;;  %v912_v25 = vld [vmem:[#allocation10 + $0x398] sm:$0xff]  ;;  %v919_v17 = vld [vmem:[#allocation10 + $0x3d0] sm:$0xff] }
 0x2b4   :  { %2624 = vmatpush1.bf16.msra.mxu0 %v6367_v43  ;;  %2543 = vmatprep.subr.bf16.mxu1 %v6374_v44  ;;  %v6423_v43 = vcombine.low %v864_v19, %v868_v28  ;;  %v6430_v44 = vcombine.high %v871_v36, %v875_v37  ;;  %v916_v26 = vld [vmem:[#allocation10 + $0x3b8] sm:$0xff]  ;;  %v923_v18 = vld [vmem:[#allocation10 + $0x3f0] sm:$0xff] }
 0x2b5   :  { %2625 = vmatprep.subr.bf16.mxu0 %v6376_v45  ;;  %v6432_v45 = vcombine.high %v872_v38, %v876_v39  ;;  %v920_v19 = vld [vmem:[#allocation10 + $0x3d8] sm:$0xff] }
 0x2b6   :  { %v924_v28 = vld [vmem:[#allocation10 + $0x3f8] sm:$0xff] }
 0x2b7   :  { %2544 = vmatpush1.bf16.msra.mxu1 %v6373_v52  ;;  %v6429_v52 = vcombine.low %v871_v36, %v875_v37  ;;  %v927_v36 = vld [vmem:[#allocation10 + $0x410] sm:$0xff] }
 0x2b8   :  { %2626 = vmatpush1.bf16.msra.mxu0 %v6375_v53  ;;  %2545 = vmatprep.subr.bf16.mxu1 %v6382_v54  ;;  %v6431_v53 = vcombine.low %v872_v38, %v876_v39  ;;  %v6438_v54 = vcombine.high %v879_v46, %v883_v47  ;;  %v931_v37 = vld [vmem:[#allocation10 + $0x430] sm:$0xff]  ;;  %v928_v38 = vld [vmem:[#allocation10 + $0x418] sm:$0xff] }
 0x2b9   :  { %2627 = vmatprep.subr.bf16.mxu0 %v6384_v56  ;;  %v6440_v56 = vcombine.high %v880_v48, %v884_v49  ;;  %v932_v39 = vld [vmem:[#allocation10 + $0x438] sm:$0xff] }
 0x2bb   :  { %2546 = vmatpush1.bf16.msra.mxu1 %v6381_v60  ;;  %v6437_v60 = vcombine.low %v879_v46, %v883_v47  ;;  %v935_v46 = vld [vmem:[#allocation10 + $0x450] sm:$0xff] }
 0x2bc   :  { %2628 = vmatpush1.bf16.msra.mxu0 %v6383_v61  ;;  %2547 = vmatprep.subr.bf16.mxu1 %v6390_v62  ;;  %v6439_v61 = vcombine.low %v880_v48, %v884_v49  ;;  %v6446_v62 = vcombine.high %v887_v57, %v891_v58  ;;  %v939_v47 = vld [vmem:[#allocation10 + $0x470] sm:$0xff]  ;;  %v6485_v48 = vcombine.low %v927_v36, %v931_v37  ;;  %v936_v49 = vld [vmem:[#allocation10 + $0x458] sm:$0xff] }
 0x2bd   :  { %2629 = vmatprep.subr.bf16.mxu0 %v6392_v63  ;;  %v6448_v63 = vcombine.high %v888_v4, %v892_v59 }
 0x2bf   :  { %2548 = vmatpush1.bf16.msra.mxu1 %v6389_v6  ;;  %v6445_v6 = vcombine.low %v887_v57, %v891_v58  ;;  %v947_v57 = vld [vmem:[#allocation10 + $0x4b0] sm:$0xff] }
 0x2c0   :  { %2630 = vmatpush1.bf16.msra.mxu0 %v6391_v7  ;;  %2549 = vmatprep.subr.bf16.mxu1 %v6398_v8  ;;  %v6447_v7 = vcombine.low %v888_v4, %v892_v59  ;;  %v6454_v8 = vcombine.high %v895_v0, %v899_v1  ;;  %v944_v4 = vld [vmem:[#allocation10 + $0x498] sm:$0xff] }
 0x2c1   :  { %2631 = vmatprep.subr.bf16.mxu0 %v6400_v9  ;;  %v6456_v9 = vcombine.high %v896_v2, %v900_v3  ;;  %v948_v59 = vld [vmem:[#allocation10 + $0x4b8] sm:$0xff] }
 0x2c3   :  { %2550 = vmatpush1.bf16.msra.mxu1 %v6397_v20  ;;  %v6453_v20 = vcombine.low %v895_v0, %v899_v1  ;;  %v951_v0 = vld [vmem:[#allocation10 + $0x4d0] sm:$0xff] }
 0x2c4   :  { %2632 = vmatpush1.bf16.msra.mxu0 %v6399_v21  ;;  %2551 = vmatprep.subr.bf16.mxu1 %v6406_v22  ;;  %v6455_v21 = vcombine.low %v896_v2, %v900_v3  ;;  %v6462_v22 = vcombine.high %v903_v10, %v907_v14  ;;  %v955_v1 = vld [vmem:[#allocation10 + $0x4f0] sm:$0xff]  ;;  %v952_v2 = vld [vmem:[#allocation10 + $0x4d8] sm:$0xff] }
 0x2c5   :  { %2633 = vmatprep.subr.bf16.mxu0 %v6408_v23  ;;  %v6464_v23 = vcombine.high %v904_v15, %v908_v16  ;;  %v956_v3 = vld [vmem:[#allocation10 + $0x4f8] sm:$0xff] }
 0x2c7   :  { %2552 = vmatpush1.bf16.msra.mxu1 %v6405_v27  ;;  %v6461_v27 = vcombine.low %v903_v10, %v907_v14  ;;  %v963_v10 = vld [vmem:[#allocation10 + $0x530] sm:$0xff]  ;;  %v960_v14 = vld [vmem:[#allocation10 + $0x518] sm:$0xff] }
 0x2c8   :  { %2634 = vmatpush1.bf16.msra.mxu0 %v6407_v11  ;;  %2553 = vmatprep.subr.bf16.mxu1 %v6414_v12  ;;  %v6463_v11 = vcombine.low %v904_v15, %v908_v16  ;;  %v6470_v12 = vcombine.high %v911_v51, %v915_v24  ;;  %v964_v15 = vld [vmem:[#allocation10 + $0x538] sm:$0xff]  ;;  %v6511_v16 = vcombine.low %v952_v2, %v956_v3 }
 0x2c9   :  { %2635 = vmatprep.subr.bf16.mxu0 %v6416_v13  ;;  %v6472_v13 = vcombine.high %v912_v25, %v916_v26 }
 0x2cb   :  { %2554 = vmatpush1.bf16.msra.mxu1 %v6413_v30  ;;  %v6469_v30 = vcombine.low %v911_v51, %v915_v24  ;;  %v968_v51 = vld [vmem:[#allocation10 + $0x558] sm:$0xff] }
 0x2cc   :  { %2636 = vmatpush1.bf16.msra.mxu0 %v6415_v32  ;;  %2555 = vmatprep.subr.bf16.mxu1 %v6422_v33  ;;  %v6471_v32 = vcombine.low %v912_v25, %v916_v26  ;;  %v6478_v33 = vcombine.high %v919_v17, %v923_v18  ;;  %v972_v24 = vld [vmem:[#allocation10 + $0x578] sm:$0xff]  ;;  %v6519_v26 = vcombine.low %v960_v14, %v964_v15 }
 0x2cd   :  { %2637 = vmatprep.subr.bf16.mxu0 %v6424_v34  ;;  %v6480_v34 = vcombine.high %v920_v19, %v924_v28 }
 0x2cf   :  { %2556 = vmatpush1.bf16.msra.mxu1 %v6421_v40  ;;  %v6477_v40 = vcombine.low %v919_v17, %v923_v18  ;;  %v976_v17 = vld [vmem:[#allocation10 + $0x598] sm:$0xff] }
 0x2d0   :  { %2638 = vmatpush1.bf16.msra.mxu0 %v6423_v43  ;;  %2557 = vmatprep.subr.bf16.mxu1 %v6430_v44  ;;  %v6479_v43 = vcombine.low %v920_v19, %v924_v28  ;;  %v6486_v44 = vcombine.high %v927_v36, %v931_v37  ;;  %v980_v18 = vld [vmem:[#allocation10 + $0x5b8] sm:$0xff]  ;;  %v6527_v28 = vcombine.low %v968_v51, %v972_v24 }
 0x2d1   :  { %2639 = vmatprep.subr.bf16.mxu0 %v6432_v45  ;;  %v6488_v45 = vcombine.high %v928_v38, %v932_v39  ;;  %v984_v36 = vld [vmem:[#allocation10 + $0x5d8] sm:$0xff] }
 0x2d2   :  { %v988_v37 = vld [vmem:[#allocation10 + $0x5f8] sm:$0xff] }
 0x2d3   :  { %2558 = vmatpush1.bf16.msra.mxu1 %v6429_v52  ;;  %v940_v52 = vld [vmem:[#allocation10 + $0x478] sm:$0xff] }
 0x2d4   :  { %2640 = vmatpush1.bf16.msra.mxu0 %v6431_v53  ;;  %2559 = vmatprep.subr.bf16.mxu1 %v6438_v54  ;;  %v6487_v53 = vcombine.low %v928_v38, %v932_v39  ;;  %v6494_v54 = vcombine.high %v935_v46, %v939_v47  ;;  %v6496_v58 = vcombine.high %v936_v49, %v940_v52 }
 0x2d5   :  { %2641 = vmatprep.subr.bf16.mxu0 %v6440_v56  ;;  %v943_v56 = vld [vmem:[#allocation10 + $0x490] sm:$0xff]  ;;  %v6535_v39 = vcombine.low %v976_v17, %v980_v18 }
 0x2d7   :  { %2560 = vmatpush1.bf16.msra.mxu1 %v6437_v60  ;;  %v6493_v60 = vcombine.low %v935_v46, %v939_v47  ;;  %v992_v46 = vld [vmem:[#allocation10 + $0x618] sm:$0xff] }
 0x2d8   :  { %2642 = vmatpush1.bf16.msra.mxu0 %v6439_v61  ;;  %2561 = vmatprep.subr.bf16.mxu1 %v6446_v62  ;;  %v6495_v61 = vcombine.low %v936_v49, %v940_v52  ;;  %v6502_v62 = vcombine.high %v943_v56, %v947_v57  ;;  %v996_v47 = vld [vmem:[#allocation10 + $0x638] sm:$0xff]  ;;  %v6543_v49 = vcombine.low %v984_v36, %v988_v37 }
 0x2d9   :  { %2643 = vmatprep.subr.bf16.mxu0 %v6448_v63  ;;  %v6504_v63 = vcombine.high %v944_v4, %v948_v59 }
 0x2db   :  { %2562 = vmatpush1.bf16.msra.mxu1 %v6445_v6  ;;  %v6501_v6 = vcombine.low %v943_v56, %v947_v57  ;;  %v1003_v56 = vld [vmem:[#allocation10 + $0x670] sm:$0xff]  ;;  %v1000_v57 = vld [vmem:[#allocation10 + $0x658] sm:$0xff] }
 0x2dc   :  { %2644 = vmatpush1.bf16.msra.mxu0 %v6447_v7  ;;  %2563 = vmatprep.subr.bf16.mxu1 %v6454_v8  ;;  %v6510_v7 = vcombine.high %v951_v0, %v955_v1  ;;  %v6512_v8 = vcombine.high %v952_v2, %v956_v3 }
 0x2dd   :  { %2645 = vmatprep.subr.bf16.mxu0 %v6456_v9  ;;  %v959_v9 = vld [vmem:[#allocation10 + $0x510] sm:$0xff] }
 0x2de   :  { %v6517_v25 = vcombine.low %v959_v9, %v963_v10 }
 0x2df   :  { %2564 = vmatpush1.bf16.msra.mxu1 %v6453_v20  ;;  %v6518_v20 = vcombine.high %v959_v9, %v963_v10  ;;  %v1016_v9 = vld [vmem:[#allocation10 + $0x6d8] sm:$0xff] }
 0x2e0   :  { %2646 = vmatpush1.bf16.msra.mxu0 %v6455_v21  ;;  %2565 = vmatprep.subr.bf16.mxu1 %v6462_v22  ;;  %v6520_v21 = vcombine.high %v960_v14, %v964_v15  ;;  %v967_v22 = vld [vmem:[#allocation10 + $0x550] sm:$0xff]  ;;  %v1020_v10 = vld [vmem:[#allocation10 + $0x6f8] sm:$0xff] }
 0x2e1   :  { %2647 = vmatprep.subr.bf16.mxu0 %v6464_v23  ;;  %v971_v23 = vld [vmem:[#allocation10 + $0x570] sm:$0xff] }
 0x2e2   :  { %v6525_v19 = vcombine.low %v967_v22, %v971_v23 }
 0x2e3   :  { %2566 = vmatpush1.bf16.msra.mxu1 %v6461_v27  ;;  %v6526_v27 = vcombine.high %v967_v22, %v971_v23  ;;  %v1024_v22 = vld [vmem:[#allocation10 + $0x718] sm:$0xff] }
 0x2e4   :  { %2648 = vmatpush1.bf16.msra.mxu0 %v6463_v11  ;;  %2567 = vmatprep.subr.bf16.mxu1 %v6470_v12  ;;  %v6528_v11 = vcombine.high %v968_v51, %v972_v24  ;;  %v975_v12 = vld [vmem:[#allocation10 + $0x590] sm:$0xff]  ;;  %v1028_v23 = vld [vmem:[#allocation10 + $0x738] sm:$0xff]  ;;  %v6575_v24 = vcombine.low %v1016_v9, %v1020_v10 }
 0x2e5   :  { %2649 = vmatprep.subr.bf16.mxu0 %v6472_v13  ;;  %v979_v13 = vld [vmem:[#allocation10 + $0x5b0] sm:$0xff] }
 0x2e6   :  { %v6533_v38 = vcombine.low %v975_v12, %v979_v13 }
 0x2e7   :  { %2568 = vmatpush1.bf16.msra.mxu1 %v6469_v30  ;;  %v6534_v30 = vcombine.high %v975_v12, %v979_v13  ;;  %v1032_v12 = vld [vmem:[#allocation10 + $0x758] sm:$0xff] }
 0x2e8   :  { %2650 = vmatpush1.bf16.msra.mxu0 %v6471_v32  ;;  %2569 = vmatprep.subr.bf16.mxu1 %v6478_v33  ;;  %v6536_v32 = vcombine.high %v976_v17, %v980_v18  ;;  %v983_v33 = vld [vmem:[#allocation10 + $0x5d0] sm:$0xff]  ;;  %v1036_v13 = vld [vmem:[#allocation10 + $0x778] sm:$0xff]  ;;  %v6583_v18 = vcombine.low %v1024_v22, %v1028_v23 }
 0x2e9   :  { %2651 = vmatprep.subr.bf16.mxu0 %v6480_v34  ;;  %v987_v34 = vld [vmem:[#allocation10 + $0x5f0] sm:$0xff] }
 0x2eb   :  { %2570 = vmatpush1.bf16.msra.mxu1 %v6477_v40  ;;  %v6542_v40 = vcombine.high %v983_v33, %v987_v34 }
 0x2ec   :  { %2652 = vmatpush1.bf16.msra.mxu0 %v6479_v43  ;;  %2580 = vmatprep.subr.bf16.mxu1 %v6486_v44  ;;  %v6544_v43 = vcombine.high %v984_v36, %v988_v37  ;;  %v991_v44 = vld [vmem:[#allocation10 + $0x610] sm:$0xff]  ;;  %v6591_v37 = vcombine.low %v1032_v12, %v1036_v13 }
 0x2ed   :  { %2662 = vmatprep.subr.bf16.mxu0 %v6488_v45  ;;  %v995_v45 = vld [vmem:[#allocation10 + $0x630] sm:$0xff] }
 0x2ee   :  { %2572 = vmatmul.mubr.bf16.vlgmr.msra.gmra.mrb[4].mxu1 %v8425_v5  ;;  %v6550_v52 = vcombine.high %v991_v44, %v995_v45 }
 0x2ef   :  { %2654 = vmatmul.mubr.bf16.vlgmr.msra.gmra.mrb[16].mxu0 %v8425_v5  ;;  %2581 = vmatpush1.bf16.msra.mxu1 %v6485_v48  ;;  %v6503_v5 = vcombine.low %v944_v4, %v948_v59  ;;  %v6541_v48 = vcombine.low %v983_v33, %v987_v34  ;;  %v6549_v4 = vcombine.low %v991_v44, %v995_v45  ;;  %v1040_v33 = vld [vmem:[#allocation10 + $0x798] sm:$0xff] }
 0x2f0   :  { %2612 = vmatprep.mubr.bf16.mxu1 %v8447_v29  ;;  %2663 = vmatpush1.bf16.msra.mxu0 %v6487_v53  ;;  %v6552_v53 = vcombine.high %v992_v46, %v996_v47  ;;  %v6551_v59 = vcombine.low %v992_v46, %v996_v47  ;;  %v1044_v34 = vld [vmem:[#allocation10 + $0x7b8] sm:$0xff] }
 0x2f1   :  { %2694 = vmatprep.mubr.bf16.mxu0 %v8447_v29  ;;  %2582 = vmatprep.subr.bf16.mxu1 %v6494_v54  ;;  %v6509_v29 = vcombine.low %v951_v0, %v955_v1  ;;  %v999_v54 = vld [vmem:[#allocation10 + $0x650] sm:$0xff]  ;;  %v1008_v0 = vld [vmem:[#allocation10 + $0x698] sm:$0xff]  ;;  %v6599_v47 = vcombine.low %v1040_v33, %v1044_v34 }
 0x2f2   :  { %2664 = vmatprep.subr.bf16.mxu0 %v6496_v58  ;;  %v1004_v58 = vld [vmem:[#allocation10 + $0x678] sm:$0xff]  ;;  %v6557_v2 = vcombine.low %v999_v54, %v1003_v56 }
 0x2f3   :  { %2583 = vmatpush1.bf16.msra.mxu1 %v6493_v60  ;;  %v6558_v60 = vcombine.high %v999_v54, %v1003_v56  ;;  %v1012_v1 = vld [vmem:[#allocation10 + $0x6b8] sm:$0xff]  ;;  %v6559_v3 = vcombine.low %v1000_v57, %v1004_v58  ;;  %v7351_v54 = vld [vmem:[#allocation13 + $0x4] ss:$28 sps:$4 sm:$0xff]   ;;  %v7354_v56 = vld [vmem:[#allocation13 + $0xc] ss:$28 sps:$4 sm:$0xff]  }
 0x2f4   :  { %2665 = vmatpush1.bf16.msra.mxu0 %v6495_v61  ;;  %2584 = vmatprep.subr.bf16.mxu1 %v6502_v62  ;;  %v6560_v61 = vcombine.high %v1000_v57, %v1004_v58  ;;  %v1007_v62 = vld [vmem:[#allocation10 + $0x690] sm:$0xff]  ;;  %v6567_v15 = vcombine.low %v1008_v0, %v1012_v1  ;;  %v1048_v44 = vld [vmem:[#allocation10 + $0x7d8] sm:$0xff]  ;;  %v7349_v57 = vld [vmem:[#allocation13] ss:$28 sps:$4 sm:$0xff]  }
 0x2f5   :  { %2666 = vmatprep.subr.bf16.mxu0 %v6504_v63  ;;  %v1011_v63 = vld [vmem:[#allocation10 + $0x6b0] sm:$0xff]  ;;  %v1052_v45 = vld [vmem:[#allocation10 + $0x7f8] sm:$0xff] }
 0x2f6   :  { %v6565_v14 = vcombine.low %v1007_v62, %v1011_v63  ;;  %v7352_v58 = vld [vmem:[#allocation13 + $0x8] ss:$28 sps:$4 sm:$0xff]  }
 0x2f7   :  { %2585 = vmatpush1.bf16.msra.mxu1 %v6501_v6  ;;  %v6566_v6 = vcombine.high %v1007_v62, %v1011_v63  ;;  %v7363_v62 = vld [vmem:[#allocation13 + $0x74] ss:$28 sps:$4 sm:$0xff]   ;;  %v7366_v63 = vld [vmem:[#allocation13 + $0x7c] ss:$28 sps:$4 sm:$0xff]  }
 0x2f8   :  { %2667 = vmatpush1.bf16.msra.mxu0 %v6503_v5  ;;  %2586 = vmatprep.subr.bf16.mxu1 %v6510_v7  ;;  %v6568_v5 = vcombine.high %v1008_v0, %v1012_v1  ;;  %v1015_v7 = vld [vmem:[#allocation10 + $0x6d0] sm:$0xff]  ;;  %v7364_v1 = vld [vmem:[#allocation13 + $0x78] ss:$28 sps:$4 sm:$0xff]  }
 0x2f9   :  { %2668 = vmatprep.subr.bf16.mxu0 %v6512_v8  ;;  %v1019_v8 = vld [vmem:[#allocation10 + $0x6f0] sm:$0xff] }
 0x2fa   :  { %v6573_v51 = vcombine.low %v1015_v7, %v1019_v8  ;;  %v7361_v0 = vld [vmem:[#allocation13 + $0x70] ss:$28 sps:$4 sm:$0xff]  }
 0x2fb   :  { %2587 = vmatpush1.bf16.msra.mxu1 %v6509_v29  ;;  %v6574_v29 = vcombine.high %v1015_v7, %v1019_v8  ;;  %v7378_v7 = vld [vmem:[#allocation13 + $0xec] ss:$28 sps:$4 sm:$0xff]   ;;  %v7373_v8 = vld [vmem:[#allocation13 + $0xe0] ss:$28 sps:$4 sm:$0xff]  }
 0x2fc   :  { %2669 = vmatpush1.bf16.msra.mxu0 %v6511_v16  ;;  %2588 = vmatprep.subr.bf16.mxu1 %v6518_v20  ;;  %v6576_v16 = vcombine.high %v1016_v9, %v1020_v10  ;;  %v1023_v20 = vld [vmem:[#allocation10 + $0x710] sm:$0xff]  ;;  %v7381_v10 = vld [vmem:[#allocation13 + $0x11c] ss:$28 sps:$4 sm:$0xff]  }
 0x2fd   :  { %2670 = vmatprep.subr.bf16.mxu0 %v6520_v21  ;;  %v1027_v21 = vld [vmem:[#allocation10 + $0x730] sm:$0xff] }
 0x2fe   :  { %v6581_v17 = vcombine.low %v1023_v20, %v1027_v21  ;;  %v7376_v9 = vld [vmem:[#allocation13 + $0xe8] ss:$28 sps:$4 sm:$0xff]  }
 0x2ff   :  { %2589 = vmatpush1.bf16.msra.mxu1 %v6517_v25  ;;  %v6582_v25 = vcombine.high %v1023_v20, %v1027_v21  ;;  %v7390_v20 = vld [vmem:[#allocation13 + $0x15c] ss:$28 sps:$4 sm:$0xff]   ;;  %v7385_v21 = vld [vmem:[#allocation13 + $0x150] ss:$28 sps:$4 sm:$0xff]  }
 0x300   :  { %2671 = vmatpush1.bf16.msra.mxu0 %v6519_v26  ;;  %2590 = vmatprep.subr.bf16.mxu1 %v6526_v27  ;;  %v6584_v26 = vcombine.high %v1024_v22, %v1028_v23  ;;  %v1031_v27 = vld [vmem:[#allocation10 + $0x750] sm:$0xff]  ;;  %v7388_v22 = vld [vmem:[#allocation13 + $0x158] ss:$28 sps:$4 sm:$0xff]  }
 0x301   :  { %2672 = vmatprep.subr.bf16.mxu0 %v6528_v11  ;;  %v1035_v11 = vld [vmem:[#allocation10 + $0x770] sm:$0xff] }
 0x302   :  { %v6589_v36 = vcombine.low %v1031_v27, %v1035_v11  ;;  %v7393_v23 = vld [vmem:[#allocation13 + $0x18c] ss:$28 sps:$4 sm:$0xff]  }
 0x303   :  { %2591 = vmatpush1.bf16.msra.mxu1 %v6525_v19  ;;  %v6590_v19 = vcombine.high %v1031_v27, %v1035_v11  ;;  %v7402_v27 = vld [vmem:[#allocation13 + $0x1cc] ss:$28 sps:$4 sm:$0xff]   ;;  %v7397_v11 = vld [vmem:[#allocation13 + $0x1c0] ss:$28 sps:$4 sm:$0xff]  }
 0x304   :  { %2673 = vmatpush1.bf16.msra.mxu0 %v6527_v28  ;;  %2592 = vmatprep.subr.bf16.mxu1 %v6534_v30  ;;  %v6592_v28 = vcombine.high %v1032_v12, %v1036_v13  ;;  %v1039_v30 = vld [vmem:[#allocation10 + $0x790] sm:$0xff]  ;;  %v7405_v13 = vld [vmem:[#allocation13 + $0x1fc] ss:$28 sps:$4 sm:$0xff]  }
 0x305   :  { %2674 = vmatprep.subr.bf16.mxu0 %v6536_v32  ;;  %v1043_v32 = vld [vmem:[#allocation10 + $0x7b0] sm:$0xff] }
 0x306   :  { %v6597_v46 = vcombine.low %v1039_v30, %v1043_v32  ;;  %v7400_v12 = vld [vmem:[#allocation13 + $0x1c8] ss:$28 sps:$4 sm:$0xff]  }
 0x307   :  { %2593 = vmatpush1.bf16.msra.mxu1 %v6533_v38  ;;  %v6598_v38 = vcombine.high %v1039_v30, %v1043_v32  ;;  %v7414_v30 = vld [vmem:[#allocation13 + $0x23c] ss:$28 sps:$4 sm:$0xff]   ;;  %v7409_v32 = vld [vmem:[#allocation13 + $0x230] ss:$28 sps:$4 sm:$0xff]  }
 0x308   :  { %2675 = vmatpush1.bf16.msra.mxu0 %v6535_v39  ;;  %2594 = vmatprep.subr.bf16.mxu1 %v6542_v40  ;;  %v6600_v39 = vcombine.high %v1040_v33, %v1044_v34  ;;  %v1047_v40 = vld [vmem:[#allocation10 + $0x7d0] sm:$0xff]  ;;  %v7412_v33 = vld [vmem:[#allocation13 + $0x238] ss:$28 sps:$4 sm:$0xff]  }
 0x309   :  { %2676 = vmatprep.subr.bf16.mxu0 %v6544_v43  ;;  %v1051_v43 = vld [vmem:[#allocation10 + $0x7f0] sm:$0xff] }
 0x30a   :  { %v7417_v34 = vld [vmem:[#allocation13 + $0x26c] ss:$28 sps:$4 sm:$0xff]  }
 0x30b   :  { %2595 = vmatpush1.bf16.msra.mxu1 %v6541_v48  ;;  %v6606_v48 = vcombine.high %v1047_v40, %v1051_v43 }
 0x30c   :  { %2677 = vmatpush1.bf16.msra.mxu0 %v6543_v49  ;;  %2596 = vmatprep.subr.bf16.mxu1 %v6550_v52  ;;  %v6608_v49 = vcombine.high %v1048_v44, %v1052_v45  ;;  %v6605_v52 = vcombine.low %v1047_v40, %v1051_v43  ;;  %v7426_v40 = vld [vmem:[#allocation13 + $0x2ac] ss:$28 sps:$4 sm:$0xff]   ;;  %v7421_v43 = vld [vmem:[#allocation13 + $0x2a0] ss:$28 sps:$4 sm:$0xff]  }
 0x30d   :  { %2678 = vmatprep.subr.bf16.mxu0 %v6552_v53  ;;  %v6607_v53 = vcombine.low %v1048_v44, %v1052_v45  ;;  %v7424_v44 = vld [vmem:[#allocation13 + $0x2a8] ss:$28 sps:$4 sm:$0xff]   ;;  %v7429_v45 = vld [vmem:[#allocation13 + $0x2dc] ss:$28 sps:$4 sm:$0xff]  }
 0x30f   :  { %2597 = vmatpush1.bf16.msra.mxu1 %v6549_v4  ;;  %v7357_v4 = vld [vmem:[#allocation13 + $0x3c] ss:$28 sps:$4 sm:$0xff]  }
 0x310   :  { %2679 = vmatpush1.bf16.msra.mxu0 %v6551_v59  ;;  %2598 = vmatprep.subr.bf16.mxu1 %v6558_v60  ;;  %v7360_v59 = vld [vmem:[#allocation13 + $0x44] ss:$28 sps:$4 sm:$0xff]   ;;  %v7355_v60 = vld [vmem:[#allocation13 + $0x38] ss:$28 sps:$4 sm:$0xff]  }
 0x311   :  { %2680 = vmatprep.subr.bf16.mxu0 %v6560_v61  ;;  %v7358_v61 = vld [vmem:[#allocation13 + $0x40] ss:$28 sps:$4 sm:$0xff]  }
 0x313   :  { %2599 = vmatpush1.bf16.msra.mxu1 %v6557_v2  ;;  %v7369_v2 = vld [vmem:[#allocation13 + $0xac] ss:$28 sps:$4 sm:$0xff]  }
 0x314   :  { %2681 = vmatpush1.bf16.msra.mxu0 %v6559_v3  ;;  %2600 = vmatprep.subr.bf16.mxu1 %v6566_v6  ;;  %v7372_v3 = vld [vmem:[#allocation13 + $0xb4] ss:$28 sps:$4 sm:$0xff]   ;;  %v7367_v6 = vld [vmem:[#allocation13 + $0xa8] ss:$28 sps:$4 sm:$0xff]  }
 0x315   :  { %2682 = vmatprep.subr.bf16.mxu0 %v6568_v5  ;;  %v7375_v5 = vld [vmem:[#allocation13 + $0xe4] ss:$28 sps:$4 sm:$0xff]  }
 0x317   :  { %2601 = vmatpush1.bf16.msra.mxu1 %v6565_v14  ;;  %v7384_v14 = vld [vmem:[#allocation13 + $0x124] ss:$28 sps:$4 sm:$0xff]  }
 0x318   :  { %2683 = vmatpush1.bf16.msra.mxu0 %v6567_v15  ;;  %2602 = vmatprep.subr.bf16.mxu1 %v6574_v29  ;;  %v7379_v15 = vld [vmem:[#allocation13 + $0x118] ss:$28 sps:$4 sm:$0xff]   ;;  %v7382_v29 = vld [vmem:[#allocation13 + $0x120] ss:$28 sps:$4 sm:$0xff]  }
 0x319   :  { %2684 = vmatprep.subr.bf16.mxu0 %v6576_v16  ;;  %v7387_v16 = vld [vmem:[#allocation13 + $0x154] ss:$28 sps:$4 sm:$0xff]  }
 0x31b   :  { %2603 = vmatpush1.bf16.msra.mxu1 %v6573_v51  ;;  %v7396_v51 = vld [vmem:[#allocation13 + $0x194] ss:$28 sps:$4 sm:$0xff]  }
 0x31c   :  { %2685 = vmatpush1.bf16.msra.mxu0 %v6575_v24  ;;  %2604 = vmatprep.subr.bf16.mxu1 %v6582_v25  ;;  %v7391_v24 = vld [vmem:[#allocation13 + $0x188] ss:$28 sps:$4 sm:$0xff]   ;;  %v7394_v25 = vld [vmem:[#allocation13 + $0x190] ss:$28 sps:$4 sm:$0xff]  }
 0x31d   :  { %2686 = vmatprep.subr.bf16.mxu0 %v6584_v26  ;;  %v7399_v26 = vld [vmem:[#allocation13 + $0x1c4] ss:$28 sps:$4 sm:$0xff]  }
 0x31f   :  { %2605 = vmatpush1.bf16.msra.mxu1 %v6581_v17  ;;  %v7408_v17 = vld [vmem:[#allocation13 + $0x204] ss:$28 sps:$4 sm:$0xff]  }
 0x320   :  { %2687 = vmatpush1.bf16.msra.mxu0 %v6583_v18  ;;  %2606 = vmatprep.subr.bf16.mxu1 %v6590_v19  ;;  %v7403_v18 = vld [vmem:[#allocation13 + $0x1f8] ss:$28 sps:$4 sm:$0xff]   ;;  %v7406_v19 = vld [vmem:[#allocation13 + $0x200] ss:$28 sps:$4 sm:$0xff]  }
 0x321   :  { %2688 = vmatprep.subr.bf16.mxu0 %v6592_v28  ;;  %v7411_v28 = vld [vmem:[#allocation13 + $0x234] ss:$28 sps:$4 sm:$0xff]  }
 0x323   :  { %2607 = vmatpush1.bf16.msra.mxu1 %v6589_v36  ;;  %v7420_v36 = vld [vmem:[#allocation13 + $0x274] ss:$28 sps:$4 sm:$0xff]  }
 0x324   :  { %2689 = vmatpush1.bf16.msra.mxu0 %v6591_v37  ;;  %2608 = vmatprep.subr.bf16.mxu1 %v6598_v38  ;;  %v7415_v37 = vld [vmem:[#allocation13 + $0x268] ss:$28 sps:$4 sm:$0xff]   ;;  %v7418_v38 = vld [vmem:[#allocation13 + $0x270] ss:$28 sps:$4 sm:$0xff]  }
 0x325   :  { %2690 = vmatprep.subr.bf16.mxu0 %v6600_v39  ;;  %v7423_v39 = vld [vmem:[#allocation13 + $0x2a4] ss:$28 sps:$4 sm:$0xff]  }
 0x327   :  { %2609 = vmatpush1.bf16.msra.mxu1 %v6597_v46  ;;  %v7432_v46 = vld [vmem:[#allocation13 + $0x2e4] ss:$28 sps:$4 sm:$0xff]  }
 0x328   :  { %2691 = vmatpush1.bf16.msra.mxu0 %v6599_v47  ;;  %2610 = vmatprep.subr.bf16.mxu1 %v6606_v48  ;;  %v7427_v47 = vld [vmem:[#allocation13 + $0x2d8] ss:$28 sps:$4 sm:$0xff]   ;;  %v7430_v48 = vld [vmem:[#allocation13 + $0x2e0] ss:$28 sps:$4 sm:$0xff]  }
 0x329   :  { %2692 = vmatprep.subr.bf16.mxu0 %v6608_v49  ;;  %v7435_v49 = vld [vmem:[#allocation13 + $0x314] ss:$28 sps:$4 sm:$0xff]  }
 0x32b   :  { %2611 = vmatpush1.bf16.msra.mxu1 %v6605_v52  ;;  %v7438_v52 = vld [vmem:[#allocation13 + $0x31c] ss:$28 sps:$4 sm:$0xff]  }
 0x32c   :  { %2693 = vmatpush1.bf16.msra.mxu0 %v6607_v53  ;;  %5588 = vmatprep.subr.bf16.mxu1 %v7351_v54  ;;  %v7433_v53 = vld [vmem:[#allocation13 + $0x310] ss:$28 sps:$4 sm:$0xff]   ;;  %v7436_v54 = vld [vmem:[#allocation13 + $0x318] ss:$28 sps:$4 sm:$0xff]  }
 0x32d   :  { %5752 = vmatprep.subr.bf16.mxu0 %v7354_v56  ;;  %v7441_v56 = vld [vmem:[#allocation13 + $0x34c] ss:$28 sps:$4 sm:$0xff]  }
 0x32e   :  { %2613 = vmatmul.mubr.bf16.vlgmr.msra.gmra.mrb[4].mxu1 %v8449_v31 }
 0x32f   :  { %2695 = vmatmul.mubr.bf16.vlgmr.msra.gmra.mrb[16].mxu0 %v8449_v31  ;;  %5589 = vmatpush1.bf16.msra.mxu1 %v7349_v57  ;;  %v7370_v31 = vld [vmem:[#allocation13 + $0xb0] ss:$28 sps:$4 sm:$0xff]  }
 0x330   :  { %5753 = vmatpush1.bf16.msra.mxu0 %v7352_v58  ;;  %5590 = vmatprep.subr.bf16.mxu1 %v7357_v4  ;;  %v7444_v57 = vld [vmem:[#allocation13 + $0x354] ss:$28 sps:$4 sm:$0xff]   ;;  %v7439_v58 = vld [vmem:[#allocation13 + $0x348] ss:$28 sps:$4 sm:$0xff]  }
 0x331   :  { %5754 = vmatprep.subr.bf16.mxu0 %v7360_v59  ;;  %v7442_v4 = vld [vmem:[#allocation13 + $0x350] ss:$28 sps:$4 sm:$0xff]   ;;  %v7447_v59 = vld [vmem:[#allocation13 + $0x384] ss:$28 sps:$4 sm:$0xff]  }
 0x333   :  { %5591 = vmatpush1.bf16.msra.mxu1 %v7355_v60  ;;  %v7450_v60 = vld [vmem:[#allocation13 + $0x38c] ss:$28 sps:$4 sm:$0xff]  }
 0x334   :  { %5755 = vmatpush1.bf16.msra.mxu0 %v7358_v61  ;;  %5592 = vmatprep.subr.bf16.mxu1 %v7363_v62  ;;  %v8463_v61 = vld [vmem:[#allocation11] sm:$0xff] }
 0x335   :  { %5756 = vmatprep.subr.bf16.mxu0 %v7366_v63  ;;  %v1058_v62 = vrot.slane %v8463_v61, %v8390_v41  ;;  %v1062_v63 = vrot.slane %v8463_v61, %v8393_v42 }
 0x337   :  { %5593 = vmatpush1.bf16.msra.mxu1 %v7361_v0  ;;  %v1070_v0 = vrot.slane %v8463_v61, %v8441_v55 }
 0x338   :  { %5757 = vmatpush1.bf16.msra.mxu0 %v7364_v1  ;;  %5594 = vmatprep.subr.bf16.mxu1 %v7369_v2 }
 0x339   :  { %5758 = vmatprep.subr.bf16.mxu0 %v7372_v3 }
 0x33b   :  { %5595 = vmatpush1.bf16.msra.mxu1 %v7367_v6 }
 0x33c   :  { %5759 = vmatpush1.bf16.msra.mxu0 %v7370_v31  ;;  %5596 = vmatprep.subr.bf16.mxu1 %v7375_v5 }
 0x33d   :  { %5760 = vmatprep.subr.bf16.mxu0 %v7378_v7 }
 0x33f   :  { %5597 = vmatpush1.bf16.msra.mxu1 %v7373_v8 }
 0x340   :  { %5761 = vmatpush1.bf16.msra.mxu0 %v7376_v9  ;;  %5598 = vmatprep.subr.bf16.mxu1 %v7381_v10 }
 0x341   :  { %5762 = vmatprep.subr.bf16.mxu0 %v7384_v14 }
 0x343   :  { %5599 = vmatpush1.bf16.msra.mxu1 %v7379_v15 }
 0x344   :  { %5763 = vmatpush1.bf16.msra.mxu0 %v7382_v29  ;;  %5600 = vmatprep.subr.bf16.mxu1 %v7387_v16 }
 0x345   :  { %5764 = vmatprep.subr.bf16.mxu0 %v7390_v20 }
 0x347   :  { %5601 = vmatpush1.bf16.msra.mxu1 %v7385_v21 }
 0x348   :  { %5765 = vmatpush1.bf16.msra.mxu0 %v7388_v22  ;;  %5602 = vmatprep.subr.bf16.mxu1 %v7393_v23 }
 0x349   :  { %5766 = vmatprep.subr.bf16.mxu0 %v7396_v51  ;;  %v7445_v51 = vld [vmem:[#allocation13 + $0x380] ss:$28 sps:$4 sm:$0xff]  }
 0x34b   :  { %5603 = vmatpush1.bf16.msra.mxu1 %v7391_v24  ;;  %v7448_v24 = vld [vmem:[#allocation13 + $0x388] ss:$28 sps:$4 sm:$0xff]  }
 0x34c   :  { %5767 = vmatpush1.bf16.msra.mxu0 %v7394_v25  ;;  %5604 = vmatprep.subr.bf16.mxu1 %v7399_v26  ;;  %v7453_v26 = vld [vmem:[#allocation13 + $0x3bc] ss:$28 sps:$4 sm:$0xff]  }
 0x34d   :  { %5768 = vmatprep.subr.bf16.mxu0 %v7402_v27  ;;  %v7456_v27 = vld [vmem:[#allocation13 + $0x3c4] ss:$28 sps:$4 sm:$0xff]  }
 0x34f   :  { %5605 = vmatpush1.bf16.msra.mxu1 %v7397_v11 }
 0x350   :  { %5769 = vmatpush1.bf16.msra.mxu0 %v7400_v12  ;;  %5606 = vmatprep.subr.bf16.mxu1 %v7405_v13  ;;  %v7451_v12 = vld [vmem:[#allocation13 + $0x3b8] ss:$28 sps:$4 sm:$0xff]   ;;  %v7454_v13 = vld [vmem:[#allocation13 + $0x3c0] ss:$28 sps:$4 sm:$0xff]  }
 0x351   :  { %5770 = vmatprep.subr.bf16.mxu0 %v7408_v17  ;;  %v7459_v17 = vld [vmem:[#allocation13 + $0x3f4] ss:$28 sps:$4 sm:$0xff]  }
 0x353   :  { %5607 = vmatpush1.bf16.msra.mxu1 %v7403_v18  ;;  %v7462_v18 = vld [vmem:[#allocation13 + $0x3fc] ss:$28 sps:$4 sm:$0xff]  }
 0x354   :  { %5771 = vmatpush1.bf16.msra.mxu0 %v7406_v19  ;;  %5608 = vmatprep.subr.bf16.mxu1 %v7411_v28  ;;  %v7457_v19 = vld [vmem:[#allocation13 + $0x3f0] ss:$28 sps:$4 sm:$0xff]   ;;  %v7460_v28 = vld [vmem:[#allocation13 + $0x3f8] ss:$28 sps:$4 sm:$0xff]  }
 0x355   :  { %5772 = vmatprep.subr.bf16.mxu0 %v7414_v30  ;;  %v7465_v30 = vld [vmem:[#allocation13 + $0x42c] ss:$28 sps:$4 sm:$0xff]  }
 0x357   :  { %5609 = vmatpush1.bf16.msra.mxu1 %v7409_v32  ;;  %v7468_v32 = vld [vmem:[#allocation13 + $0x434] ss:$28 sps:$4 sm:$0xff]  }
 0x358   :  { %5773 = vmatpush1.bf16.msra.mxu0 %v7412_v33  ;;  %5610 = vmatprep.subr.bf16.mxu1 %v7417_v34  ;;  %v7463_v33 = vld [vmem:[#allocation13 + $0x428] ss:$28 sps:$4 sm:$0xff]   ;;  %v7466_v34 = vld [vmem:[#allocation13 + $0x430] ss:$28 sps:$4 sm:$0xff]  }
 0x359   :  { %5774 = vmatprep.subr.bf16.mxu0 %v7420_v36  ;;  %v7471_v36 = vld [vmem:[#allocation13 + $0x464] ss:$28 sps:$4 sm:$0xff]  }
 0x35b   :  { %5611 = vmatpush1.bf16.msra.mxu1 %v7415_v37  ;;  %v7474_v37 = vld [vmem:[#allocation13 + $0x46c] ss:$28 sps:$4 sm:$0xff]  }
 0x35c   :  { %5775 = vmatpush1.bf16.msra.mxu0 %v7418_v38  ;;  %5612 = vmatprep.subr.bf16.mxu1 %v7423_v39  ;;  %v7469_v38 = vld [vmem:[#allocation13 + $0x460] ss:$28 sps:$4 sm:$0xff]   ;;  %v7472_v39 = vld [vmem:[#allocation13 + $0x468] ss:$28 sps:$4 sm:$0xff]  }
 0x35d   :  { %5776 = vmatprep.subr.bf16.mxu0 %v7426_v40  ;;  %v7477_v40 = vld [vmem:[#allocation13 + $0x49c] ss:$28 sps:$4 sm:$0xff]  }
 0x35f   :  { %5613 = vmatpush1.bf16.msra.mxu1 %v7421_v43  ;;  %v7480_v43 = vld [vmem:[#allocation13 + $0x4a4] ss:$28 sps:$4 sm:$0xff]  }
 0x360   :  { %5777 = vmatpush1.bf16.msra.mxu0 %v7424_v44  ;;  %5614 = vmatprep.subr.bf16.mxu1 %v7429_v45  ;;  %v7475_v44 = vld [vmem:[#allocation13 + $0x498] ss:$28 sps:$4 sm:$0xff]   ;;  %v7478_v45 = vld [vmem:[#allocation13 + $0x4a0] ss:$28 sps:$4 sm:$0xff]  }
 0x361   :  { %5778 = vmatprep.subr.bf16.mxu0 %v7432_v46  ;;  %v7483_v46 = vld [vmem:[#allocation13 + $0x4d4] ss:$28 sps:$4 sm:$0xff]  }
 0x363   :  { %5615 = vmatpush1.bf16.msra.mxu1 %v7427_v47  ;;  %v7486_v47 = vld [vmem:[#allocation13 + $0x4dc] ss:$28 sps:$4 sm:$0xff]  }
 0x364   :  { %5779 = vmatpush1.bf16.msra.mxu0 %v7430_v48  ;;  %5616 = vmatprep.subr.bf16.mxu1 %v7435_v49  ;;  %v7481_v48 = vld [vmem:[#allocation13 + $0x4d0] ss:$28 sps:$4 sm:$0xff]   ;;  %v7484_v49 = vld [vmem:[#allocation13 + $0x4d8] ss:$28 sps:$4 sm:$0xff]  }
 0x365   :  { %5780 = vmatprep.subr.bf16.mxu0 %v7438_v52  ;;  %v7489_v52 = vld [vmem:[#allocation13 + $0x50c] ss:$28 sps:$4 sm:$0xff]  }
 0x367   :  { %5617 = vmatpush1.bf16.msra.mxu1 %v7433_v53  ;;  %v7492_v53 = vld [vmem:[#allocation13 + $0x514] ss:$28 sps:$4 sm:$0xff]  }
 0x368   :  { %5781 = vmatpush1.bf16.msra.mxu0 %v7436_v54  ;;  %5618 = vmatprep.subr.bf16.mxu1 %v7441_v56  ;;  %v7487_v54 = vld [vmem:[#allocation13 + $0x508] ss:$28 sps:$4 sm:$0xff]   ;;  %v7490_v56 = vld [vmem:[#allocation13 + $0x510] ss:$28 sps:$4 sm:$0xff]  }
 0x369   :  { %5782 = vmatprep.subr.bf16.mxu0 %v7444_v57  ;;  %v7495_v57 = vld [vmem:[#allocation13 + $0x544] ss:$28 sps:$4 sm:$0xff]  }
 0x36b   :  { %5619 = vmatpush1.bf16.msra.mxu1 %v7439_v58  ;;  %v7498_v58 = vld [vmem:[#allocation13 + $0x54c] ss:$28 sps:$4 sm:$0xff]  }
 0x36c   :  { %5783 = vmatpush1.bf16.msra.mxu0 %v7442_v4  ;;  %5629 = vmatprep.subr.bf16.mxu1 %v7447_v59  ;;  %v7493_v4 = vld [vmem:[#allocation13 + $0x540] ss:$28 sps:$4 sm:$0xff]   ;;  %v7496_v59 = vld [vmem:[#allocation13 + $0x548] ss:$28 sps:$4 sm:$0xff]  }
 0x36d   :  { %5793 = vmatprep.subr.bf16.mxu0 %v7450_v60  ;;  %v7501_v60 = vld [vmem:[#allocation13 + $0x57c] ss:$28 sps:$4 sm:$0xff]  }
 0x381   :  { %v2450_v1 = vpop.f32.mrb[0].mxu1  ;;  %v8471_v2 = vpop.f32.mrb[12].mxu0 }
 0x382   :  { %v7145_v3 = vadd.f32 %v2450_v1, %v1058_v62  ;;  %v2452_v6 = vpop.f32.mrb[1].mxu1  ;;  %v2534_v31 = vpop.f32.mrb[13].mxu0  ;;  %v7504_v62 = vld [vmem:[#allocation13 + $0x584] ss:$28 sps:$4 sm:$0xff]   ;;  %v7507_v1 = vld [vmem:[#allocation13 + $0x5b4] ss:$28 sps:$4 sm:$0xff]  }
 0x383   :  { %v7146_v5 = vadd.f32 %v2452_v6, %v1062_v63  ;;  %v7148_v7 = vadd.f32 %v2534_v31, %v1070_v0  ;;  %v2454_v8 = vpop.f32.mrb[2].mxu1  ;;  %v2536_v9 = vpop.f32.mrb[14].mxu0  ;;  %v7499_v63 = vld [vmem:[#allocation13 + $0x578] ss:$28 sps:$4 sm:$0xff]   ;;  %v7502_v0 = vld [vmem:[#allocation13 + $0x580] ss:$28 sps:$4 sm:$0xff]  }
 0x384   :  { %vm2703_vm6 = vcmp.gt.f32.partialorder %v7145_v3, 0.0  ;;  %v2711_v10 = vmul.f32 0.2, %v7145_v3  ;;  %v2455_v16 = vpop.f32.mrb[3].mxu1  ;;  %v2537_v20 = vpop.f32.mrb[15].mxu0 }
 0x385   :  { %vm2704_vm7 = vcmp.gt.f32.partialorder %v7146_v5, 0.0  ;;  %v2712_v14 = vmul.f32 0.2, %v7146_v5  ;;  %vm2706_vm8 = vcmp.gt.f32.partialorder %v7148_v7, 0.0  ;;  %v2714_v15 = vmul.f32 0.2, %v7148_v7 }
 0x386   :  { %v2719_v29 = vsel %vm2703_vm6, %v7145_v3, %v2711_v10  ;;  %v7510_v3 = vld [vmem:[#allocation13 + $0x5bc] ss:$28 sps:$4 sm:$0xff]   ;;  %v7505_v6 = vld [vmem:[#allocation13 + $0x5b0] ss:$28 sps:$4 sm:$0xff]   ;;  %v7511_v8 = vld [vmem:[#allocation13 + $0x5e8] ss:$28 sps:$4 sm:$0xff]  }
 0x387   :  { %v2720_v21 = vsel %vm2704_vm7, %v7146_v5, %v2712_v14  ;;  %v2722_v23 = vsel %vm2706_vm8, %v7148_v7, %v2714_v15  ;;  %v8475_v25 = vpack.c.bf16 %v2719_v29, %v2719_v29  ;;  %v7508_v31 = vld [vmem:[#allocation13 + $0x5b8] ss:$28 sps:$4 sm:$0xff]   ;;  %v7513_v5 = vld [vmem:[#allocation13 + $0x5ec] ss:$28 sps:$4 sm:$0xff]   ;;  %v7519_v10 = vld [vmem:[#allocation13 + $0x624] ss:$28 sps:$4 sm:$0xff]  }
 0x388   :  { %v8473_v22 = vpack.c.bf16 %v2720_v21, %v2720_v21  ;;  %v8479_v11 = vpack.c.bf16 %v2722_v23, %v2722_v23  ;;  %v7516_v7 = vld [vmem:[#allocation13 + $0x5f4] ss:$28 sps:$4 sm:$0xff]   ;;  %v7522_v14 = vld [vmem:[#allocation13 + $0x62c] ss:$28 sps:$4 sm:$0xff]   ;;  %v7517_v15 = vld [vmem:[#allocation13 + $0x620] ss:$28 sps:$4 sm:$0xff]   ;;  %v1066_v21 = vrot.slane %v8463_v61, %v8438_v50 }
 0x389   :  { %v7514_v9 = vld [vmem:[#allocation13 + $0x5f0] ss:$28 sps:$4 sm:$0xff]   ;;  %v7520_v29 = vld [vmem:[#allocation13 + $0x628] ss:$28 sps:$4 sm:$0xff]   ;;  %v7525_v16 = vld [vmem:[#allocation13 + $0x65c] ss:$28 sps:$4 sm:$0xff]  }
 0x38a   :  { %5620 = vmatprep.mubr.bf16.mxu1 %v8473_v22  ;;  %5784 = vmatprep.mubr.bf16.mxu0 %v8473_v22  ;;  %v7528_v20 = vld [vmem:[#allocation13 + $0x664] ss:$28 sps:$4 sm:$0xff]   ;;  %v7523_v23 = vld [vmem:[#allocation13 + $0x658] ss:$28 sps:$4 sm:$0xff]  }
 0x38b   :  { %5621 = vmatmul.mubr.bf16.vlgmr.msra.gmra.mrb[8].mxu1 %v8475_v25  ;;  %5785 = vmatmul.mubr.bf16.vlgmr.msra.gmra.mrb[20].mxu0 %v8475_v25 }
 0x38c   :  { %5630 = vmatpush1.bf16.msra.mxu1 %v7445_v51  ;;  %5794 = vmatpush1.bf16.msra.mxu0 %v7448_v24  ;;  %v7526_v51 = vld [vmem:[#allocation13 + $0x660] ss:$28 sps:$4 sm:$0xff]   ;;  %v7531_v24 = vld [vmem:[#allocation13 + $0x694] ss:$28 sps:$4 sm:$0xff]  }
 0x38d   :  { %5661 = vmatprep.mubr.bf16.mxu1 %v8479_v11  ;;  %5825 = vmatprep.mubr.bf16.mxu0 %v8479_v11 }
 0x38e   :  { %5631 = vmatprep.subr.bf16.mxu1 %v7453_v26  ;;  %5795 = vmatprep.subr.bf16.mxu0 %v7456_v27  ;;  %v7534_v26 = vld [vmem:[#allocation13 + $0x69c] ss:$28 sps:$4 sm:$0xff]   ;;  %v7147_v27 = vadd.f32 %v8471_v2, %v1066_v21  ;;  %v7603_v21 = vld [vmem:[#allocation13 + $0x934] ss:$28 sps:$4 sm:$0xff]  }
 0x38f   :  { %v7541_v2 = vld [vmem:[#allocation13 + $0x700] ss:$28 sps:$4 sm:$0xff]  }
 0x390   :  { %5632 = vmatpush1.bf16.msra.mxu1 %v7451_v12  ;;  %5796 = vmatpush1.bf16.msra.mxu0 %v7454_v13  ;;  %v7529_v12 = vld [vmem:[#allocation13 + $0x690] ss:$28 sps:$4 sm:$0xff]   ;;  %v7532_v13 = vld [vmem:[#allocation13 + $0x698] ss:$28 sps:$4 sm:$0xff]   ;;  %vm2705_vm9 = vcmp.gt.f32.partialorder %v7147_v27, 0.0 }
 0x391   :  { %5633 = vmatprep.subr.bf16.mxu1 %v7459_v17  ;;  %5797 = vmatprep.subr.bf16.mxu0 %v7462_v18  ;;  %v7537_v17 = vld [vmem:[#allocation13 + $0x6cc] ss:$28 sps:$4 sm:$0xff]   ;;  %v7540_v18 = vld [vmem:[#allocation13 + $0x6d4] ss:$28 sps:$4 sm:$0xff]  }
 0x394   :  { %5634 = vmatpush1.bf16.msra.mxu1 %v7457_v19  ;;  %5798 = vmatpush1.bf16.msra.mxu0 %v7460_v28  ;;  %v2713_v19 = vmul.f32 0.2, %v7147_v27  ;;  %v7535_v28 = vld [vmem:[#allocation13 + $0x6c8] ss:$28 sps:$4 sm:$0xff]  }
 0x395   :  { %5635 = vmatprep.subr.bf16.mxu1 %v7465_v30  ;;  %5799 = vmatprep.subr.bf16.mxu0 %v7468_v32  ;;  %v7538_v30 = vld [vmem:[#allocation13 + $0x6d0] ss:$28 sps:$4 sm:$0xff]   ;;  %v7543_v32 = vld [vmem:[#allocation13 + $0x704] ss:$28 sps:$4 sm:$0xff]  }
 0x398   :  { %5636 = vmatpush1.bf16.msra.mxu1 %v7463_v33  ;;  %5800 = vmatpush1.bf16.msra.mxu0 %v7466_v34  ;;  %v7546_v33 = vld [vmem:[#allocation13 + $0x70c] ss:$28 sps:$4 sm:$0xff]   ;;  %v2721_v34 = vsel %vm2705_vm9, %v7147_v27, %v2713_v19  ;;  %v7612_v27 = vld [vmem:[#allocation13 + $0x974] ss:$28 sps:$4 sm:$0xff]   ;;  %v7613_v19 = vld [vmem:[#allocation13 + $0x9a0] ss:$28 sps:$4 sm:$0xff]  }
 0x399   :  { %5637 = vmatprep.subr.bf16.mxu1 %v7471_v36  ;;  %5801 = vmatprep.subr.bf16.mxu0 %v7474_v37  ;;  %v7544_v36 = vld [vmem:[#allocation13 + $0x708] ss:$28 sps:$4 sm:$0xff]   ;;  %v8488_v37 = vpack.c.bf16 %v2721_v34, %v2721_v34  ;;  %v1077_v34 = vsub.s32 5, %v8387_v35 }
 0x39c   :  { %5638 = vmatpush1.bf16.msra.mxu1 %v7469_v38  ;;  %5802 = vmatpush1.bf16.msra.mxu0 %v7472_v39  ;;  %v7549_v38 = vld [vmem:[#allocation13 + $0x73c] ss:$28 sps:$4 sm:$0xff]   ;;  %v7552_v39 = vld [vmem:[#allocation13 + $0x744] ss:$28 sps:$4 sm:$0xff]  }
 0x39d   :  { %5639 = vmatprep.subr.bf16.mxu1 %v7477_v40  ;;  %5803 = vmatprep.subr.bf16.mxu0 %v7480_v43  ;;  %v7547_v40 = vld [vmem:[#allocation13 + $0x738] ss:$28 sps:$4 sm:$0xff]   ;;  %v7550_v43 = vld [vmem:[#allocation13 + $0x740] ss:$28 sps:$4 sm:$0xff]  }
 0x3a0   :  { %5640 = vmatpush1.bf16.msra.mxu1 %v7475_v44  ;;  %5804 = vmatpush1.bf16.msra.mxu0 %v7478_v45  ;;  %v7555_v44 = vld [vmem:[#allocation13 + $0x774] ss:$28 sps:$4 sm:$0xff]   ;;  %v7558_v45 = vld [vmem:[#allocation13 + $0x77c] ss:$28 sps:$4 sm:$0xff]  }
 0x3a1   :  { %5641 = vmatprep.subr.bf16.mxu1 %v7483_v46  ;;  %5805 = vmatprep.subr.bf16.mxu0 %v7486_v47  ;;  %v7553_v46 = vld [vmem:[#allocation13 + $0x770] ss:$28 sps:$4 sm:$0xff]   ;;  %v7556_v47 = vld [vmem:[#allocation13 + $0x778] ss:$28 sps:$4 sm:$0xff]  }
 0x3a4   :  { %5642 = vmatpush1.bf16.msra.mxu1 %v7481_v48  ;;  %5806 = vmatpush1.bf16.msra.mxu0 %v7484_v49  ;;  %v7561_v48 = vld [vmem:[#allocation13 + $0x7ac] ss:$28 sps:$4 sm:$0xff]   ;;  %v7564_v49 = vld [vmem:[#allocation13 + $0x7b4] ss:$28 sps:$4 sm:$0xff]  }
 0x3a5   :  { %5643 = vmatprep.subr.bf16.mxu1 %v7489_v52  ;;  %5807 = vmatprep.subr.bf16.mxu0 %v7492_v53  ;;  %v7559_v52 = vld [vmem:[#allocation13 + $0x7a8] ss:$28 sps:$4 sm:$0xff]   ;;  %v7562_v53 = vld [vmem:[#allocation13 + $0x7b0] ss:$28 sps:$4 sm:$0xff]  }
 0x3a8   :  { %5644 = vmatpush1.bf16.msra.mxu1 %v7487_v54  ;;  %5808 = vmatpush1.bf16.msra.mxu0 %v7490_v56  ;;  %v7567_v54 = vld [vmem:[#allocation13 + $0x7e4] ss:$28 sps:$4 sm:$0xff]   ;;  %v7570_v56 = vld [vmem:[#allocation13 + $0x7ec] ss:$28 sps:$4 sm:$0xff]  }
 0x3a9   :  { %5645 = vmatprep.subr.bf16.mxu1 %v7495_v57  ;;  %5809 = vmatprep.subr.bf16.mxu0 %v7498_v58  ;;  %v7565_v57 = vld [vmem:[#allocation13 + $0x7e0] ss:$28 sps:$4 sm:$0xff]   ;;  %v7568_v58 = vld [vmem:[#allocation13 + $0x7e8] ss:$28 sps:$4 sm:$0xff]  }
 0x3ac   :  { %5646 = vmatpush1.bf16.msra.mxu1 %v7493_v4  ;;  %5810 = vmatpush1.bf16.msra.mxu0 %v7496_v59  ;;  %v7573_v4 = vld [vmem:[#allocation13 + $0x81c] ss:$28 sps:$4 sm:$0xff]   ;;  %v7576_v59 = vld [vmem:[#allocation13 + $0x824] ss:$28 sps:$4 sm:$0xff]  }
 0x3ad   :  { %5647 = vmatprep.subr.bf16.mxu1 %v7501_v60  ;;  %5811 = vmatprep.subr.bf16.mxu0 %v7504_v62  ;;  %v7571_v60 = vld [vmem:[#allocation13 + $0x818] ss:$28 sps:$4 sm:$0xff]   ;;  %v7574_v62 = vld [vmem:[#allocation13 + $0x820] ss:$28 sps:$4 sm:$0xff]  }
 0x3b0   :  { %5648 = vmatpush1.bf16.msra.mxu1 %v7499_v63  ;;  %5812 = vmatpush1.bf16.msra.mxu0 %v7502_v0  ;;  %v7579_v63 = vld [vmem:[#allocation13 + $0x854] ss:$28 sps:$4 sm:$0xff]   ;;  %v7582_v0 = vld [vmem:[#allocation13 + $0x85c] ss:$28 sps:$4 sm:$0xff]  }
 0x3b1   :  { %5649 = vmatprep.subr.bf16.mxu1 %v7507_v1  ;;  %5813 = vmatprep.subr.bf16.mxu0 %v7510_v3  ;;  %v7577_v1 = vld [vmem:[#allocation13 + $0x850] ss:$28 sps:$4 sm:$0xff]   ;;  %v7580_v3 = vld [vmem:[#allocation13 + $0x858] ss:$28 sps:$4 sm:$0xff]  }
 0x3b4   :  { %5650 = vmatpush1.bf16.msra.mxu1 %v7505_v6  ;;  %5814 = vmatpush1.bf16.msra.mxu0 %v7508_v31  ;;  %v7585_v6 = vld [vmem:[#allocation13 + $0x88c] ss:$28 sps:$4 sm:$0xff]   ;;  %v7588_v31 = vld [vmem:[#allocation13 + $0x894] ss:$28 sps:$4 sm:$0xff]  }
 0x3b5   :  { %5651 = vmatprep.subr.bf16.mxu1 %v7513_v5  ;;  %5815 = vmatprep.subr.bf16.mxu0 %v7516_v7  ;;  %v7583_v5 = vld [vmem:[#allocation13 + $0x888] ss:$28 sps:$4 sm:$0xff]   ;;  %v7586_v7 = vld [vmem:[#allocation13 + $0x890] ss:$28 sps:$4 sm:$0xff]  }
 0x3b8   :  { %5652 = vmatpush1.bf16.msra.mxu1 %v7511_v8  ;;  %5816 = vmatpush1.bf16.msra.mxu0 %v7514_v9  ;;  %v7591_v8 = vld [vmem:[#allocation13 + $0x8c4] ss:$28 sps:$4 sm:$0xff]   ;;  %v7594_v9 = vld [vmem:[#allocation13 + $0x8cc] ss:$28 sps:$4 sm:$0xff]  }
 0x3b9   :  { %5653 = vmatprep.subr.bf16.mxu1 %v7519_v10  ;;  %5817 = vmatprep.subr.bf16.mxu0 %v7522_v14  ;;  %v7589_v10 = vld [vmem:[#allocation13 + $0x8c0] ss:$28 sps:$4 sm:$0xff]   ;;  %v7592_v14 = vld [vmem:[#allocation13 + $0x8c8] ss:$28 sps:$4 sm:$0xff]  }
 0x3bc   :  { %5654 = vmatpush1.bf16.msra.mxu1 %v7517_v15  ;;  %5818 = vmatpush1.bf16.msra.mxu0 %v7520_v29  ;;  %v7597_v15 = vld [vmem:[#allocation13 + $0x8fc] ss:$28 sps:$4 sm:$0xff]   ;;  %v7600_v29 = vld [vmem:[#allocation13 + $0x904] ss:$28 sps:$4 sm:$0xff]  }
 0x3bd   :  { %5655 = vmatprep.subr.bf16.mxu1 %v7525_v16  ;;  %5819 = vmatprep.subr.bf16.mxu0 %v7528_v20  ;;  %v7595_v16 = vld [vmem:[#allocation13 + $0x8f8] ss:$28 sps:$4 sm:$0xff]   ;;  %v7598_v20 = vld [vmem:[#allocation13 + $0x900] ss:$28 sps:$4 sm:$0xff]  }
 0x3c0   :  { %5656 = vmatpush1.bf16.msra.mxu1 %v7523_v23  ;;  %5820 = vmatpush1.bf16.msra.mxu0 %v7526_v51  ;;  %v7606_v23 = vld [vmem:[#allocation13 + $0x93c] ss:$28 sps:$4 sm:$0xff]   ;;  %v7601_v51 = vld [vmem:[#allocation13 + $0x930] ss:$28 sps:$4 sm:$0xff]  }
 0x3c1   :  { %5657 = vmatprep.subr.bf16.mxu1 %v7531_v24  ;;  %5821 = vmatprep.subr.bf16.mxu0 %v7534_v26  ;;  %v7604_v24 = vld [vmem:[#allocation13 + $0x938] ss:$28 sps:$4 sm:$0xff]   ;;  %v7609_v26 = vld [vmem:[#allocation13 + $0x96c] ss:$28 sps:$4 sm:$0xff]  }
 0x3c4   :  { %5658 = vmatpush1.bf16.msra.mxu1 %v7529_v12  ;;  %5822 = vmatpush1.bf16.msra.mxu0 %v7532_v13  ;;  %v7607_v12 = vld [vmem:[#allocation13 + $0x968] ss:$28 sps:$4 sm:$0xff]   ;;  %v7610_v13 = vld [vmem:[#allocation13 + $0x970] ss:$28 sps:$4 sm:$0xff]  }
 0x3c5   :  { %5659 = vmatprep.subr.bf16.mxu1 %v7537_v17  ;;  %5823 = vmatprep.subr.bf16.mxu0 %v7540_v18  ;;  %v7615_v17 = vld [vmem:[#allocation13 + $0x9a4] ss:$28 sps:$4 sm:$0xff]   ;;  %v7618_v18 = vld [vmem:[#allocation13 + $0x9ac] ss:$28 sps:$4 sm:$0xff]  }
 0x3c8   :  { %5660 = vmatpush1.bf16.msra.mxu1 %v7535_v28  ;;  %5824 = vmatpush1.bf16.msra.mxu0 %v7538_v30  ;;  %v7616_v28 = vld [vmem:[#allocation13 + $0x9a8] ss:$28 sps:$4 sm:$0xff]   ;;  %v7621_v30 = vld [vmem:[#allocation13 + $0x9dc] ss:$28 sps:$4 sm:$0xff]  }
 0x3c9   :  { %5670 = vmatprep.subr.bf16.mxu1 %v7543_v32  ;;  %5834 = vmatprep.subr.bf16.mxu0 %v7546_v33  ;;  %v7624_v32 = vld [vmem:[#allocation13 + $0x9e4] ss:$28 sps:$4 sm:$0xff]   ;;  %v1073_v33 = vsub.s32 4, %v8387_v35 }
 0x3cb   :  { %5662 = vmatmul.mubr.bf16.vlgmr.msra.gmra.mrb[8].mxu1 %v8488_v37  ;;  %5826 = vmatmul.mubr.bf16.vlgmr.msra.gmra.mrb[20].mxu0 %v8488_v37 }
 0x3cc   :  { %5671 = vmatpush1.bf16.msra.mxu1 %v7541_v2  ;;  %5835 = vmatpush1.bf16.msra.mxu0 %v7544_v36  ;;  %v7619_v2 = vld [vmem:[#allocation13 + $0x9d8] ss:$28 sps:$4 sm:$0xff]   ;;  %v7622_v36 = vld [vmem:[#allocation13 + $0x9e0] ss:$28 sps:$4 sm:$0xff]  }
 0x3cd   :  { %5672 = vmatprep.subr.bf16.mxu1 %v7549_v38  ;;  %5836 = vmatprep.subr.bf16.mxu0 %v7552_v39  ;;  %v1085_v38 = vsub.s32 7, %v8387_v35  ;;  %v7627_v39 = vld [vmem:[#allocation13 + $0xa14] ss:$28 sps:$4 sm:$0xff]  }
 0x3d0   :  { %5673 = vmatpush1.bf16.msra.mxu1 %v7547_v40  ;;  %5837 = vmatpush1.bf16.msra.mxu0 %v7550_v43  ;;  %v7630_v40 = vld [vmem:[#allocation13 + $0xa1c] ss:$28 sps:$4 sm:$0xff]   ;;  %v1074_v43 = vrot.slane %v8463_v61, %v1073_v33 }
 0x3d1   :  { %5674 = vmatprep.subr.bf16.mxu1 %v7555_v44  ;;  %5838 = vmatprep.subr.bf16.mxu0 %v7558_v45  ;;  %v1078_v44 = vrot.slane %v8463_v61, %v1077_v34  ;;  %v1086_v45 = vrot.slane %v8463_v61, %v1085_v38  ;;  %v7669_v38 = vld [vmem:[#allocation13 + $0xb9c] ss:$28 sps:$4 sm:$0xff]  }
 0x3d4   :  { %5675 = vmatpush1.bf16.msra.mxu1 %v7553_v46  ;;  %5839 = vmatpush1.bf16.msra.mxu0 %v7556_v47  ;;  %v7625_v46 = vld [vmem:[#allocation13 + $0xa10] ss:$28 sps:$4 sm:$0xff]   ;;  %v7628_v47 = vld [vmem:[#allocation13 + $0xa18] ss:$28 sps:$4 sm:$0xff]  }
 0x3d5   :  { %5676 = vmatprep.subr.bf16.mxu1 %v7561_v48  ;;  %5840 = vmatprep.subr.bf16.mxu0 %v7564_v49  ;;  %v7633_v49 = vld [vmem:[#allocation13 + $0xa4c] ss:$28 sps:$4 sm:$0xff]  }
 0x3d8   :  { %5677 = vmatpush1.bf16.msra.mxu1 %v7559_v52  ;;  %5841 = vmatpush1.bf16.msra.mxu0 %v7562_v53  ;;  %v7636_v52 = vld [vmem:[#allocation13 + $0xa54] ss:$28 sps:$4 sm:$0xff]  }
 0x3d9   :  { %5678 = vmatprep.subr.bf16.mxu1 %v7567_v54  ;;  %5842 = vmatprep.subr.bf16.mxu0 %v7570_v56 }
 0x3dc   :  { %5679 = vmatpush1.bf16.msra.mxu1 %v7565_v57  ;;  %5843 = vmatpush1.bf16.msra.mxu0 %v7568_v58  ;;  %v7631_v57 = vld [vmem:[#allocation13 + $0xa48] ss:$28 sps:$4 sm:$0xff]  }
 0x3dd   :  { %5680 = vmatprep.subr.bf16.mxu1 %v7573_v4  ;;  %5844 = vmatprep.subr.bf16.mxu0 %v7576_v59 }
 0x3e0   :  { %5681 = vmatpush1.bf16.msra.mxu1 %v7571_v60  ;;  %5845 = vmatpush1.bf16.msra.mxu0 %v7574_v62  ;;  %v7634_v60 = vld [vmem:[#allocation13 + $0xa50] ss:$28 sps:$4 sm:$0xff]   ;;  %v7639_v62 = vld [vmem:[#allocation13 + $0xa84] ss:$28 sps:$4 sm:$0xff]  }
 0x3e1   :  { %5682 = vmatprep.subr.bf16.mxu1 %v7579_v63  ;;  %5846 = vmatprep.subr.bf16.mxu0 %v7582_v0 }
 0x3e4   :  { %5683 = vmatpush1.bf16.msra.mxu1 %v7577_v1  ;;  %5847 = vmatpush1.bf16.msra.mxu0 %v7580_v3 }
 0x3e5   :  { %5684 = vmatprep.subr.bf16.mxu1 %v7585_v6  ;;  %5848 = vmatprep.subr.bf16.mxu0 %v7588_v31  ;;  %v7642_v31 = vld [vmem:[#allocation13 + $0xa8c] ss:$28 sps:$4 sm:$0xff]  }
 0x3e8   :  { %5685 = vmatpush1.bf16.msra.mxu1 %v7583_v5  ;;  %5849 = vmatpush1.bf16.msra.mxu0 %v7586_v7 }
 0x3e9   :  { %5686 = vmatprep.subr.bf16.mxu1 %v7591_v8  ;;  %5850 = vmatprep.subr.bf16.mxu0 %v7594_v9 }
 0x3ec   :  { %5687 = vmatpush1.bf16.msra.mxu1 %v7589_v10  ;;  %5851 = vmatpush1.bf16.msra.mxu0 %v7592_v14 }
 0x3ed   :  { %5688 = vmatprep.subr.bf16.mxu1 %v7597_v15  ;;  %5852 = vmatprep.subr.bf16.mxu0 %v7600_v29  ;;  %v7637_v15 = vld [vmem:[#allocation13 + $0xa80] ss:$28 sps:$4 sm:$0xff]   ;;  %v7640_v29 = vld [vmem:[#allocation13 + $0xa88] ss:$28 sps:$4 sm:$0xff]  }
 0x3f0   :  { %5689 = vmatpush1.bf16.msra.mxu1 %v7595_v16  ;;  %5853 = vmatpush1.bf16.msra.mxu0 %v7598_v20  ;;  %v7645_v20 = vld [vmem:[#allocation13 + $0xabc] ss:$28 sps:$4 sm:$0xff]  }
 0x3f1   :  { %5690 = vmatprep.subr.bf16.mxu1 %v7603_v21  ;;  %5854 = vmatprep.subr.bf16.mxu0 %v7606_v23  ;;  %v7648_v21 = vld [vmem:[#allocation13 + $0xac4] ss:$28 sps:$4 sm:$0xff]  }
 0x3f4   :  { %5691 = vmatpush1.bf16.msra.mxu1 %v7601_v51  ;;  %5855 = vmatpush1.bf16.msra.mxu0 %v7604_v24  ;;  %v7643_v51 = vld [vmem:[#allocation13 + $0xab8] ss:$28 sps:$4 sm:$0xff]   ;;  %v7646_v24 = vld [vmem:[#allocation13 + $0xac0] ss:$28 sps:$4 sm:$0xff]  }
 0x3f5   :  { %5692 = vmatprep.subr.bf16.mxu1 %v7609_v26  ;;  %5856 = vmatprep.subr.bf16.mxu0 %v7612_v27  ;;  %v7651_v26 = vld [vmem:[#allocation13 + $0xaf4] ss:$28 sps:$4 sm:$0xff]   ;;  %v7654_v27 = vld [vmem:[#allocation13 + $0xafc] ss:$28 sps:$4 sm:$0xff]  }
 0x3f8   :  { %5693 = vmatpush1.bf16.msra.mxu1 %v7607_v12  ;;  %5857 = vmatpush1.bf16.msra.mxu0 %v7610_v13  ;;  %v7649_v12 = vld [vmem:[#allocation13 + $0xaf0] ss:$28 sps:$4 sm:$0xff]   ;;  %v7652_v13 = vld [vmem:[#allocation13 + $0xaf8] ss:$28 sps:$4 sm:$0xff]  }
 0x3f9   :  { %5694 = vmatprep.subr.bf16.mxu1 %v7615_v17  ;;  %5858 = vmatprep.subr.bf16.mxu0 %v7618_v18  ;;  %v7657_v17 = vld [vmem:[#allocation13 + $0xb2c] ss:$28 sps:$4 sm:$0xff]   ;;  %v7660_v18 = vld [vmem:[#allocation13 + $0xb34] ss:$28 sps:$4 sm:$0xff]  }
 0x3fc   :  { %5695 = vmatpush1.bf16.msra.mxu1 %v7613_v19  ;;  %5859 = vmatpush1.bf16.msra.mxu0 %v7616_v28  ;;  %v7655_v19 = vld [vmem:[#allocation13 + $0xb28] ss:$28 sps:$4 sm:$0xff]   ;;  %v7658_v28 = vld [vmem:[#allocation13 + $0xb30] ss:$28 sps:$4 sm:$0xff]  }
 0x3fd   :  { %5696 = vmatprep.subr.bf16.mxu1 %v7621_v30  ;;  %5860 = vmatprep.subr.bf16.mxu0 %v7624_v32  ;;  %v7663_v30 = vld [vmem:[#allocation13 + $0xb64] ss:$28 sps:$4 sm:$0xff]   ;;  %v7666_v32 = vld [vmem:[#allocation13 + $0xb6c] ss:$28 sps:$4 sm:$0xff]  }
 0x400   :  { %5697 = vmatpush1.bf16.msra.mxu1 %v7619_v2  ;;  %5861 = vmatpush1.bf16.msra.mxu0 %v7622_v36  ;;  %v7661_v2 = vld [vmem:[#allocation13 + $0xb60] ss:$28 sps:$4 sm:$0xff]   ;;  %v7664_v36 = vld [vmem:[#allocation13 + $0xb68] ss:$28 sps:$4 sm:$0xff]  }
 0x401   :  { %v2614_v48 = vpop.f32.mrb[4].mxu1  ;;  %5698 = vmatprep.subr.bf16.mxu1 %v7627_v39  ;;  %5862 = vmatprep.subr.bf16.mxu0 %v7630_v40  ;;  %v7672_v39 = vld [vmem:[#allocation13 + $0xba4] ss:$28 sps:$4 sm:$0xff]   ;;  %v7667_v40 = vld [vmem:[#allocation13 + $0xb98] ss:$28 sps:$4 sm:$0xff]  }
 0x402   :  { %v7149_v53 = vadd.f32 %v2614_v48, %v1074_v43  ;;  %v8502_v54 = vpop.f32.mrb[16].mxu0  ;;  %v2616_v56 = vpop.f32.mrb[5].mxu1  ;;  %v7670_v43 = vld [vmem:[#allocation13 + $0xba0] ss:$28 sps:$4 sm:$0xff]   ;;  %v7681_v48 = vld [vmem:[#allocation13 + $0xc0c] ss:$28 sps:$4 sm:$0xff]  }
 0x403   :  { %v7150_v58 = vadd.f32 %v2616_v56, %v1078_v44  ;;  %v2698_v4 = vpop.f32.mrb[17].mxu0  ;;  %v2618_v59 = vpop.f32.mrb[6].mxu1  ;;  %v7675_v44 = vld [vmem:[#allocation13 + $0xbd4] ss:$28 sps:$4 sm:$0xff]   ;;  %v7687_v56 = vld [vmem:[#allocation13 + $0xc44] ss:$28 sps:$4 sm:$0xff]  }
 0x404   :  { %vm2707_vm10 = vcmp.gt.f32.partialorder %v7149_v53, 0.0  ;;  %v2715_v63 = vmul.f32 0.2, %v7149_v53  ;;  %v7152_v0 = vadd.f32 %v2698_v4, %v1086_v45  ;;  %v2700_v1 = vpop.f32.mrb[18].mxu0  ;;  %5699 = vmatpush1.bf16.msra.mxu1 %v7625_v46  ;;  %5863 = vmatpush1.bf16.msra.mxu0 %v7628_v47  ;;  %v2619_v3 = vpop.f32.mrb[7].mxu1 }
 0x405   :  { %vm2708_vm11 = vcmp.gt.f32.partialorder %v7150_v58, 0.0  ;;  %v2716_v6 = vmul.f32 0.2, %v7150_v58  ;;  %5700 = vmatprep.subr.bf16.mxu1 %v7633_v49  ;;  %5864 = vmatprep.subr.bf16.mxu0 %v7636_v52  ;;  %v2701_v8 = vpop.f32.mrb[19].mxu0  ;;  %v7678_v45 = vld [vmem:[#allocation13 + $0xbdc] ss:$28 sps:$4 sm:$0xff]  }
 0x406   :  { %v2723_v5 = vsel %vm2707_vm10, %v7149_v53, %v2715_v63  ;;  %vm2710_vm12 = vcmp.gt.f32.partialorder %v7152_v0, 0.0  ;;  %v2718_v7 = vmul.f32 0.2, %v7152_v0  ;;  %v7673_v46 = vld [vmem:[#allocation13 + $0xbd0] ss:$28 sps:$4 sm:$0xff]  }
 0x407   :  { %v2724_v9 = vsel %vm2708_vm11, %v7150_v58, %v2716_v6  ;;  %v8506_v16 = vpack.c.bf16 %v2723_v5, %v2723_v5  ;;  %v7676_v47 = vld [vmem:[#allocation13 + $0xbd8] ss:$28 sps:$4 sm:$0xff]   ;;  %v7679_v52 = vld [vmem:[#allocation13 + $0xc08] ss:$28 sps:$4 sm:$0xff]   ;;  %v7682_v53 = vld [vmem:[#allocation13 + $0xc10] ss:$28 sps:$4 sm:$0xff]  }
 0x408   :  { %v8504_v10 = vpack.c.bf16 %v2724_v9, %v2724_v9  ;;  %v2726_v14 = vsel %vm2710_vm12, %v7152_v0, %v2718_v7  ;;  %5701 = vmatpush1.bf16.msra.mxu1 %v7631_v57  ;;  %5865 = vmatpush1.bf16.msra.mxu0 %v7634_v60  ;;  %v7684_v49 = vld [vmem:[#allocation13 + $0xc14] ss:$28 sps:$4 sm:$0xff]   ;;  %v7690_v57 = vld [vmem:[#allocation13 + $0xc4c] ss:$28 sps:$4 sm:$0xff]   ;;  %v7685_v58 = vld [vmem:[#allocation13 + $0xc40] ss:$28 sps:$4 sm:$0xff]  }
 0x409   :  { %5711 = vmatprep.subr.bf16.mxu1 %v7639_v62  ;;  %5875 = vmatprep.subr.bf16.mxu0 %v7642_v31  ;;  %v8510_v23 = vpack.c.bf16 %v2726_v14, %v2726_v14  ;;  %v7688_v4 = vld [vmem:[#allocation13 + $0xc48] ss:$28 sps:$4 sm:$0xff]   ;;  %v7693_v59 = vld [vmem:[#allocation13 + $0xc7c] ss:$28 sps:$4 sm:$0xff]   ;;  %v7699_v0 = vld [vmem:[#allocation13 + $0xcb4] ss:$28 sps:$4 sm:$0xff]  }
 0x40a   :  { %5702 = vmatprep.mubr.bf16.mxu1 %v8504_v10  ;;  %5866 = vmatprep.mubr.bf16.mxu0 %v8504_v10  ;;  %v7696_v60 = vld [vmem:[#allocation13 + $0xc84] ss:$28 sps:$4 sm:$0xff]   ;;  %v7691_v62 = vld [vmem:[#allocation13 + $0xc78] ss:$28 sps:$4 sm:$0xff]   ;;  %v7697_v3 = vld [vmem:[#allocation13 + $0xcb0] ss:$28 sps:$4 sm:$0xff]  }
 0x40b   :  { %5703 = vmatmul.mubr.bf16.vlgmr.msra.gmra.mrb[8].mxu1 %v8506_v16  ;;  %5867 = vmatmul.mubr.bf16.vlgmr.msra.gmra.mrb[20].mxu0 %v8506_v16  ;;  %v7694_v63 = vld [vmem:[#allocation13 + $0xc80] ss:$28 sps:$4 sm:$0xff]   ;;  %v7700_v6 = vld [vmem:[#allocation13 + $0xcb8] ss:$28 sps:$4 sm:$0xff]   ;;  %v7705_v31 = vld [vmem:[#allocation13 + $0xcec] ss:$28 sps:$4 sm:$0xff]  }
 0x40c   :  { %5712 = vmatpush1.bf16.msra.mxu1 %v7637_v15  ;;  %5876 = vmatpush1.bf16.msra.mxu0 %v7640_v29  ;;  %v7702_v1 = vld [vmem:[#allocation13 + $0xcbc] ss:$28 sps:$4 sm:$0xff]   ;;  %v7708_v5 = vld [vmem:[#allocation13 + $0xcf4] ss:$28 sps:$4 sm:$0xff]   ;;  %v7703_v7 = vld [vmem:[#allocation13 + $0xce8] ss:$28 sps:$4 sm:$0xff]  }
 0x40d   :  { %5743 = vmatprep.mubr.bf16.mxu1 %v8510_v23  ;;  %5907 = vmatprep.mubr.bf16.mxu0 %v8510_v23  ;;  %v7706_v8 = vld [vmem:[#allocation13 + $0xcf0] ss:$28 sps:$4 sm:$0xff]   ;;  %v7711_v9 = vld [vmem:[#allocation13 + $0xd24] ss:$28 sps:$4 sm:$0xff]   ;;  %v1081_v15 = vsub.s32 6, %v8387_v35 }
 0x40e   :  { %5713 = vmatprep.subr.bf16.mxu1 %v7645_v20  ;;  %5877 = vmatprep.subr.bf16.mxu0 %v7648_v21  ;;  %v7714_v14 = vld [vmem:[#allocation13 + $0xd2c] ss:$28 sps:$4 sm:$0xff]   ;;  %v7709_v29 = vld [vmem:[#allocation13 + $0xd20] ss:$28 sps:$4 sm:$0xff]  }
 0x40f   :  { %v7712_v20 = vld [vmem:[#allocation13 + $0xd28] ss:$28 sps:$4 sm:$0xff]   ;;  %v7717_v21 = vld [vmem:[#allocation13 + $0xd5c] ss:$28 sps:$4 sm:$0xff]  }
 0x410   :  { %5714 = vmatpush1.bf16.msra.mxu1 %v7643_v51  ;;  %5878 = vmatpush1.bf16.msra.mxu0 %v7646_v24  ;;  %v7720_v51 = vld [vmem:[#allocation13 + $0xd64] ss:$28 sps:$4 sm:$0xff]   ;;  %v1082_v24 = vrot.slane %v8463_v61, %v1081_v15 }
 0x411   :  { %5715 = vmatprep.subr.bf16.mxu1 %v7651_v26  ;;  %5879 = vmatprep.subr.bf16.mxu0 %v7654_v27  ;;  %v7715_v26 = vld [vmem:[#allocation13 + $0xd58] ss:$28 sps:$4 sm:$0xff]   ;;  %v7718_v27 = vld [vmem:[#allocation13 + $0xd60] ss:$28 sps:$4 sm:$0xff]   ;;  %v7727_v61 = vld [vmem:[#allocation13 + $0xdc8] ss:$28 sps:$4 sm:$0xff]  }
 0x414   :  { %5716 = vmatpush1.bf16.msra.mxu1 %v7649_v12  ;;  %5880 = vmatpush1.bf16.msra.mxu0 %v7652_v13  ;;  %v7723_v12 = vld [vmem:[#allocation13 + $0xd94] ss:$28 sps:$4 sm:$0xff]   ;;  %v7726_v13 = vld [vmem:[#allocation13 + $0xd9c] ss:$28 sps:$4 sm:$0xff]  }
 0x415   :  { %5717 = vmatprep.subr.bf16.mxu1 %v7657_v17  ;;  %5881 = vmatprep.subr.bf16.mxu0 %v7660_v18  ;;  %v7151_v17 = vadd.f32 %v8502_v54, %v1082_v24  ;;  %v7721_v18 = vld [vmem:[#allocation13 + $0xd90] ss:$28 sps:$4 sm:$0xff]   ;;  %v7777_v24 = vld [vmem:[#allocation13 + $0x398] ss:$28 sps:$4 sm:$0xff]  }
 0x416   :  { %v7733_v54 = vld [vmem:[#allocation13 + $0x10] ss:$28 sps:$4 sm:$0xff]  }
 0x417   :  { %vm2709_vm13 = vcmp.gt.f32.partialorder %v7151_v17, 0.0 }
 0x418   :  { %5718 = vmatpush1.bf16.msra.mxu1 %v7655_v19  ;;  %5882 = vmatpush1.bf16.msra.mxu0 %v7658_v28  ;;  %v7724_v19 = vld [vmem:[#allocation13 + $0xd98] ss:$28 sps:$4 sm:$0xff]   ;;  %v7729_v28 = vld [vmem:[#allocation13 + $0xdcc] ss:$28 sps:$4 sm:$0xff]  }
 0x419   :  { %5719 = vmatprep.subr.bf16.mxu1 %v7663_v30  ;;  %5883 = vmatprep.subr.bf16.mxu0 %v7666_v32  ;;  %v7732_v30 = vld [vmem:[#allocation13 + $0xdd4] ss:$28 sps:$4 sm:$0xff]   ;;  %v2717_v32 = vmul.f32 0.2, %v7151_v17 }
 0x41c   :  { %5720 = vmatpush1.bf16.msra.mxu1 %v7661_v2  ;;  %5884 = vmatpush1.bf16.msra.mxu0 %v7664_v36  ;;  %v7730_v2 = vld [vmem:[#allocation13 + $0xdd0] ss:$28 sps:$4 sm:$0xff]  }
 0x41d   :  { %5721 = vmatprep.subr.bf16.mxu1 %v7669_v38  ;;  %5885 = vmatprep.subr.bf16.mxu0 %v7672_v39  ;;  %v7735_v36 = vld [vmem:[#allocation13 + $0x14] ss:$28 sps:$4 sm:$0xff]   ;;  %v2725_v39 = vsel %vm2709_vm13, %v7151_v17, %v2717_v32  ;;  %v7785_v17 = vld [vmem:[#allocation13 + $0x244] ss:$28 sps:$4 sm:$0xff]  }
 0x41e   :  { %v7736_v38 = vld [vmem:[#allocation13 + $0x1d8] ss:$28 sps:$4 sm:$0xff]   ;;  %v7791_v32 = vld [vmem:[#allocation13 + $0x600] ss:$28 sps:$4 sm:$0xff]  }
 0x420   :  { %5722 = vmatpush1.bf16.msra.mxu1 %v7667_v40  ;;  %5886 = vmatpush1.bf16.msra.mxu0 %v7670_v43  ;;  %v8521_v40 = vpack.c.bf16 %v2725_v39, %v2725_v39  ;;  %v7737_v43 = vld [vmem:[#allocation13 + $0x18] ss:$28 sps:$4 sm:$0xff]   ;;  %v7793_v39 = vld [vmem:[#allocation13 + $0x2b0] ss:$28 sps:$4 sm:$0xff]  }
 0x421   :  { %5723 = vmatprep.subr.bf16.mxu1 %v7675_v44  ;;  %5887 = vmatprep.subr.bf16.mxu0 %v7678_v45  ;;  %v7740_v44 = vld [vmem:[#allocation13 + $0x4c] ss:$28 sps:$4 sm:$0xff]  }
 0x422   :  { %v7741_v45 = vld [vmem:[#allocation13 + $0x210] ss:$28 sps:$4 sm:$0xff]  }
 0x424   :  { %5724 = vmatpush1.bf16.msra.mxu1 %v7673_v46  ;;  %5888 = vmatpush1.bf16.msra.mxu0 %v7676_v47  ;;  %v7738_v46 = vld [vmem:[#allocation13 + $0x48] ss:$28 sps:$4 sm:$0xff]   ;;  %v7742_v47 = vld [vmem:[#allocation13 + $0x50] ss:$28 sps:$4 sm:$0xff]  }
 0x425   :  { %5725 = vmatprep.subr.bf16.mxu1 %v7681_v48  ;;  %5889 = vmatprep.subr.bf16.mxu0 %v7684_v49  ;;  %v7745_v48 = vld [vmem:[#allocation13 + $0x84] ss:$28 sps:$4 sm:$0xff]  }
 0x426   :  { %v7746_v49 = vld [vmem:[#allocation13 + $0x248] ss:$28 sps:$4 sm:$0xff]  }
 0x428   :  { %5726 = vmatpush1.bf16.msra.mxu1 %v7679_v52  ;;  %5890 = vmatpush1.bf16.msra.mxu0 %v7682_v53  ;;  %v7743_v52 = vld [vmem:[#allocation13 + $0x80] ss:$28 sps:$4 sm:$0xff]   ;;  %v7747_v53 = vld [vmem:[#allocation13 + $0x88] ss:$28 sps:$4 sm:$0xff]  }
 0x429   :  { %5727 = vmatprep.subr.bf16.mxu1 %v7687_v56  ;;  %5891 = vmatprep.subr.bf16.mxu0 %v7690_v57  ;;  %v7750_v56 = vld [vmem:[#allocation13 + $0xbc] ss:$28 sps:$4 sm:$0xff]  }
 0x42a   :  { %v7751_v57 = vld [vmem:[#allocation13 + $0x280] ss:$28 sps:$4 sm:$0xff]  }
 0x42c   :  { %5728 = vmatpush1.bf16.msra.mxu1 %v7685_v58  ;;  %5892 = vmatpush1.bf16.msra.mxu0 %v7688_v4  ;;  %v7748_v58 = vld [vmem:[#allocation13 + $0xb8] ss:$28 sps:$4 sm:$0xff]   ;;  %v7752_v4 = vld [vmem:[#allocation13 + $0xc0] ss:$28 sps:$4 sm:$0xff]  }
 0x42d   :  { %5729 = vmatprep.subr.bf16.mxu1 %v7693_v59  ;;  %5893 = vmatprep.subr.bf16.mxu0 %v7696_v60  ;;  %v7755_v59 = vld [vmem:[#allocation13 + $0xf4] ss:$28 sps:$4 sm:$0xff]  }
 0x42e   :  { %v7753_v60 = vld [vmem:[#allocation13 + $0xf0] ss:$28 sps:$4 sm:$0xff]  }
 0x430   :  { %5730 = vmatpush1.bf16.msra.mxu1 %v7691_v62  ;;  %5894 = vmatpush1.bf16.msra.mxu0 %v7694_v63  ;;  %v7757_v62 = vld [vmem:[#allocation13 + $0xf8] ss:$28 sps:$4 sm:$0xff]   ;;  %v7760_v63 = vld [vmem:[#allocation13 + $0x12c] ss:$28 sps:$4 sm:$0xff]  }
 0x431   :  { %5731 = vmatprep.subr.bf16.mxu1 %v7699_v0  ;;  %5895 = vmatprep.subr.bf16.mxu0 %v7702_v1  ;;  %v7761_v0 = vld [vmem:[#allocation13 + $0x2f0] ss:$28 sps:$4 sm:$0xff]   ;;  %v7758_v1 = vld [vmem:[#allocation13 + $0x128] ss:$28 sps:$4 sm:$0xff]  }
 0x434   :  { %5732 = vmatpush1.bf16.msra.mxu1 %v7697_v3  ;;  %5896 = vmatpush1.bf16.msra.mxu0 %v7700_v6  ;;  %v7762_v3 = vld [vmem:[#allocation13 + $0x130] ss:$28 sps:$4 sm:$0xff]   ;;  %v7765_v6 = vld [vmem:[#allocation13 + $0x164] ss:$28 sps:$4 sm:$0xff]  }
 0x435   :  { %5733 = vmatprep.subr.bf16.mxu1 %v7705_v31  ;;  %5897 = vmatprep.subr.bf16.mxu0 %v7708_v5  ;;  %v7766_v31 = vld [vmem:[#allocation13 + $0x328] ss:$28 sps:$4 sm:$0xff]   ;;  %v7763_v5 = vld [vmem:[#allocation13 + $0x160] ss:$28 sps:$4 sm:$0xff]  }
 0x438   :  { %5734 = vmatpush1.bf16.msra.mxu1 %v7703_v7  ;;  %5898 = vmatpush1.bf16.msra.mxu0 %v7706_v8  ;;  %v7767_v7 = vld [vmem:[#allocation13 + $0x168] ss:$28 sps:$4 sm:$0xff]   ;;  %v7770_v8 = vld [vmem:[#allocation13 + $0x19c] ss:$28 sps:$4 sm:$0xff]  }
 0x439   :  { %5735 = vmatprep.subr.bf16.mxu1 %v7711_v9  ;;  %5899 = vmatprep.subr.bf16.mxu0 %v7714_v14  ;;  %v7771_v9 = vld [vmem:[#allocation13 + $0x360] ss:$28 sps:$4 sm:$0xff]   ;;  %v7768_v14 = vld [vmem:[#allocation13 + $0x198] ss:$28 sps:$4 sm:$0xff]  }
 0x43c   :  { %5736 = vmatpush1.bf16.msra.mxu1 %v7709_v29  ;;  %5900 = vmatpush1.bf16.msra.mxu0 %v7712_v20  ;;  %v7772_v29 = vld [vmem:[#allocation13 + $0x1a0] ss:$28 sps:$4 sm:$0xff]   ;;  %v7775_v20 = vld [vmem:[#allocation13 + $0x1d4] ss:$28 sps:$4 sm:$0xff]  }
 0x43d   :  { %5737 = vmatprep.subr.bf16.mxu1 %v7717_v21  ;;  %5901 = vmatprep.subr.bf16.mxu0 %v7720_v51  ;;  %v7776_v21 = vld [vmem:[#allocation13 + $0x558] ss:$28 sps:$4 sm:$0xff]   ;;  %v7773_v51 = vld [vmem:[#allocation13 + $0x1d0] ss:$28 sps:$4 sm:$0xff]  }
 0x440   :  { %5738 = vmatpush1.bf16.msra.mxu1 %v7715_v26  ;;  %5902 = vmatpush1.bf16.msra.mxu0 %v7718_v27  ;;  %v7780_v26 = vld [vmem:[#allocation13 + $0x20c] ss:$28 sps:$4 sm:$0xff]  }
 0x441   :  { %5739 = vmatprep.subr.bf16.mxu1 %v7723_v12  ;;  %5903 = vmatprep.subr.bf16.mxu0 %v7726_v13  ;;  %v7781_v27 = vld [vmem:[#allocation13 + $0x590] ss:$28 sps:$4 sm:$0xff]   ;;  %v7778_v12 = vld [vmem:[#allocation13 + $0x208] ss:$28 sps:$4 sm:$0xff]  }
 0x442   :  { %v7782_v13 = vld [vmem:[#allocation13 + $0x3d0] ss:$28 sps:$4 sm:$0xff]  }
 0x444   :  { %5740 = vmatpush1.bf16.msra.mxu1 %v7721_v18  ;;  %5904 = vmatpush1.bf16.msra.mxu0 %v7724_v19  ;;  %v7786_v18 = vld [vmem:[#allocation13 + $0x5c8] ss:$28 sps:$4 sm:$0xff]   ;;  %v7783_v19 = vld [vmem:[#allocation13 + $0x240] ss:$28 sps:$4 sm:$0xff]  }
 0x445   :  { %5741 = vmatprep.subr.bf16.mxu1 %v7729_v28  ;;  %5905 = vmatprep.subr.bf16.mxu0 %v7732_v30  ;;  %v7787_v28 = vld [vmem:[#allocation13 + $0x408] ss:$28 sps:$4 sm:$0xff]   ;;  %v7790_v30 = vld [vmem:[#allocation13 + $0x27c] ss:$28 sps:$4 sm:$0xff]  }
 0x448   :  { %5742 = vmatpush1.bf16.msra.mxu1 %v7727_v61  ;;  %5906 = vmatpush1.bf16.msra.mxu0 %v7730_v2  ;;  %v7788_v61 = vld [vmem:[#allocation13 + $0x278] ss:$28 sps:$4 sm:$0xff]   ;;  %v7792_v2 = vld [vmem:[#allocation13 + $0x440] ss:$28 sps:$4 sm:$0xff]  }
 0x449   :  { %5916 = vmatprep.subr.bf16.mxu1 %v7735_v36  ;;  %7057 = vmatprep.subr.bf16.mxu0 %v7736_v38  ;;  %v7795_v36 = vld [vmem:[#allocation13 + $0x2b4] ss:$28 sps:$4 sm:$0xff]  }
 0x44a   :  { %v7796_v38 = vld [vmem:[#allocation13 + $0x638] ss:$28 sps:$4 sm:$0xff]  }
 0x44b   :  { %5744 = vmatmul.mubr.bf16.vlgmr.msra.gmra.mrb[8].mxu1 %v8521_v40  ;;  %5908 = vmatmul.mubr.bf16.vlgmr.msra.gmra.mrb[20].mxu0 %v8521_v40 }
 0x44c   :  { %5917 = vmatpush1.bf16.msra.mxu1 %v7733_v54  ;;  %5948 = vmatprep.mubr.bf16.mxu1 %v8473_v22  ;;  %v7797_v54 = vld [vmem:[#allocation13 + $0x478] ss:$28 sps:$4 sm:$0xff]  }
 0x44d   :  { %7058 = vmatpush3.bf16.msra.mxu0 %v7737_v43  ;;  %6112 = vmatprep.mubr.bf16.mxu0 %v8473_v22  ;;  %v7756_v22 = vld [vmem:[#allocation13 + $0x2b8] ss:$28 sps:$4 sm:$0xff]   ;;  %v7800_v43 = vld [vmem:[#allocation13 + $0x2ec] ss:$28 sps:$4 sm:$0xff]  }
 0x44e   :  { %5918 = vmatprep.subr.bf16.mxu1 %v7740_v44  ;;  %7059 = vmatprep.subr.bf16.mxu0 %v7741_v45  ;;  %v7801_v44 = vld [vmem:[#allocation13 + $0x670] ss:$28 sps:$4 sm:$0xff]   ;;  %v7798_v45 = vld [vmem:[#allocation13 + $0x2e8] ss:$28 sps:$4 sm:$0xff]  }
 0x450   :  { %5919 = vmatpush1.bf16.msra.mxu1 %v7738_v46  ;;  %v7802_v46 = vld [vmem:[#allocation13 + $0x4b0] ss:$28 sps:$4 sm:$0xff]  }
 0x451   :  { %7060 = vmatpush3.bf16.msra.mxu0 %v7742_v47  ;;  %5920 = vmatprep.subr.bf16.mxu1 %v7745_v48  ;;  %v7805_v47 = vld [vmem:[#allocation13 + $0x324] ss:$28 sps:$4 sm:$0xff]  }
 0x452   :  { %7061 = vmatprep.subr.bf16.mxu0 %v7746_v49  ;;  %v7806_v48 = vld [vmem:[#allocation13 + $0x6a8] ss:$28 sps:$4 sm:$0xff]   ;;  %v7803_v49 = vld [vmem:[#allocation13 + $0x320] ss:$28 sps:$4 sm:$0xff]  }
 0x454   :  { %5921 = vmatpush1.bf16.msra.mxu1 %v7743_v52  ;;  %v7807_v52 = vld [vmem:[#allocation13 + $0x4e8] ss:$28 sps:$4 sm:$0xff]  }
 0x455   :  { %7062 = vmatpush3.bf16.msra.mxu0 %v7747_v53  ;;  %5922 = vmatprep.subr.bf16.mxu1 %v7750_v56  ;;  %v7810_v53 = vld [vmem:[#allocation13 + $0x35c] ss:$28 sps:$4 sm:$0xff]  }
 0x456   :  { %7063 = vmatprep.subr.bf16.mxu0 %v7751_v57  ;;  %v7811_v56 = vld [vmem:[#allocation13 + $0x6e0] ss:$28 sps:$4 sm:$0xff]   ;;  %v7808_v57 = vld [vmem:[#allocation13 + $0x358] ss:$28 sps:$4 sm:$0xff]  }
 0x458   :  { %5923 = vmatpush1.bf16.msra.mxu1 %v7748_v58  ;;  %v7812_v58 = vld [vmem:[#allocation13 + $0x520] ss:$28 sps:$4 sm:$0xff]  }
 0x459   :  { %7064 = vmatpush3.bf16.msra.mxu0 %v7752_v4  ;;  %5924 = vmatprep.subr.bf16.mxu1 %v7755_v59  ;;  %v7815_v4 = vld [vmem:[#allocation13 + $0x394] ss:$28 sps:$4 sm:$0xff]  }
 0x45a   :  { %7065 = vmatprep.subr.bf16.mxu0 %v7756_v22  ;;  %v7816_v59 = vld [vmem:[#allocation13 + $0x8d8] ss:$28 sps:$4 sm:$0xff]   ;;  %v7813_v22 = vld [vmem:[#allocation13 + $0x390] ss:$28 sps:$4 sm:$0xff]  }
 0x45c   :  { %5925 = vmatpush1.bf16.msra.mxu1 %v7753_v60  ;;  %v7817_v60 = vld [vmem:[#allocation13 + $0x718] ss:$28 sps:$4 sm:$0xff]  }
 0x45d   :  { %7066 = vmatpush3.bf16.msra.mxu0 %v7757_v62  ;;  %5926 = vmatprep.subr.bf16.mxu1 %v7760_v63  ;;  %v7820_v62 = vld [vmem:[#allocation13 + $0x3cc] ss:$28 sps:$4 sm:$0xff]  }
 0x45e   :  { %7067 = vmatprep.subr.bf16.mxu0 %v7761_v0  ;;  %v7821_v63 = vld [vmem:[#allocation13 + $0x910] ss:$28 sps:$4 sm:$0xff]   ;;  %v7818_v0 = vld [vmem:[#allocation13 + $0x3c8] ss:$28 sps:$4 sm:$0xff]  }
 0x460   :  { %5927 = vmatpush1.bf16.msra.mxu1 %v7758_v1  ;;  %v7822_v1 = vld [vmem:[#allocation13 + $0x750] ss:$28 sps:$4 sm:$0xff]  }
 0x461   :  { %7068 = vmatpush3.bf16.msra.mxu0 %v7762_v3  ;;  %5928 = vmatprep.subr.bf16.mxu1 %v7765_v6  ;;  %v7825_v3 = vld [vmem:[#allocation13 + $0x404] ss:$28 sps:$4 sm:$0xff]  }
 0x462   :  { %7069 = vmatprep.subr.bf16.mxu0 %v7766_v31  ;;  %v7826_v6 = vld [vmem:[#allocation13 + $0x948] ss:$28 sps:$4 sm:$0xff]   ;;  %v7823_v31 = vld [vmem:[#allocation13 + $0x400] ss:$28 sps:$4 sm:$0xff]  }
 0x464   :  { %5929 = vmatpush1.bf16.msra.mxu1 %v7763_v5  ;;  %v7830_v5 = vld [vmem:[#allocation13 + $0x43c] ss:$28 sps:$4 sm:$0xff]  }
 0x465   :  { %7070 = vmatpush3.bf16.msra.mxu0 %v7767_v7  ;;  %5930 = vmatprep.subr.bf16.mxu1 %v7770_v8  ;;  %v7831_v7 = vld [vmem:[#allocation13 + $0x980] ss:$28 sps:$4 sm:$0xff]   ;;  %v7828_v8 = vld [vmem:[#allocation13 + $0x438] ss:$28 sps:$4 sm:$0xff]  }
 0x466   :  { %7071 = vmatprep.subr.bf16.mxu0 %v7771_v9  ;;  %v7835_v9 = vld [vmem:[#allocation13 + $0x474] ss:$28 sps:$4 sm:$0xff]  }
 0x468   :  { %5931 = vmatpush1.bf16.msra.mxu1 %v7768_v14  ;;  %v7836_v14 = vld [vmem:[#allocation13 + $0x9b8] ss:$28 sps:$4 sm:$0xff]  }
 0x469   :  { %7072 = vmatpush3.bf16.msra.mxu0 %v7772_v29  ;;  %5932 = vmatprep.subr.bf16.mxu1 %v7775_v20  ;;  %v7833_v29 = vld [vmem:[#allocation13 + $0x470] ss:$28 sps:$4 sm:$0xff]   ;;  %v7837_v20 = vld [vmem:[#allocation13 + $0x7f8] ss:$28 sps:$4 sm:$0xff]  }
 0x46a   :  { %7079 = vmatprep.subr.bf16.mxu0 %v7776_v21  ;;  %v7840_v21 = vld [vmem:[#allocation13 + $0x4ac] ss:$28 sps:$4 sm:$0xff]  }
 0x46c   :  { %6113 = vmatmul.mubr.bf16.vlgmr.msra.gmra.mrb[24].mxu0 %v8475_v25  ;;  %5933 = vmatpush1.bf16.msra.mxu1 %v7773_v51  ;;  %v7841_v51 = vld [vmem:[#allocation13 + $0x9f0] ss:$28 sps:$4 sm:$0xff]  }
 0x46d   :  { %7080 = vmatpush3.bf16.msra.mxu0 %v7777_v24  ;;  %6152 = vmatprep.mubr.bf16.mxu0 %v8479_v11  ;;  %v7838_v24 = vld [vmem:[#allocation13 + $0x4a8] ss:$28 sps:$4 sm:$0xff]  }
 0x46e   :  { %5934 = vmatprep.subr.bf16.mxu1 %v7780_v26  ;;  %7081 = vmatprep.subr.bf16.mxu0 %v7781_v27  ;;  %v7842_v26 = vld [vmem:[#allocation13 + $0x830] ss:$28 sps:$4 sm:$0xff]   ;;  %v7845_v27 = vld [vmem:[#allocation13 + $0x4e4] ss:$28 sps:$4 sm:$0xff]  }
 0x470   :  { %5935 = vmatpush1.bf16.msra.mxu1 %v7778_v12  ;;  %v7846_v12 = vld [vmem:[#allocation13 + $0xa28] ss:$28 sps:$4 sm:$0xff]  }
 0x471   :  { %7082 = vmatpush3.bf16.msra.mxu0 %v7782_v13  ;;  %5936 = vmatprep.subr.bf16.mxu1 %v7785_v17  ;;  %v7843_v13 = vld [vmem:[#allocation13 + $0x4e0] ss:$28 sps:$4 sm:$0xff]   ;;  %v7847_v17 = vld [vmem:[#allocation13 + $0x868] ss:$28 sps:$4 sm:$0xff]  }
 0x472   :  { %7083 = vmatprep.subr.bf16.mxu0 %v7786_v18  ;;  %v7850_v18 = vld [vmem:[#allocation13 + $0x51c] ss:$28 sps:$4 sm:$0xff]  }
 0x474   :  { %5937 = vmatpush1.bf16.msra.mxu1 %v7783_v19  ;;  %v7851_v19 = vld [vmem:[#allocation13 + $0xa60] ss:$28 sps:$4 sm:$0xff]  }
 0x475   :  { %7084 = vmatpush3.bf16.msra.mxu0 %v7787_v28  ;;  %5938 = vmatprep.subr.bf16.mxu1 %v7790_v30  ;;  %v7848_v28 = vld [vmem:[#allocation13 + $0x518] ss:$28 sps:$4 sm:$0xff]   ;;  %v7852_v30 = vld [vmem:[#allocation13 + $0x8a0] ss:$28 sps:$4 sm:$0xff]  }
 0x476   :  { %7085 = vmatprep.subr.bf16.mxu0 %v7791_v32  ;;  %v7855_v32 = vld [vmem:[#allocation13 + $0x554] ss:$28 sps:$4 sm:$0xff]  }
 0x478   :  { %5939 = vmatpush1.bf16.msra.mxu1 %v7788_v61  ;;  %v7856_v61 = vld [vmem:[#allocation13 + $0xc58] ss:$28 sps:$4 sm:$0xff]  }
 0x479   :  { %7086 = vmatpush3.bf16.msra.mxu0 %v7792_v2  ;;  %5940 = vmatprep.subr.bf16.mxu1 %v7795_v36  ;;  %v7853_v2 = vld [vmem:[#allocation13 + $0x550] ss:$28 sps:$4 sm:$0xff]   ;;  %v7857_v36 = vld [vmem:[#allocation13 + $0xa98] ss:$28 sps:$4 sm:$0xff]  }
 0x47a   :  { %7087 = vmatprep.subr.bf16.mxu0 %v7796_v38  ;;  %v7860_v38 = vld [vmem:[#allocation13 + $0x58c] ss:$28 sps:$4 sm:$0xff]  }
 0x47c   :  { %5941 = vmatpush1.bf16.msra.mxu1 %v7793_v39  ;;  %v7861_v39 = vld [vmem:[#allocation13 + $0xc90] ss:$28 sps:$4 sm:$0xff]  }
 0x47d   :  { %7088 = vmatpush3.bf16.msra.mxu0 %v7797_v54  ;;  %5942 = vmatprep.subr.bf16.mxu1 %v7800_v43  ;;  %v7858_v54 = vld [vmem:[#allocation13 + $0x588] ss:$28 sps:$4 sm:$0xff]   ;;  %v7862_v43 = vld [vmem:[#allocation13 + $0xad0] ss:$28 sps:$4 sm:$0xff]  }
 0x47e   :  { %7089 = vmatprep.subr.bf16.mxu0 %v7801_v44  ;;  %v7865_v44 = vld [vmem:[#allocation13 + $0x5c4] ss:$28 sps:$4 sm:$0xff]  }
 0x480   :  { %5943 = vmatpush1.bf16.msra.mxu1 %v7798_v45  ;;  %v7866_v45 = vld [vmem:[#allocation13 + $0xcc8] ss:$28 sps:$4 sm:$0xff]  }
 0x481   :  { %7090 = vmatpush3.bf16.msra.mxu0 %v7802_v46  ;;  %5944 = vmatprep.subr.bf16.mxu1 %v7805_v47  ;;  %v7863_v46 = vld [vmem:[#allocation13 + $0x5c0] ss:$28 sps:$4 sm:$0xff]   ;;  %v7867_v47 = vld [vmem:[#allocation13 + $0xb08] ss:$28 sps:$4 sm:$0xff]  }
 0x482   :  { %7091 = vmatprep.subr.bf16.mxu0 %v7806_v48  ;;  %v7870_v48 = vld [vmem:[#allocation13 + $0x5fc] ss:$28 sps:$4 sm:$0xff]  }
 0x484   :  { %5945 = vmatpush1.bf16.msra.mxu1 %v7803_v49  ;;  %v7871_v49 = vld [vmem:[#allocation13 + $0xd00] ss:$28 sps:$4 sm:$0xff]  }
 0x485   :  { %7092 = vmatpush3.bf16.msra.mxu0 %v7807_v52  ;;  %5946 = vmatprep.subr.bf16.mxu1 %v7810_v53  ;;  %v7868_v52 = vld [vmem:[#allocation13 + $0x5f8] ss:$28 sps:$4 sm:$0xff]   ;;  %v7872_v53 = vld [vmem:[#allocation13 + $0xb40] ss:$28 sps:$4 sm:$0xff]  }
 0x486   :  { %7093 = vmatprep.subr.bf16.mxu0 %v7811_v56  ;;  %v7875_v56 = vld [vmem:[#allocation13 + $0x634] ss:$28 sps:$4 sm:$0xff]  }
 0x488   :  { %5947 = vmatpush1.bf16.msra.mxu1 %v7808_v57  ;;  %v7876_v57 = vld [vmem:[#allocation13 + $0xd38] ss:$28 sps:$4 sm:$0xff]  }
 0x489   :  { %7094 = vmatpush3.bf16.msra.mxu0 %v7812_v58  ;;  %5957 = vmatprep.subr.bf16.mxu1 %v7815_v4  ;;  %v7873_v58 = vld [vmem:[#allocation13 + $0x630] ss:$28 sps:$4 sm:$0xff]   ;;  %v7877_v4 = vld [vmem:[#allocation13 + $0xb78] ss:$28 sps:$4 sm:$0xff]  }
 0x48a   :  { %7101 = vmatprep.subr.bf16.mxu0 %v7816_v59  ;;  %v7880_v59 = vld [vmem:[#allocation13 + $0x66c] ss:$28 sps:$4 sm:$0xff]  }
 0x48b   :  { %5949 = vmatmul.mubr.bf16.vlgmr.msra.gmra.mrb[12].mxu1 %v8475_v25  ;;  %v7827_v25 = vld [vmem:[#allocation13 + $0x788] ss:$28 sps:$4 sm:$0xff]  }
 0x48c   :  { %6153 = vmatmul.mubr.bf16.vlgmr.msra.gmra.mrb[28].mxu0 %v8488_v37  ;;  %5958 = vmatpush1.bf16.msra.mxu1 %v7813_v22  ;;  %v7881_v22 = vld [vmem:[#allocation13 + $0xd70] ss:$28 sps:$4 sm:$0xff]  }
 0x48d   :  { %5989 = vmatprep.mubr.bf16.mxu1 %v8479_v11  ;;  %7102 = vmatpush3.bf16.msra.mxu0 %v7817_v60  ;;  %v7832_v11 = vld [vmem:[#allocation13 + $0x7c0] ss:$28 sps:$4 sm:$0xff]   ;;  %v7878_v60 = vld [vmem:[#allocation13 + $0x668] ss:$28 sps:$4 sm:$0xff]  }
 0x48e   :  { %6192 = vmatprep.mubr.bf16.mxu0 %v8504_v10  ;;  %5959 = vmatprep.subr.bf16.mxu1 %v7820_v62  ;;  %v7882_v62 = vld [vmem:[#allocation13 + $0xbb0] ss:$28 sps:$4 sm:$0xff]  }
 0x48f   :  { %7103 = vmatprep.subr.bf16.mxu0 %v7821_v63  ;;  %v7885_v63 = vld [vmem:[#allocation13 + $0x6a4] ss:$28 sps:$4 sm:$0xff]  }
 0x490   :  { %5960 = vmatpush1.bf16.msra.mxu1 %v7818_v0  ;;  %v7886_v0 = vld [vmem:[#allocation13 + $0xda8] ss:$28 sps:$4 sm:$0xff]  }
 0x491   :  { %7104 = vmatpush3.bf16.msra.mxu0 %v7822_v1  ;;  %5961 = vmatprep.subr.bf16.mxu1 %v7825_v3  ;;  %v7883_v1 = vld [vmem:[#allocation13 + $0x6a0] ss:$28 sps:$4 sm:$0xff]   ;;  %v7887_v3 = vld [vmem:[#allocation13 + $0xbe8] ss:$28 sps:$4 sm:$0xff]  }
 0x492   :  { %7105 = vmatprep.subr.bf16.mxu0 %v7826_v6  ;;  %v7890_v6 = vld [vmem:[#allocation13 + $0x6dc] ss:$28 sps:$4 sm:$0xff]  }
 0x494   :  { %5962 = vmatpush1.bf16.msra.mxu1 %v7823_v31  ;;  %v7891_v31 = vld [vmem:[#allocation13 + $0xde0] ss:$28 sps:$4 sm:$0xff]  }
 0x495   :  { %7106 = vmatpush3.bf16.msra.mxu0 %v7827_v25  ;;  %5963 = vmatprep.subr.bf16.mxu1 %v7830_v5  ;;  %v7888_v25 = vld [vmem:[#allocation13 + $0x6d8] ss:$28 sps:$4 sm:$0xff]   ;;  %v7892_v5 = vld [vmem:[#allocation13 + $0xc20] ss:$28 sps:$4 sm:$0xff]  }
 0x496   :  { %7107 = vmatprep.subr.bf16.mxu0 %v7831_v7  ;;  %v7895_v7 = vld [vmem:[#allocation13 + $0x714] ss:$28 sps:$4 sm:$0xff]  }
 0x498   :  { %5964 = vmatpush1.bf16.msra.mxu1 %v7828_v8  ;;  %v7893_v8 = vld [vmem:[#allocation13 + $0x710] ss:$28 sps:$4 sm:$0xff]  }
 0x499   :  { %7108 = vmatpush3.bf16.msra.mxu0 %v7832_v11  ;;  %5965 = vmatprep.subr.bf16.mxu1 %v7835_v9  ;;  %v7898_v11 = vld [vmem:[#allocation13 + $0x74c] ss:$28 sps:$4 sm:$0xff]  }
 0x49a   :  { %7109 = vmatprep.subr.bf16.mxu0 %v7836_v14  ;;  %v7896_v9 = vld [vmem:[#allocation13 + $0x748] ss:$28 sps:$4 sm:$0xff]  }
 0x49b   :  { %v7901_v14 = vld [vmem:[#allocation13 + $0x784] ss:$28 sps:$4 sm:$0xff]  }
 0x49c   :  { %5966 = vmatpush1.bf16.msra.mxu1 %v7833_v29  ;;  %v7899_v29 = vld [vmem:[#allocation13 + $0x780] ss:$28 sps:$4 sm:$0xff]  }
 0x49d   :  { %7110 = vmatpush3.bf16.msra.mxu0 %v7837_v20  ;;  %5967 = vmatprep.subr.bf16.mxu1 %v7840_v21  ;;  %v7904_v20 = vld [vmem:[#allocation13 + $0x7bc] ss:$28 sps:$4 sm:$0xff]  }
 0x49e   :  { %7111 = vmatprep.subr.bf16.mxu0 %v7841_v51  ;;  %v7902_v21 = vld [vmem:[#allocation13 + $0x7b8] ss:$28 sps:$4 sm:$0xff]  }
 0x49f   :  { %v7907_v51 = vld [vmem:[#allocation13 + $0x7f4] ss:$28 sps:$4 sm:$0xff]  }
 0x4a0   :  { %5968 = vmatpush1.bf16.msra.mxu1 %v7838_v24  ;;  %v7905_v24 = vld [vmem:[#allocation13 + $0x7f0] ss:$28 sps:$4 sm:$0xff]  }
 0x4a1   :  { %7112 = vmatpush3.bf16.msra.mxu0 %v7842_v26  ;;  %5969 = vmatprep.subr.bf16.mxu1 %v7845_v27  ;;  %v7908_v26 = vld [vmem:[#allocation13 + $0x828] ss:$28 sps:$4 sm:$0xff]  }
 0x4a2   :  { %7113 = vmatprep.subr.bf16.mxu0 %v7846_v12  ;;  %v7913_v27 = vld [vmem:[#allocation13 + $0x864] ss:$28 sps:$4 sm:$0xff]   ;;  %v7916_v12 = vld [vmem:[#allocation13 + $0x89c] ss:$28 sps:$4 sm:$0xff]  }
 0x4a4   :  { %5970 = vmatpush1.bf16.msra.mxu1 %v7843_v13  ;;  %v7914_v13 = vld [vmem:[#allocation13 + $0x898] ss:$28 sps:$4 sm:$0xff]  }
 0x4a5   :  { %7114 = vmatpush3.bf16.msra.mxu0 %v7847_v17  ;;  %5971 = vmatprep.subr.bf16.mxu1 %v7850_v18  ;;  %v7919_v17 = vld [vmem:[#allocation13 + $0x8d4] ss:$28 sps:$4 sm:$0xff]  }
 0x4a6   :  { %7115 = vmatprep.subr.bf16.mxu0 %v7851_v19  ;;  %v7917_v18 = vld [vmem:[#allocation13 + $0x8d0] ss:$28 sps:$4 sm:$0xff]  }
 0x4a7   :  { %v7922_v19 = vld [vmem:[#allocation13 + $0x90c] ss:$28 sps:$4 sm:$0xff]  }
 0x4a8   :  { %5972 = vmatpush1.bf16.msra.mxu1 %v7848_v28  ;;  %v7920_v28 = vld [vmem:[#allocation13 + $0x908] ss:$28 sps:$4 sm:$0xff]  }
 0x4a9   :  { %7116 = vmatpush3.bf16.msra.mxu0 %v7852_v30  ;;  %5973 = vmatprep.subr.bf16.mxu1 %v7855_v32  ;;  %v7925_v30 = vld [vmem:[#allocation13 + $0x944] ss:$28 sps:$4 sm:$0xff]  }
 0x4aa   :  { %7123 = vmatprep.subr.bf16.mxu0 %v7856_v61  ;;  %v7923_v32 = vld [vmem:[#allocation13 + $0x940] ss:$28 sps:$4 sm:$0xff]  }
 0x4ab   :  { %v7928_v61 = vld [vmem:[#allocation13 + $0x97c] ss:$28 sps:$4 sm:$0xff]  }
 0x4ac   :  { %6193 = vmatmul.mubr.bf16.vlgmr.msra.gmra.mrb[32].mxu0 %v8506_v16  ;;  %5974 = vmatpush1.bf16.msra.mxu1 %v7853_v2  ;;  %v7926_v2 = vld [vmem:[#allocation13 + $0x978] ss:$28 sps:$4 sm:$0xff]  }
 0x4ad   :  { %7124 = vmatpush3.bf16.msra.mxu0 %v7857_v36  ;;  %6232 = vmatprep.mubr.bf16.mxu0 %v8510_v23  ;;  %v7931_v36 = vld [vmem:[#allocation13 + $0x9b4] ss:$28 sps:$4 sm:$0xff]  }
 0x4ae   :  { %5975 = vmatprep.subr.bf16.mxu1 %v7860_v38  ;;  %7125 = vmatprep.subr.bf16.mxu0 %v7861_v39  ;;  %v7929_v38 = vld [vmem:[#allocation13 + $0x9b0] ss:$28 sps:$4 sm:$0xff]  }
 0x4af   :  { %v7934_v39 = vld [vmem:[#allocation13 + $0x9ec] ss:$28 sps:$4 sm:$0xff]  }
 0x4b0   :  { %5976 = vmatpush1.bf16.msra.mxu1 %v7858_v54  ;;  %v7932_v54 = vld [vmem:[#allocation13 + $0x9e8] ss:$28 sps:$4 sm:$0xff]  }
 0x4b1   :  { %7126 = vmatpush3.bf16.msra.mxu0 %v7862_v43  ;;  %5977 = vmatprep.subr.bf16.mxu1 %v7865_v44  ;;  %v7937_v43 = vld [vmem:[#allocation13 + $0xa24] ss:$28 sps:$4 sm:$0xff]  }
 0x4b2   :  { %7127 = vmatprep.subr.bf16.mxu0 %v7866_v45  ;;  %v7935_v44 = vld [vmem:[#allocation13 + $0xa20] ss:$28 sps:$4 sm:$0xff]  }
 0x4b3   :  { %v7940_v45 = vld [vmem:[#allocation13 + $0xa5c] ss:$28 sps:$4 sm:$0xff]  }
 0x4b4   :  { %5978 = vmatpush1.bf16.msra.mxu1 %v7863_v46  ;;  %v7938_v46 = vld [vmem:[#allocation13 + $0xa58] ss:$28 sps:$4 sm:$0xff]  }
 0x4b5   :  { %7128 = vmatpush3.bf16.msra.mxu0 %v7867_v47  ;;  %5979 = vmatprep.subr.bf16.mxu1 %v7870_v48  ;;  %v7943_v47 = vld [vmem:[#allocation13 + $0xa94] ss:$28 sps:$4 sm:$0xff]  }
 0x4b6   :  { %7129 = vmatprep.subr.bf16.mxu0 %v7871_v49  ;;  %v7941_v48 = vld [vmem:[#allocation13 + $0xa90] ss:$28 sps:$4 sm:$0xff]  }
 0x4b7   :  { %v7946_v49 = vld [vmem:[#allocation13 + $0xacc] ss:$28 sps:$4 sm:$0xff]  }
 0x4b8   :  { %5980 = vmatpush1.bf16.msra.mxu1 %v7868_v52  ;;  %v7944_v52 = vld [vmem:[#allocation13 + $0xac8] ss:$28 sps:$4 sm:$0xff]  }
 0x4b9   :  { %7130 = vmatpush3.bf16.msra.mxu0 %v7872_v53  ;;  %5981 = vmatprep.subr.bf16.mxu1 %v7875_v56  ;;  %v7949_v53 = vld [vmem:[#allocation13 + $0xb04] ss:$28 sps:$4 sm:$0xff]  }
 0x4ba   :  { %7131 = vmatprep.subr.bf16.mxu0 %v7876_v57  ;;  %v7947_v56 = vld [vmem:[#allocation13 + $0xb00] ss:$28 sps:$4 sm:$0xff]  }
 0x4bb   :  { %v7952_v57 = vld [vmem:[#allocation13 + $0xb3c] ss:$28 sps:$4 sm:$0xff]  }
 0x4bc   :  { %5982 = vmatpush1.bf16.msra.mxu1 %v7873_v58  ;;  %v7950_v58 = vld [vmem:[#allocation13 + $0xb38] ss:$28 sps:$4 sm:$0xff]  }
 0x4bd   :  { %7132 = vmatpush3.bf16.msra.mxu0 %v7877_v4  ;;  %5983 = vmatprep.subr.bf16.mxu1 %v7880_v59  ;;  %v7955_v4 = vld [vmem:[#allocation13 + $0xb74] ss:$28 sps:$4 sm:$0xff]  }
 0x4be   :  { %7133 = vmatprep.subr.bf16.mxu0 %v7881_v22  ;;  %v7953_v59 = vld [vmem:[#allocation13 + $0xb70] ss:$28 sps:$4 sm:$0xff]   ;;  %v8540_v22 = vld [vmem:[#allocation14] sm:$0xff] }
 0x4c0   :  { %5984 = vmatpush1.bf16.msra.mxu1 %v7878_v60  ;;  %v3260_v60 = vrot.slane %v8540_v22, %v8438_v50 }
 0x4c1   :  { %7134 = vmatpush3.bf16.msra.mxu0 %v7882_v62  ;;  %5985 = vmatprep.subr.bf16.mxu1 %v7885_v63  ;;  %v3256_v62 = vrot.slane %v8540_v22, %v8393_v42  ;;  %v3264_v63 = vrot.slane %v8540_v22, %v8441_v55  ;;  %v7964_v55 = vld [vmem:[#allocation13 + $0xc1c] ss:$28 sps:$4 sm:$0xff]  }
 0x4c2   :  { %7135 = vmatprep.subr.bf16.mxu0 %v7886_v0  ;;  %v7956_v0 = vld [vmem:[#allocation13 + $0xba8] ss:$28 sps:$4 sm:$0xff]  }
 0x4c4   :  { %5986 = vmatpush1.bf16.msra.mxu1 %v7883_v1  ;;  %v7961_v1 = vld [vmem:[#allocation13 + $0xbe4] ss:$28 sps:$4 sm:$0xff]  }
 0x4c5   :  { %7136 = vmatpush3.bf16.msra.mxu0 %v7887_v3  ;;  %5987 = vmatprep.subr.bf16.mxu1 %v7890_v6 }
 0x4c6   :  { %7137 = vmatprep.subr.bf16.mxu0 %v7891_v31 }
 0x4c8   :  { %5988 = vmatpush1.bf16.msra.mxu1 %v7888_v25 }
 0x4c9   :  { %7138 = vmatpush3.bf16.msra.mxu0 %v7892_v5  ;;  %5998 = vmatprep.subr.bf16.mxu1 %v7895_v7 }
 0x4cb   :  { %5990 = vmatmul.mubr.bf16.vlgmr.msra.gmra.mrb[12].mxu1 %v8488_v37  ;;  %v7910_v37 = vld [vmem:[#allocation13 + $0x82c] ss:$28 sps:$4 sm:$0xff]  }
 0x4cc   :  { %6233 = vmatmul.mubr.bf16.vlgmr.msra.gmra.mrb[36].mxu0 %v8521_v40  ;;  %5999 = vmatpush1.bf16.msra.mxu1 %v7893_v8 }
 0x4cd   :  { %6030 = vmatprep.mubr.bf16.mxu1 %v8504_v10  ;;  %6000 = vmatprep.subr.bf16.mxu1 %v7898_v11  ;;  %v7911_v10 = vld [vmem:[#allocation13 + $0x860] ss:$28 sps:$4 sm:$0xff]  }
 0x4d0   :  { %6001 = vmatpush1.bf16.msra.mxu1 %v7896_v9  ;;  %v7959_v9 = vld [vmem:[#allocation13 + $0xbe0] ss:$28 sps:$4 sm:$0xff]  }
 0x4d1   :  { %6002 = vmatprep.subr.bf16.mxu1 %v7901_v14 }
 0x4d4   :  { %6003 = vmatpush1.bf16.msra.mxu1 %v7899_v29  ;;  %v7962_v29 = vld [vmem:[#allocation13 + $0xc18] ss:$28 sps:$4 sm:$0xff]  }
 0x4d5   :  { %6004 = vmatprep.subr.bf16.mxu1 %v7904_v20  ;;  %v7967_v20 = vld [vmem:[#allocation13 + $0xc54] ss:$28 sps:$4 sm:$0xff]  }
 0x4d8   :  { %6005 = vmatpush1.bf16.msra.mxu1 %v7902_v21  ;;  %v7965_v21 = vld [vmem:[#allocation13 + $0xc50] ss:$28 sps:$4 sm:$0xff]  }
 0x4d9   :  { %6006 = vmatprep.subr.bf16.mxu1 %v7907_v51  ;;  %v7970_v51 = vld [vmem:[#allocation13 + $0xc8c] ss:$28 sps:$4 sm:$0xff]  }
 0x4dc   :  { %6007 = vmatpush1.bf16.msra.mxu1 %v7905_v24 }
 0x4dd   :  { %6008 = vmatprep.subr.bf16.mxu1 %v7910_v37 }
 0x4e0   :  { %6009 = vmatpush1.bf16.msra.mxu1 %v7908_v26  ;;  %v7968_v26 = vld [vmem:[#allocation13 + $0xc88] ss:$28 sps:$4 sm:$0xff]  }
 0x4e1   :  { %6010 = vmatprep.subr.bf16.mxu1 %v7913_v27 }
 0x4e4   :  { %6011 = vmatpush1.bf16.msra.mxu1 %v7911_v10  ;;  %v7973_v10 = vld [vmem:[#allocation13 + $0xcc4] ss:$28 sps:$4 sm:$0xff]  }
 0x4e5   :  { %6012 = vmatprep.subr.bf16.mxu1 %v7916_v12 }
 0x4e8   :  { %6013 = vmatpush1.bf16.msra.mxu1 %v7914_v13  ;;  %v7971_v13 = vld [vmem:[#allocation13 + $0xcc0] ss:$28 sps:$4 sm:$0xff]  }
 0x4e9   :  { %6014 = vmatprep.subr.bf16.mxu1 %v7919_v17  ;;  %v7976_v17 = vld [vmem:[#allocation13 + $0xcfc] ss:$28 sps:$4 sm:$0xff]  }
 0x4ec   :  { %6015 = vmatpush1.bf16.msra.mxu1 %v7917_v18  ;;  %v7974_v18 = vld [vmem:[#allocation13 + $0xcf8] ss:$28 sps:$4 sm:$0xff]  }
 0x4ed   :  { %6016 = vmatprep.subr.bf16.mxu1 %v7922_v19  ;;  %v7979_v19 = vld [vmem:[#allocation13 + $0xd34] ss:$28 sps:$4 sm:$0xff]  }
 0x4f0   :  { %6017 = vmatpush1.bf16.msra.mxu1 %v7920_v28  ;;  %v7977_v28 = vld [vmem:[#allocation13 + $0xd30] ss:$28 sps:$4 sm:$0xff]  }
 0x4f1   :  { %6018 = vmatprep.subr.bf16.mxu1 %v7925_v30  ;;  %v7982_v30 = vld [vmem:[#allocation13 + $0xd6c] ss:$28 sps:$4 sm:$0xff]  }
 0x4f4   :  { %6019 = vmatpush1.bf16.msra.mxu1 %v7923_v32  ;;  %v7980_v32 = vld [vmem:[#allocation13 + $0xd68] ss:$28 sps:$4 sm:$0xff]  }
 0x4f5   :  { %6020 = vmatprep.subr.bf16.mxu1 %v7928_v61  ;;  %v7985_v61 = vld [vmem:[#allocation13 + $0xda4] ss:$28 sps:$4 sm:$0xff]  }
 0x4f8   :  { %6021 = vmatpush1.bf16.msra.mxu1 %v7926_v2 }
 0x4f9   :  { %6022 = vmatprep.subr.bf16.mxu1 %v7931_v36 }
 0x4fc   :  { %6023 = vmatpush1.bf16.msra.mxu1 %v7929_v38  ;;  %v7983_v38 = vld [vmem:[#allocation13 + $0xda0] ss:$28 sps:$4 sm:$0xff]  }
 0x4fd   :  { %6024 = vmatprep.subr.bf16.mxu1 %v7934_v39 }
 0x500   :  { %6025 = vmatpush1.bf16.msra.mxu1 %v7932_v54 }
 0x501   :  { %6026 = vmatprep.subr.bf16.mxu1 %v7937_v43  ;;  %v7988_v43 = vld [vmem:[#allocation13 + $0xddc] ss:$28 sps:$4 sm:$0xff]  }
 0x504   :  { %6027 = vmatpush1.bf16.msra.mxu1 %v7935_v44 }
 0x505   :  { %6028 = vmatprep.subr.bf16.mxu1 %v7940_v45  ;;  %v7986_v45 = vld [vmem:[#allocation13 + $0xdd8] ss:$28 sps:$4 sm:$0xff]  }
 0x508   :  { %6029 = vmatpush1.bf16.msra.mxu1 %v7938_v46  ;;  %v3276_v46 = vrot.slane %v8540_v22, %v1081_v15 }
 0x509   :  { %6039 = vmatprep.subr.bf16.mxu1 %v7943_v47 }
 0x50b   :  { %6031 = vmatmul.mubr.bf16.vlgmr.msra.gmra.mrb[12].mxu1 %v8506_v16  ;;  %v7958_v16 = vld [vmem:[#allocation13 + $0xbac] ss:$28 sps:$4 sm:$0xff]  }
 0x50c   :  { %6040 = vmatpush1.bf16.msra.mxu1 %v7941_v48  ;;  %6071 = vmatprep.mubr.bf16.mxu1 %v8510_v23  ;;  %v3252_v23 = vrot.slane %v8540_v22, %v8390_v41 }
 0x50d   :  { %6041 = vmatprep.subr.bf16.mxu1 %v7946_v49 }
 0x510   :  { %6042 = vmatpush1.bf16.msra.mxu1 %v7944_v52 }
 0x511   :  { %6043 = vmatprep.subr.bf16.mxu1 %v7949_v53 }
 0x514   :  { %6044 = vmatpush1.bf16.msra.mxu1 %v7947_v56 }
 0x515   :  { %6045 = vmatprep.subr.bf16.mxu1 %v7952_v57 }
 0x518   :  { %6046 = vmatpush1.bf16.msra.mxu1 %v7950_v58 }
 0x519   :  { %6047 = vmatprep.subr.bf16.mxu1 %v7955_v4 }
 0x51c   :  { %6048 = vmatpush1.bf16.msra.mxu1 %v7953_v59 }
 0x51d   :  { %6049 = vmatprep.subr.bf16.mxu1 %v7958_v16 }
 0x51e   :  { %v5745_v3 = vpop.f32.mrb[8].mxu1  ;;  %v5909_v6 = vpop.f32.mrb[20].mxu0 }
 0x51f   :  { %v7153_v31 = vadd.f32 %v5745_v3, %v3252_v23  ;;  %v7155_v25 = vadd.f32 %v5909_v6, %v3260_v60  ;;  %v5747_v5 = vpop.f32.mrb[9].mxu1  ;;  %v5911_v7 = vpop.f32.mrb[21].mxu0  ;;  %v3268_v6 = vrot.slane %v8540_v22, %v1073_v33 }
 0x520   :  { %v7154_v41 = vadd.f32 %v5747_v5, %v3256_v62  ;;  %v7156_v8 = vadd.f32 %v5911_v7, %v3264_v63  ;;  %v5749_v11 = vpop.f32.mrb[10].mxu1  ;;  %v5913_v50 = vpop.f32.mrb[22].mxu0  ;;  %6050 = vmatpush1.bf16.msra.mxu1 %v7956_v0 }
 0x521   :  { %7989 = vtanh.f32 %v7153_v31  ;;  %v5750_v42 = vpop.f32.mrb[11].mxu1  ;;  %v5914_v14 = vpop.f32.mrb[23].mxu0  ;;  %6051 = vmatprep.subr.bf16.mxu1 %v7961_v1  ;;  %v3272_v31 = vrot.slane %v8540_v22, %v1077_v34 }
 0x522   :  { %7991 = vtanh.f32 %v7155_v25 }
 0x523   :  { %7993 = vtanh.f32 %v7154_v41 }
 0x524   :  { %7995 = vtanh.f32 %v7156_v8  ;;  %6052 = vmatpush1.bf16.msra.mxu1 %v7959_v9 }
 0x525   :  { %6053 = vmatprep.subr.bf16.mxu1 %v7964_v55 }
 0x528   :  { %6054 = vmatpush1.bf16.msra.mxu1 %v7962_v29 }
 0x529   :  { %6055 = vmatprep.subr.bf16.mxu1 %v7967_v20 }
 0x52b   :  { %v7990_v24 = vpop.eup %7989 }
 0x52c   :  { %v7992_v37 = vpop.eup %7991  ;;  %6247 = vst [vmem:[#allocation16] sm:$0xff] %v7990_v24  ;;  %6056 = vmatpush1.bf16.msra.mxu1 %v7965_v21 }
 0x52d   :  { %v7994_v27 = vpop.eup %7993  ;;  %6249 = vst [vmem:[#allocation16 + $0x10] sm:$0xff] %v7992_v37  ;;  %6057 = vmatprep.subr.bf16.mxu1 %v7970_v51 }
 0x52e   :  { %v7996_v12 = vpop.eup %7995  ;;  %6248 = vst [vmem:[#allocation16 + $0x8] sm:$0xff] %v7994_v27 }
 0x52f   :  { %6250 = vst [vmem:[#allocation16 + $0x18] sm:$0xff] %v7996_v12 }
 0x530   :  { %6058 = vmatpush1.bf16.msra.mxu1 %v7968_v26 }
 0x531   :  { %6059 = vmatprep.subr.bf16.mxu1 %v7973_v10 }
 0x534   :  { %6060 = vmatpush1.bf16.msra.mxu1 %v7971_v13 }
 0x535   :  { %6061 = vmatprep.subr.bf16.mxu1 %v7976_v17 }
 0x538   :  { %6062 = vmatpush1.bf16.msra.mxu1 %v7974_v18 }
 0x539   :  { %6063 = vmatprep.subr.bf16.mxu1 %v7979_v19 }
 0x53c   :  { %6064 = vmatpush1.bf16.msra.mxu1 %v7977_v28 }
 0x53d   :  { %6065 = vmatprep.subr.bf16.mxu1 %v7982_v30 }
 0x53f   :  { %v7073_v2 = vpop.f32.mrb[24].mxu0 }
 0x540   :  { %v7074_v36 = vpop.f32.mrb[25].mxu0  ;;  %6066 = vmatpush1.bf16.msra.mxu1 %v7980_v32 }
 0x541   :  { %v7075_v39 = vadd.f32 %v7074_v36, %v7073_v2  ;;  %v7076_v54 = vpop.f32.mrb[26].mxu0  ;;  %6067 = vmatprep.subr.bf16.mxu1 %v7985_v61 }
 0x542   :  { %v7077_v44 = vpop.f32.mrb[27].mxu0 }
 0x543   :  { %v6115_v49 = vadd.f32 %v7075_v39, %v3276_v46 }
 0x544   :  { %6068 = vmatpush1.bf16.msra.mxu1 %v7983_v38 }
 0x545   :  { %6069 = vmatprep.subr.bf16.mxu1 %v7988_v43 }
 0x548   :  { %6070 = vmatpush1.bf16.msra.mxu1 %v7986_v45 }
 0x54b   :  { %6072 = vmatmul.mubr.bf16.vlgmr.msra.gmra.mrb[12].mxu1 %v8521_v40 }
 0x55f   :  { %v7095_v47 = vpop.f32.mrb[28].mxu0 }
 0x560   :  { %v7096_v48 = vpop.f32.mrb[29].mxu0 }
 0x561   :  { %v7097_v52 = vadd.f32 %v7096_v48, %v7095_v47  ;;  %v7098_v53 = vpop.f32.mrb[30].mxu0 }
 0x562   :  { %v7099_v56 = vpop.f32.mrb[31].mxu0 }
 0x563   :  { %v6155_v57 = vadd.f32 %v7097_v52, %v6115_v49 }
 0x57f   :  { %v7117_v58 = vpop.f32.mrb[32].mxu0 }
 0x580   :  { %v7118_v4 = vpop.f32.mrb[33].mxu0 }
 0x581   :  { %v7119_v59 = vadd.f32 %v7118_v4, %v7117_v58  ;;  %v7120_v16 = vpop.f32.mrb[34].mxu0 }
 0x582   :  { %v7121_v23 = vpop.f32.mrb[35].mxu0 }
 0x583   :  { %v6195_v60 = vadd.f32 %v7119_v59, %v6155_v57 }
 0x59f   :  { %v7139_v62 = vpop.f32.mrb[36].mxu0 }
 0x5a0   :  { %v7140_v63 = vpop.f32.mrb[37].mxu0 }
 0x5a1   :  { %v7141_v40 = vadd.f32 %v7140_v63, %v7139_v62  ;;  %v7142_v0 = vpop.f32.mrb[38].mxu0 }
 0x5a2   :  { %v7143_v1 = vpop.f32.mrb[39].mxu0 }
 0x5a3   :  { %v6235_v3 = vadd.f32 %v7141_v40, %v6195_v60 }
 0x5a5   :  { %7997 = vtanh.f32 %v6235_v3 }
 0x5af   :  { %v7998_v15 = vpop.eup %7997 }
 0x5b0   :  { %6253 = vst [vmem:[#allocation16 + $0x30] sm:$0xff] %v7998_v15 }
 0x61e   :  { %v6073_v25 = vpop.f32.mrb[12].mxu1 }
 0x61f   :  { %v7157_v5 = vadd.f32 %v6073_v25, %v3268_v6  ;;  %v6075_v7 = vpop.f32.mrb[13].mxu1 }
 0x620   :  { %v7158_v41 = vadd.f32 %v6075_v7, %v3272_v31  ;;  %v6077_v8 = vpop.f32.mrb[14].mxu1 }
 0x621   :  { %7999 = vtanh.f32 %v7157_v5  ;;  %v6078_v11 = vpop.f32.mrb[15].mxu1 }
 0x622   :  { %8001 = vtanh.f32 %v7158_v41 }
 0x62b   :  { %v8000_v50 = vpop.eup %7999 }
 0x62c   :  { %v8002_v9 = vpop.eup %8001  ;;  %6251 = vst [vmem:[#allocation16 + $0x20] sm:$0xff] %v8000_v50 }
 0x62d   :  { %6252 = vst [vmem:[#allocation16 + $0x28] sm:$0xff] %v8002_v9 }
 0x62e   :  { %8190 = shalt.err (!%p8187_p12)
}
 0x62f   :  { %s8191_s21 = scalar_lea.hbm %s8581_s9, 896 }
 0x630   :  { %p8192_p13 = scmp.ne.s32.totalorder %s8581_s9, %s8191_s21  ;;  %p8195_p0 = scmp.lt.u32.totalorder %s8191_s21, %s8581_s9 }
 0x632   :  { %p8197_p1 = pnand %p8195_p0, %p8192_p13 }
 0x634   :  { %8200 = shalt.err (!%p8197_p1)
}
 0x635   :  { %6263 = dma.vmem_to_hbm [thread:$0]  %s6261_s17, 896, %s8581_s9, [#allocation4]  }
 0x636   :  { %8211 = dma.done.wait [#allocation4], 896  }
 0x637   :  { %8212 = vsyncadd [#allocation4], 4294966400 }
 0x638   :  { %6267 = vsyncpa [#allocation3], 1 }
 0x639   :  { %6268 = vsyncpa [#allocation6], 1 }
 0x63a   :  { %6269 = vsyncpa [#allocation9], 1 }
 0x63b   :  { %6270 = vsyncpa [#allocation12], 1 }
 0x63c   :  { %6271 = vsyncpa [#allocation15], 1 }
 0x63d   :  { %6272 = vsyncpa [#allocation4], 1 }

</bundles_post_ra>
